<compile_context>
chip_gen: v7x
topology: tpu7x:2x2x1
jax: 0.10.0
libtpu: 0.0.40
codegen_flags: <defaults>
</compile_context>

<pallas_src>
import functools
import math

import jax
import jax.numpy as jnp
from jax import lax
from jax.experimental import pallas as pl
from jax.experimental.pallas import tpu as pltpu


def _layer_norm(x, gamma, beta, eps=1e-5):
    mean = jnp.mean(x, axis=-1, keepdims=True)
    var = jnp.mean(jnp.square(x - mean), axis=-1, keepdims=True)
    return (x - mean) * lax.rsqrt(var + eps) * gamma + beta


def _encoder_layer_kernel(
    x_ref,                                     # (1, C, L) channels-first block
    wqkv_ref, bqkv_ref,                        # (C, 3C) bf16, (1, 3C) f32
    wo_ref, bo_ref,                            # (C, C)  bf16, (1, C)  f32
    g1_ref, be1_ref,                           # attention LayerNorm params
    w1_ref, b1_ref, w2_ref, b2_ref,            # FFN: (C,F) bf16,(1,F),(F,C) bf16,(1,C)
    g2_ref, be2_ref,                           # feedforward LayerNorm params
    o_ref,                                     # (1, C, L)
    *, num_heads: int,
):
    # (C, L) -> (L, C) in-kernel (XLU transpose hidden under MXU work; the
    # wrapper only does free reshapes, no extra HBM passes).
    x = x_ref[0].T.astype(jnp.float32)         # (L, C)
    L, C = x.shape
    dh = C // num_heads
    scale = 1.0 / math.sqrt(dh)

    # --- fused q/k/v projection: one (L,C)@(C,3C) bf16 MXU dot ---
    qkv = jnp.dot(x.astype(jnp.bfloat16), wqkv_ref[...],
                  preferred_element_type=jnp.float32) + bqkv_ref[...]   # (L,3C) f32
    q_bf = (qkv[:, :C] * scale).astype(jnp.bfloat16)                    # (L, C)
    kt_bf = qkv[:, C:2 * C].T.astype(jnp.bfloat16)                      # (C, L), once
    v_bf = qkv[:, 2 * C:].astype(jnp.bfloat16)                          # (L, C)

    # --- multi-head scaled-dot-product attention ---
    # Static unrolled loop over heads; each iteration's only live output is an
    # (L, dh) head slab (scores/softmax temporaries die per iteration).
    # TODO(synk): for very large L on v7x, tile over query blocks (flash-style)
    # and use a head-major layout instead of lane slices at production dh.
    head_outs = []
    for h in range(num_heads):
        lo, hi = h * dh, (h + 1) * dh
        s = jnp.dot(q_bf[:, lo:hi], kt_bf[lo:hi, :],
                    preferred_element_type=jnp.float32)                 # (L, L) f32
        s = s - jnp.max(s, axis=-1, keepdims=True)
        pr = jnp.exp(s)
        pr = pr * pl.reciprocal(jnp.sum(pr, axis=-1, keepdims=True), approx=True)
        head_outs.append(jnp.dot(pr.astype(jnp.bfloat16), v_bf[:, lo:hi],
                                 preferred_element_type=jnp.float32))   # (L, dh)
    heads = jnp.concatenate(head_outs, axis=-1)                         # (L, C)

    # --- single full-K output projection ---
    attn = jnp.dot(heads.astype(jnp.bfloat16), wo_ref[...],
                   preferred_element_type=jnp.float32) + bo_ref[...]
    # TODO(synk): src_mask support omitted (test path passes None); eval-mode
    # dropout is identity and omitted.

    # --- residual + attention LayerNorm (over channels, f32) ---
    out1 = _layer_norm(x + attn, g1_ref[...], be1_ref[...])

    # --- pointwise feedforward: Linear -> ReLU -> Linear (bf16 MXU dots) ---
    hmid = jnp.dot(out1.astype(jnp.bfloat16), w1_ref[...],
                   preferred_element_type=jnp.float32) + b1_ref[...]
    hmid = jnp.maximum(hmid, 0.0)
    ffn = jnp.dot(hmid.astype(jnp.bfloat16), w2_ref[...],
                  preferred_element_type=jnp.float32) + b2_ref[...]

    # --- residual + feedforward LayerNorm ---
    out2 = _layer_norm(out1 + ffn, g2_ref[...], be2_ref[...])
    o_ref[0] = out2.T.astype(o_ref.dtype)      # back to (C, L)


def _vmem_limit_bytes(C, F_dim, L, num_heads):
    """Explicit scoped-VMEM budget sized from the real working set."""
    f32, bf16 = 4, 2
    weights = (3 * C * C + C * C + C * F_dim + F_dim * C) * bf16
    small = (3 * C + 6 * C + F_dim) * f32
    io_blocks = 2 * 2 * (C * L) * f32                       # x + out, double-buffered
    work = (3 * C * L + 6 * C * L + 2 * L * L + F_dim * L) * f32
    est = 2 * weights + 2 * small + io_blocks + work
    # Floor above v5e's 16 MiB default; cap below v7x's 64 MiB physical VMEM.
    return int(min(max(2 * est, 32 * 2 ** 20), 48 * 2 ** 20))


def transformer_encoder_layer_2d(src, p, *, num_heads):
    """src: (B, C, H, W) float32; p: dict of (in, out)-layout weights.

    NOTE: weights use x @ W convention ((in, out)); PyTorch nn.Linear stores
    (out, in) and must be transposed when importing checkpoints.
    """
    B, C, H, W = src.shape
    L = H * W
    assert C % num_heads == 0
    F_dim = p["w1"].shape[1]

    # NCHW -> (B, C, L) is a free reshape; the (C,L)<->(L,C) transpose happens
    # inside the kernel, so no wrapper-side HBM transpose passes.
    x = src.reshape(B, C, L)

    # bf16 weights for the MXU (halves weight DMA/VMEM); biases / LN stay f32.
    wqkv = jnp.concatenate([p["wq"], p["wk"], p["wv"]], axis=1).astype(jnp.bfloat16)
    bqkv = jnp.concatenate([p["bq"], p["bk"], p["bv"]], axis=1).astype(jnp.float32)
    wo = p["wo"].astype(jnp.bfloat16)
    w1 = p["w1"].astype(jnp.bfloat16)
    w2 = p["w2"].astype(jnp.bfloat16)

    kernel = functools.partial(_encoder_layer_kernel, num_heads=num_heads)
    const2d = lambda b: (0, 0)   # weights: same block for every grid step

    def run(weight_mode):
        def wspec(shape):
            if weight_mode is None:
                return pl.BlockSpec(shape, const2d)
            # Resident weights never change across the batch grid ->
            # single-buffer them (halves weight VMEM; matters on v7x's 64 MiB).
            return pl.BlockSpec(shape, const2d, pipeline_mode=weight_mode)

        return pl.pallas_call(
            kernel,
            out_shape=jax.ShapeDtypeStruct((B, C, L), src.dtype),
            grid_spec=pltpu.PrefetchScalarGridSpec(
                num_scalar_prefetch=0,
                grid=(B,),
                in_specs=[
                    pl.BlockSpec((1, C, L), lambda b: (b, 0, 0)),        # x
                    wspec((C, 3 * C)), wspec((1, 3 * C)),                # Wqkv, bqkv
                    wspec((C, C)), wspec((1, C)),                        # Wo, bo
                    wspec((1, C)), wspec((1, C)),                        # LN1 g, b
                    wspec((C, F_dim)), wspec((1, F_dim)),                # W1, b1
                    wspec((F_dim, C)), wspec((1, C)),                    # W2, b2
                    wspec((1, C)), wspec((1, C)),                        # LN2 g, b
                ],
                out_specs=pl.BlockSpec((1, C, L), lambda b: (b, 0, 0)),
            ),
            compiler_params=pltpu.CompilerParams(
                dimension_semantics=("parallel",),   # batch shards across TCs
                vmem_limit_bytes=_vmem_limit_bytes(C, F_dim, L, num_heads),
            ),
        )(x,
          wqkv, bqkv, wo, p["bo"],
          p["ln1_g"], p["ln1_b"],
          w1, p["b1"], w2, p["b2"],
          p["ln2_g"], p["ln2_b"])

    try:
        out = jax.block_until_ready(run(pl.Buffered(1)))
    except Exception:
        # Single-buffered weight pipelining unsupported here; fall back to
        # the default double-buffered pipeline (correctness identical).
        out = run(None)

    # (B, C, L) -> NCHW: free reshape, no transpose.
    return out.reshape(B, C, H, W)


def init_params(key, C, F_dim, scale=0.1):
    ks = jax.random.split(key, 12)
    w = lambda k, s: (scale * jax.random.normal(k, s)).astype(jnp.float32)
    return dict(
        wq=w(ks[0], (C, C)), bq=w(ks[1], (1, C)),
        wk=w(ks[2], (C, C)), bk=w(ks[3], (1, C)),
        wv=w(ks[4], (C, C)), bv=w(ks[5], (1, C)),
        wo=w(ks[6], (C, C)), bo=w(ks[7], (1, C)),
        ln1_g=(1.0 + w(ks[8], (1, C))), ln1_b=w(ks[9], (1, C)),
        w1=w(ks[10], (C, F_dim)), b1=jnp.zeros((1, F_dim), jnp.float32),
        w2=w(ks[11], (F_dim, C)), b2=jnp.zeros((1, C), jnp.float32),
        ln2_g=jnp.ones((1, C), jnp.float32), ln2_b=jnp.zeros((1, C), jnp.float32),
    )


def reference(src, p, num_heads):
    """Pure-JAX f32 reference mirroring the PyTorch forward."""
    B, C, H, W = src.shape
    L = H * W
    dh = C // num_heads
    x = jnp.transpose(src.reshape(B, C, L), (0, 2, 1))            # (B, L, C)

    q = x @ p["wq"] + p["bq"]
    k = x @ p["wk"] + p["bk"]
    v = x @ p["wv"] + p["bv"]
    split = lambda t: t.reshape(B, L, num_heads, dh).transpose(0, 2, 1, 3)
    qh, kh, vh = split(q), split(k), split(v)
    s = jnp.einsum("bhqd,bhkd->bhqk", qh, kh) / math.sqrt(dh)
    s = s - jnp.max(s, axis=-1, keepdims=True)
    pr = jnp.exp(s)
    pr = pr / jnp.sum(pr, axis=-1, keepdims=True)
    heads = jnp.einsum("bhqk,bhkd->bhqd", pr, vh)
    attn = heads.transpose(0, 2, 1, 3).reshape(B, L, C) @ p["wo"] + p["bo"]

    out1 = _layer_norm(x + attn, p["ln1_g"], p["ln1_b"])
    ffn = jnp.maximum(out1 @ p["w1"] + p["b1"], 0.0) @ p["w2"] + p["b2"]
    out2 = _layer_norm(out1 + ffn, p["ln2_g"], p["ln2_b"])
    return jnp.transpose(out2, (0, 2, 1)).reshape(B, C, H, W)


if __name__ == "__main__":
    B, C, H, W = 2, 32, 8, 8
    NUM_HEADS = 4
    FFN_DIM = 64

    key = jax.random.PRNGKey(0)
    k_src, k_par = jax.random.split(key)
    src = jax.random.normal(k_src, (B, C, H, W), dtype=jnp.float32)
    params = init_params(k_par, C, FFN_DIM)

    out = transformer_encoder_layer_2d(src, params, num_heads=NUM_HEADS)
    out = jax.block_until_ready(out)

    ref = reference(src, params, NUM_HEADS)
    assert out.shape == (B, C, H, W)
    max_err = float(jnp.max(jnp.abs(out - ref)))
    # bf16 matmuls (f32 accumulation) vs f32 reference: tolerance absorbs it.
    assert jnp.allclose(out, ref, atol=5e-2, rtol=5e-2), (
        f"mismatch vs reference, max abs err = {max_err}")

    print("KERNEL_OK")
</pallas_src>

<mosaic_0001>
module attributes {stable_mosaic.version = 11 : i64} {
  func.func @_encoder_layer_kernel(%arg0: i32, %arg1: memref<1x32x64xf32, #tpu.memory_space<vmem>>, %arg2: memref<32x96xbf16, #tpu.memory_space<vmem>>, %arg3: memref<1x96xf32, #tpu.memory_space<vmem>>, %arg4: memref<32x32xbf16, #tpu.memory_space<vmem>>, %arg5: memref<1x32xf32, #tpu.memory_space<vmem>>, %arg6: memref<1x32xf32, #tpu.memory_space<vmem>>, %arg7: memref<1x32xf32, #tpu.memory_space<vmem>>, %arg8: memref<32x64xbf16, #tpu.memory_space<vmem>>, %arg9: memref<1x64xf32, #tpu.memory_space<vmem>>, %arg10: memref<64x32xbf16, #tpu.memory_space<vmem>>, %arg11: memref<1x32xf32, #tpu.memory_space<vmem>>, %arg12: memref<1x32xf32, #tpu.memory_space<vmem>>, %arg13: memref<1x32xf32, #tpu.memory_space<vmem>>, %arg14: memref<1x32x64xf32, #tpu.memory_space<vmem>>) attributes {dimension_semantics = [#tpu.dimension_semantics<parallel>], iteration_bounds = array<i64: 2>, scalar_prefetch = 0 : i64, scratch_operands = 0 : i64, tpu.core_type = #tpu.core_type<tc>, window_params = [{transform_indices = @transform_0, window_bounds = array<i64: 1, 32, 64>}, {pipeline_mode = #tpu.pipeline_mode<synchronous>, transform_indices = @transform_1, window_bounds = array<i64: 32, 96>}, {pipeline_mode = #tpu.pipeline_mode<synchronous>, transform_indices = @transform_2, window_bounds = array<i64: 1, 96>}, {pipeline_mode = #tpu.pipeline_mode<synchronous>, transform_indices = @transform_3, window_bounds = array<i64: 32, 32>}, {pipeline_mode = #tpu.pipeline_mode<synchronous>, transform_indices = @transform_4, window_bounds = array<i64: 1, 32>}, {pipeline_mode = #tpu.pipeline_mode<synchronous>, transform_indices = @transform_5, window_bounds = array<i64: 1, 32>}, {pipeline_mode = #tpu.pipeline_mode<synchronous>, transform_indices = @transform_6, window_bounds = array<i64: 1, 32>}, {pipeline_mode = #tpu.pipeline_mode<synchronous>, transform_indices = @transform_7, window_bounds = array<i64: 32, 64>}, {pipeline_mode = #tpu.pipeline_mode<synchronous>, transform_indices = @transform_8, window_bounds = array<i64: 1, 64>}, {pipeline_mode = #tpu.pipeline_mode<synchronous>, transform_indices = @transform_9, window_bounds = array<i64: 64, 32>}, {pipeline_mode = #tpu.pipeline_mode<synchronous>, transform_indices = @transform_10, window_bounds = array<i64: 1, 32>}, {pipeline_mode = #tpu.pipeline_mode<synchronous>, transform_indices = @transform_11, window_bounds = array<i64: 1, 32>}, {pipeline_mode = #tpu.pipeline_mode<synchronous>, transform_indices = @transform_12, window_bounds = array<i64: 1, 32>}, {transform_indices = @transform_13, window_bounds = array<i64: 1, 32, 64>}]} {
    %c0 = arith.constant 0 : index
    %c0_0 = arith.constant 0 : index
    %c0_1 = arith.constant 0 : index
    %0 = vector.load %arg1[%c0, %c0_0, %c0_1] : memref<1x32x64xf32, #tpu.memory_space<vmem>>, vector<1x32x64xf32>
    %1 = vector.shape_cast %0 : vector<1x32x64xf32> to vector<32x64xf32>
    %2 = tpu.transpose %1, [1, 0] : vector<32x64xf32> -> vector<64x32xf32>
    %3 = arith.truncf %2 : vector<64x32xf32> to vector<64x32xbf16>
    %c0_2 = arith.constant 0 : index
    %c0_3 = arith.constant 0 : index
    %4 = vector.load %arg2[%c0_2, %c0_3] : memref<32x96xbf16, #tpu.memory_space<vmem>>, vector<32x96xbf16>
    %cst = arith.constant dense<0.000000e+00> : vector<64x96xf32>
    %5 = tpu.matmul %3, %4, %cst {dimension_numbers = #tpu.dot_dimension_numbers<[1], [0], [0], [1], [0, 0, 1, 1], [], []>} : vector<64x32xbf16>, vector<32x96xbf16>, vector<64x96xf32> -> vector<64x96xf32>
    %c0_4 = arith.constant 0 : index
    %c0_5 = arith.constant 0 : index
    %6 = vector.load %arg3[%c0_4, %c0_5] : memref<1x96xf32, #tpu.memory_space<vmem>>, vector<1x96xf32>
    %7 = vector.broadcast %6 : vector<1x96xf32> to vector<64x96xf32>
    %8 = arith.addf %5, %7 : vector<64x96xf32>
    %9 = vector.extract_strided_slice %8 {offsets = [0, 0], sizes = [64, 32], strides = [1, 1]} : vector<64x96xf32> to vector<64x32xf32>
    %cst_6 = arith.constant 0.353553385 : f32
    %10 = vector.broadcast %cst_6 : f32 to vector<64x32xf32>
    %11 = arith.mulf %9, %10 : vector<64x32xf32>
    %12 = arith.truncf %11 : vector<64x32xf32> to vector<64x32xbf16>
    %13 = vector.extract_strided_slice %8 {offsets = [0, 32], sizes = [64, 32], strides = [1, 1]} : vector<64x96xf32> to vector<64x32xf32>
    %14 = tpu.transpose %13, [1, 0] : vector<64x32xf32> -> vector<32x64xf32>
    %15 = arith.truncf %14 : vector<32x64xf32> to vector<32x64xbf16>
    %16 = vector.extract_strided_slice %8 {offsets = [0, 64], sizes = [64, 32], strides = [1, 1]} : vector<64x96xf32> to vector<64x32xf32>
    %17 = arith.truncf %16 : vector<64x32xf32> to vector<64x32xbf16>
    %18 = vector.extract_strided_slice %12 {offsets = [0, 0], sizes = [64, 8], strides = [1, 1]} : vector<64x32xbf16> to vector<64x8xbf16>
    %19 = vector.extract_strided_slice %15 {offsets = [0, 0], sizes = [8, 64], strides = [1, 1]} : vector<32x64xbf16> to vector<8x64xbf16>
    %cst_7 = arith.constant dense<0.000000e+00> : vector<64x64xf32>
    %20 = tpu.matmul %18, %19, %cst_7 {dimension_numbers = #tpu.dot_dimension_numbers<[1], [0], [0], [1], [0, 0, 1, 1], [], []>} : vector<64x8xbf16>, vector<8x64xbf16>, vector<64x64xf32> -> vector<64x64xf32>
    %cst_8 = arith.constant dense<0xFF800000> : vector<64xf32>
    %21 = vector.multi_reduction <maximumf>, %20, %cst_8 [1] : vector<64x64xf32> to vector<64xf32>
    %22 = vector.shape_cast %21 : vector<64xf32> to vector<64x1xf32>
    %23 = vector.broadcast %22 : vector<64x1xf32> to vector<64x64xf32>
    %24 = arith.subf %20, %23 : vector<64x64xf32>
    %25 = math.exp %24 : vector<64x64xf32>
    %cst_9 = arith.constant dense<0.000000e+00> : vector<64xf32>
    %26 = vector.multi_reduction <add>, %25, %cst_9 [1] : vector<64x64xf32> to vector<64xf32>
    %27 = vector.shape_cast %26 : vector<64xf32> to vector<64x1xf32>
    %28 = tpu.reciprocal %27 {approx = true} : vector<64x1xf32> -> vector<64x1xf32>
    %29 = vector.broadcast %28 : vector<64x1xf32> to vector<64x64xf32>
    %30 = arith.mulf %25, %29 : vector<64x64xf32>
    %31 = arith.truncf %30 : vector<64x64xf32> to vector<64x64xbf16>
    %32 = vector.extract_strided_slice %17 {offsets = [0, 0], sizes = [64, 8], strides = [1, 1]} : vector<64x32xbf16> to vector<64x8xbf16>
    %cst_10 = arith.constant dense<0.000000e+00> : vector<64x8xf32>
    %33 = tpu.matmul %31, %32, %cst_10 {dimension_numbers = #tpu.dot_dimension_numbers<[1], [0], [0], [1], [0, 0, 1, 1], [], []>} : vector<64x64xbf16>, vector<64x8xbf16>, vector<64x8xf32> -> vector<64x8xf32>
    %34 = vector.extract_strided_slice %12 {offsets = [0, 8], sizes = [64, 8], strides = [1, 1]} : vector<64x32xbf16> to vector<64x8xbf16>
    %35 = vector.extract_strided_slice %15 {offsets = [8, 0], sizes = [8, 64], strides = [1, 1]} : vector<32x64xbf16> to vector<8x64xbf16>
    %cst_11 = arith.constant dense<0.000000e+00> : vector<64x64xf32>
    %36 = tpu.matmul %34, %35, %cst_11 {dimension_numbers = #tpu.dot_dimension_numbers<[1], [0], [0], [1], [0, 0, 1, 1], [], []>} : vector<64x8xbf16>, vector<8x64xbf16>, vector<64x64xf32> -> vector<64x64xf32>
    %cst_12 = arith.constant dense<0xFF800000> : vector<64xf32>
    %37 = vector.multi_reduction <maximumf>, %36, %cst_12 [1] : vector<64x64xf32> to vector<64xf32>
    %38 = vector.shape_cast %37 : vector<64xf32> to vector<64x1xf32>
    %39 = vector.broadcast %38 : vector<64x1xf32> to vector<64x64xf32>
    %40 = arith.subf %36, %39 : vector<64x64xf32>
    %41 = math.exp %40 : vector<64x64xf32>
    %cst_13 = arith.constant dense<0.000000e+00> : vector<64xf32>
    %42 = vector.multi_reduction <add>, %41, %cst_13 [1] : vector<64x64xf32> to vector<64xf32>
    %43 = vector.shape_cast %42 : vector<64xf32> to vector<64x1xf32>
    %44 = tpu.reciprocal %43 {approx = true} : vector<64x1xf32> -> vector<64x1xf32>
    %45 = vector.broadcast %44 : vector<64x1xf32> to vector<64x64xf32>
    %46 = arith.mulf %41, %45 : vector<64x64xf32>
    %47 = arith.truncf %46 : vector<64x64xf32> to vector<64x64xbf16>
    %48 = vector.extract_strided_slice %17 {offsets = [0, 8], sizes = [64, 8], strides = [1, 1]} : vector<64x32xbf16> to vector<64x8xbf16>
    %cst_14 = arith.constant dense<0.000000e+00> : vector<64x8xf32>
    %49 = tpu.matmul %47, %48, %cst_14 {dimension_numbers = #tpu.dot_dimension_numbers<[1], [0], [0], [1], [0, 0, 1, 1], [], []>} : vector<64x64xbf16>, vector<64x8xbf16>, vector<64x8xf32> -> vector<64x8xf32>
    %50 = vector.extract_strided_slice %12 {offsets = [0, 16], sizes = [64, 8], strides = [1, 1]} : vector<64x32xbf16> to vector<64x8xbf16>
    %51 = vector.extract_strided_slice %15 {offsets = [16, 0], sizes = [8, 64], strides = [1, 1]} : vector<32x64xbf16> to vector<8x64xbf16>
    %cst_15 = arith.constant dense<0.000000e+00> : vector<64x64xf32>
    %52 = tpu.matmul %50, %51, %cst_15 {dimension_numbers = #tpu.dot_dimension_numbers<[1], [0], [0], [1], [0, 0, 1, 1], [], []>} : vector<64x8xbf16>, vector<8x64xbf16>, vector<64x64xf32> -> vector<64x64xf32>
    %cst_16 = arith.constant dense<0xFF800000> : vector<64xf32>
    %53 = vector.multi_reduction <maximumf>, %52, %cst_16 [1] : vector<64x64xf32> to vector<64xf32>
    %54 = vector.shape_cast %53 : vector<64xf32> to vector<64x1xf32>
    %55 = vector.broadcast %54 : vector<64x1xf32> to vector<64x64xf32>
    %56 = arith.subf %52, %55 : vector<64x64xf32>
    %57 = math.exp %56 : vector<64x64xf32>
    %cst_17 = arith.constant dense<0.000000e+00> : vector<64xf32>
    %58 = vector.multi_reduction <add>, %57, %cst_17 [1] : vector<64x64xf32> to vector<64xf32>
    %59 = vector.shape_cast %58 : vector<64xf32> to vector<64x1xf32>
    %60 = tpu.reciprocal %59 {approx = true} : vector<64x1xf32> -> vector<64x1xf32>
    %61 = vector.broadcast %60 : vector<64x1xf32> to vector<64x64xf32>
    %62 = arith.mulf %57, %61 : vector<64x64xf32>
    %63 = arith.truncf %62 : vector<64x64xf32> to vector<64x64xbf16>
    %64 = vector.extract_strided_slice %17 {offsets = [0, 16], sizes = [64, 8], strides = [1, 1]} : vector<64x32xbf16> to vector<64x8xbf16>
    %cst_18 = arith.constant dense<0.000000e+00> : vector<64x8xf32>
    %65 = tpu.matmul %63, %64, %cst_18 {dimension_numbers = #tpu.dot_dimension_numbers<[1], [0], [0], [1], [0, 0, 1, 1], [], []>} : vector<64x64xbf16>, vector<64x8xbf16>, vector<64x8xf32> -> vector<64x8xf32>
    %66 = vector.extract_strided_slice %12 {offsets = [0, 24], sizes = [64, 8], strides = [1, 1]} : vector<64x32xbf16> to vector<64x8xbf16>
    %67 = vector.extract_strided_slice %15 {offsets = [24, 0], sizes = [8, 64], strides = [1, 1]} : vector<32x64xbf16> to vector<8x64xbf16>
    %cst_19 = arith.constant dense<0.000000e+00> : vector<64x64xf32>
    %68 = tpu.matmul %66, %67, %cst_19 {dimension_numbers = #tpu.dot_dimension_numbers<[1], [0], [0], [1], [0, 0, 1, 1], [], []>} : vector<64x8xbf16>, vector<8x64xbf16>, vector<64x64xf32> -> vector<64x64xf32>
    %cst_20 = arith.constant dense<0xFF800000> : vector<64xf32>
    %69 = vector.multi_reduction <maximumf>, %68, %cst_20 [1] : vector<64x64xf32> to vector<64xf32>
    %70 = vector.shape_cast %69 : vector<64xf32> to vector<64x1xf32>
    %71 = vector.broadcast %70 : vector<64x1xf32> to vector<64x64xf32>
    %72 = arith.subf %68, %71 : vector<64x64xf32>
    %73 = math.exp %72 : vector<64x64xf32>
    %cst_21 = arith.constant dense<0.000000e+00> : vector<64xf32>
    %74 = vector.multi_reduction <add>, %73, %cst_21 [1] : vector<64x64xf32> to vector<64xf32>
    %75 = vector.shape_cast %74 : vector<64xf32> to vector<64x1xf32>
    %76 = tpu.reciprocal %75 {approx = true} : vector<64x1xf32> -> vector<64x1xf32>
    %77 = vector.broadcast %76 : vector<64x1xf32> to vector<64x64xf32>
    %78 = arith.mulf %73, %77 : vector<64x64xf32>
    %79 = arith.truncf %78 : vector<64x64xf32> to vector<64x64xbf16>
    %80 = vector.extract_strided_slice %17 {offsets = [0, 24], sizes = [64, 8], strides = [1, 1]} : vector<64x32xbf16> to vector<64x8xbf16>
    %cst_22 = arith.constant dense<0.000000e+00> : vector<64x8xf32>
    %81 = tpu.matmul %79, %80, %cst_22 {dimension_numbers = #tpu.dot_dimension_numbers<[1], [0], [0], [1], [0, 0, 1, 1], [], []>} : vector<64x64xbf16>, vector<64x8xbf16>, vector<64x8xf32> -> vector<64x8xf32>
    %82 = tpu.concatenate %33, %49, %65, %81 in 1 : vector<64x8xf32>, vector<64x8xf32>, vector<64x8xf32>, vector<64x8xf32> -> vector<64x32xf32>
    %83 = arith.truncf %82 : vector<64x32xf32> to vector<64x32xbf16>
    %c0_23 = arith.constant 0 : index
    %c0_24 = arith.constant 0 : index
    %84 = vector.load %arg4[%c0_23, %c0_24] : memref<32x32xbf16, #tpu.memory_space<vmem>>, vector<32x32xbf16>
    %cst_25 = arith.constant dense<0.000000e+00> : vector<64x32xf32>
    %85 = tpu.matmul %83, %84, %cst_25 {dimension_numbers = #tpu.dot_dimension_numbers<[1], [0], [0], [1], [0, 0, 1, 1], [], []>} : vector<64x32xbf16>, vector<32x32xbf16>, vector<64x32xf32> -> vector<64x32xf32>
    %c0_26 = arith.constant 0 : index
    %c0_27 = arith.constant 0 : index
    %86 = vector.load %arg5[%c0_26, %c0_27] : memref<1x32xf32, #tpu.memory_space<vmem>>, vector<1x32xf32>
    %87 = vector.broadcast %86 : vector<1x32xf32> to vector<64x32xf32>
    %88 = arith.addf %85, %87 : vector<64x32xf32>
    %89 = arith.addf %2, %88 : vector<64x32xf32>
    %c0_28 = arith.constant 0 : index
    %c0_29 = arith.constant 0 : index
    %90 = vector.load %arg6[%c0_28, %c0_29] : memref<1x32xf32, #tpu.memory_space<vmem>>, vector<1x32xf32>
    %c0_30 = arith.constant 0 : index
    %c0_31 = arith.constant 0 : index
    %91 = vector.load %arg7[%c0_30, %c0_31] : memref<1x32xf32, #tpu.memory_space<vmem>>, vector<1x32xf32>
    %cst_32 = arith.constant dense<0.000000e+00> : vector<64xf32>
    %92 = vector.multi_reduction <add>, %89, %cst_32 [1] : vector<64x32xf32> to vector<64xf32>
    %93 = vector.shape_cast %92 : vector<64xf32> to vector<64x1xf32>
    %cst_33 = arith.constant 3.200000e+01 : f32
    %94 = vector.broadcast %cst_33 : f32 to vector<64x1xf32>
    %95 = arith.divf %93, %94 : vector<64x1xf32>
    %96 = vector.broadcast %95 : vector<64x1xf32> to vector<64x32xf32>
    %97 = arith.subf %89, %96 : vector<64x32xf32>
    %98 = arith.mulf %97, %97 : vector<64x32xf32>
    %cst_34 = arith.constant dense<0.000000e+00> : vector<64xf32>
    %99 = vector.multi_reduction <add>, %98, %cst_34 [1] : vector<64x32xf32> to vector<64xf32>
    %100 = vector.shape_cast %99 : vector<64xf32> to vector<64x1xf32>
    %cst_35 = arith.constant 3.200000e+01 : f32
    %101 = vector.broadcast %cst_35 : f32 to vector<64x1xf32>
    %102 = arith.divf %100, %101 : vector<64x1xf32>
    %103 = vector.broadcast %95 : vector<64x1xf32> to vector<64x32xf32>
    %104 = arith.subf %89, %103 : vector<64x32xf32>
    %cst_36 = arith.constant 9.99999974E-6 : f32
    %105 = vector.broadcast %cst_36 : f32 to vector<64x1xf32>
    %106 = arith.addf %102, %105 : vector<64x1xf32>
    %107 = math.rsqrt %106 : vector<64x1xf32>
    %108 = vector.broadcast %107 : vector<64x1xf32> to vector<64x32xf32>
    %109 = arith.mulf %104, %108 : vector<64x32xf32>
    %110 = vector.broadcast %90 : vector<1x32xf32> to vector<64x32xf32>
    %111 = arith.mulf %109, %110 : vector<64x32xf32>
    %112 = vector.broadcast %91 : vector<1x32xf32> to vector<64x32xf32>
    %113 = arith.addf %111, %112 : vector<64x32xf32>
    %114 = arith.truncf %113 : vector<64x32xf32> to vector<64x32xbf16>
    %c0_37 = arith.constant 0 : index
    %c0_38 = arith.constant 0 : index
    %115 = vector.load %arg8[%c0_37, %c0_38] : memref<32x64xbf16, #tpu.memory_space<vmem>>, vector<32x64xbf16>
    %cst_39 = arith.constant dense<0.000000e+00> : vector<64x64xf32>
    %116 = tpu.matmul %114, %115, %cst_39 {dimension_numbers = #tpu.dot_dimension_numbers<[1], [0], [0], [1], [0, 0, 1, 1], [], []>} : vector<64x32xbf16>, vector<32x64xbf16>, vector<64x64xf32> -> vector<64x64xf32>
    %c0_40 = arith.constant 0 : index
    %c0_41 = arith.constant 0 : index
    %117 = vector.load %arg9[%c0_40, %c0_41] : memref<1x64xf32, #tpu.memory_space<vmem>>, vector<1x64xf32>
    %118 = vector.broadcast %117 : vector<1x64xf32> to vector<64x64xf32>
    %119 = arith.addf %116, %118 : vector<64x64xf32>
    %cst_42 = arith.constant 0.000000e+00 : f32
    %120 = vector.broadcast %cst_42 : f32 to vector<64x64xf32>
    %121 = arith.maximumf %119, %120 : vector<64x64xf32>
    %122 = arith.truncf %121 : vector<64x64xf32> to vector<64x64xbf16>
    %c0_43 = arith.constant 0 : index
    %c0_44 = arith.constant 0 : index
    %123 = vector.load %arg10[%c0_43, %c0_44] : memref<64x32xbf16, #tpu.memory_space<vmem>>, vector<64x32xbf16>
    %cst_45 = arith.constant dense<0.000000e+00> : vector<64x32xf32>
    %124 = tpu.matmul %122, %123, %cst_45 {dimension_numbers = #tpu.dot_dimension_numbers<[1], [0], [0], [1], [0, 0, 1, 1], [], []>} : vector<64x64xbf16>, vector<64x32xbf16>, vector<64x32xf32> -> vector<64x32xf32>
    %c0_46 = arith.constant 0 : index
    %c0_47 = arith.constant 0 : index
    %125 = vector.load %arg11[%c0_46, %c0_47] : memref<1x32xf32, #tpu.memory_space<vmem>>, vector<1x32xf32>
    %126 = vector.broadcast %125 : vector<1x32xf32> to vector<64x32xf32>
    %127 = arith.addf %124, %126 : vector<64x32xf32>
    %128 = arith.addf %113, %127 : vector<64x32xf32>
    %c0_48 = arith.constant 0 : index
    %c0_49 = arith.constant 0 : index
    %129 = vector.load %arg12[%c0_48, %c0_49] : memref<1x32xf32, #tpu.memory_space<vmem>>, vector<1x32xf32>
    %c0_50 = arith.constant 0 : index
    %c0_51 = arith.constant 0 : index
    %130 = vector.load %arg13[%c0_50, %c0_51] : memref<1x32xf32, #tpu.memory_space<vmem>>, vector<1x32xf32>
    %cst_52 = arith.constant dense<0.000000e+00> : vector<64xf32>
    %131 = vector.multi_reduction <add>, %128, %cst_52 [1] : vector<64x32xf32> to vector<64xf32>
    %132 = vector.shape_cast %131 : vector<64xf32> to vector<64x1xf32>
    %cst_53 = arith.constant 3.200000e+01 : f32
    %133 = vector.broadcast %cst_53 : f32 to vector<64x1xf32>
    %134 = arith.divf %132, %133 : vector<64x1xf32>
    %135 = vector.broadcast %134 : vector<64x1xf32> to vector<64x32xf32>
    %136 = arith.subf %128, %135 : vector<64x32xf32>
    %137 = arith.mulf %136, %136 : vector<64x32xf32>
    %cst_54 = arith.constant dense<0.000000e+00> : vector<64xf32>
    %138 = vector.multi_reduction <add>, %137, %cst_54 [1] : vector<64x32xf32> to vector<64xf32>
    %139 = vector.shape_cast %138 : vector<64xf32> to vector<64x1xf32>
    %cst_55 = arith.constant 3.200000e+01 : f32
    %140 = vector.broadcast %cst_55 : f32 to vector<64x1xf32>
    %141 = arith.divf %139, %140 : vector<64x1xf32>
    %142 = vector.broadcast %134 : vector<64x1xf32> to vector<64x32xf32>
    %143 = arith.subf %128, %142 : vector<64x32xf32>
    %cst_56 = arith.constant 9.99999974E-6 : f32
    %144 = vector.broadcast %cst_56 : f32 to vector<64x1xf32>
    %145 = arith.addf %141, %144 : vector<64x1xf32>
    %146 = math.rsqrt %145 : vector<64x1xf32>
    %147 = vector.broadcast %146 : vector<64x1xf32> to vector<64x32xf32>
    %148 = arith.mulf %143, %147 : vector<64x32xf32>
    %149 = vector.broadcast %129 : vector<1x32xf32> to vector<64x32xf32>
    %150 = arith.mulf %148, %149 : vector<64x32xf32>
    %151 = vector.broadcast %130 : vector<1x32xf32> to vector<64x32xf32>
    %152 = arith.addf %150, %151 : vector<64x32xf32>
    %153 = tpu.transpose %152, [1, 0] : vector<64x32xf32> -> vector<32x64xf32>
    %c0_57 = arith.constant 0 : index
    %c0_58 = arith.constant 0 : index
    %c0_59 = arith.constant 0 : index
    %154 = vector.load %arg14[%c0_57, %c0_58, %c0_59] : memref<1x32x64xf32, #tpu.memory_space<vmem>>, vector<1x32x64xf32>
    %155 = vector.shape_cast %154 : vector<1x32x64xf32> to vector<32x64xf32>
    %156 = vector.shape_cast %153 : vector<32x64xf32> to vector<1x32x64xf32>
    tpu.vector_store %arg14[%c0_57, %c0_58, %c0_59], %156 {strides = array<i32>} : memref<1x32x64xf32, #tpu.memory_space<vmem>>, vector<1x32x64xf32>,
    return
  }
  func.func @transform_0(%arg0: i32) -> (i32, i32, i32) {
    %c0_i32 = arith.constant 0 : i32
    %c0_i32_0 = arith.constant 0 : i32
    %c0_i32_1 = arith.constant 0 : i32
    return %arg0, %c0_i32, %c0_i32_0 : i32, i32, i32
  }
  func.func @transform_1(%arg0: i32) -> (i32, i32) {
    %c0_i32 = arith.constant 0 : i32
    %c0_i32_0 = arith.constant 0 : i32
    %c0_i32_1 = arith.constant 0 : i32
    return %c0_i32, %c0_i32_0 : i32, i32
  }
  func.func @transform_2(%arg0: i32) -> (i32, i32) {
    %c0_i32 = arith.constant 0 : i32
    %c0_i32_0 = arith.constant 0 : i32
    %c0_i32_1 = arith.constant 0 : i32
    return %c0_i32, %c0_i32_0 : i32, i32
  }
  func.func @transform_3(%arg0: i32) -> (i32, i32) {
    %c0_i32 = arith.constant 0 : i32
    %c0_i32_0 = arith.constant 0 : i32
    %c0_i32_1 = arith.constant 0 : i32
    return %c0_i32, %c0_i32_0 : i32, i32
  }
  func.func @transform_4(%arg0: i32) -> (i32, i32) {
    %c0_i32 = arith.constant 0 : i32
    %c0_i32_0 = arith.constant 0 : i32
    %c0_i32_1 = arith.constant 0 : i32
    return %c0_i32, %c0_i32_0 : i32, i32
  }
  func.func @transform_5(%arg0: i32) -> (i32, i32) {
    %c0_i32 = arith.constant 0 : i32
    %c0_i32_0 = arith.constant 0 : i32
    %c0_i32_1 = arith.constant 0 : i32
    return %c0_i32, %c0_i32_0 : i32, i32
  }
  func.func @transform_6(%arg0: i32) -> (i32, i32) {
    %c0_i32 = arith.constant 0 : i32
    %c0_i32_0 = arith.constant 0 : i32
    %c0_i32_1 = arith.constant 0 : i32
    return %c0_i32, %c0_i32_0 : i32, i32
  }
  func.func @transform_7(%arg0: i32) -> (i32, i32) {
    %c0_i32 = arith.constant 0 : i32
    %c0_i32_0 = arith.constant 0 : i32
    %c0_i32_1 = arith.constant 0 : i32
    return %c0_i32, %c0_i32_0 : i32, i32
  }
  func.func @transform_8(%arg0: i32) -> (i32, i32) {
    %c0_i32 = arith.constant 0 : i32
    %c0_i32_0 = arith.constant 0 : i32
    %c0_i32_1 = arith.constant 0 : i32
    return %c0_i32, %c0_i32_0 : i32, i32
  }
  func.func @transform_9(%arg0: i32) -> (i32, i32) {
    %c0_i32 = arith.constant 0 : i32
    %c0_i32_0 = arith.constant 0 : i32
    %c0_i32_1 = arith.constant 0 : i32
    return %c0_i32, %c0_i32_0 : i32, i32
  }
  func.func @transform_10(%arg0: i32) -> (i32, i32) {
    %c0_i32 = arith.constant 0 : i32
    %c0_i32_0 = arith.constant 0 : i32
    %c0_i32_1 = arith.constant 0 : i32
    return %c0_i32, %c0_i32_0 : i32, i32
  }
  func.func @transform_11(%arg0: i32) -> (i32, i32) {
    %c0_i32 = arith.constant 0 : i32
    %c0_i32_0 = arith.constant 0 : i32
    %c0_i32_1 = arith.constant 0 : i32
    return %c0_i32, %c0_i32_0 : i32, i32
  }
  func.func @transform_12(%arg0: i32) -> (i32, i32) {
    %c0_i32 = arith.constant 0 : i32
    %c0_i32_0 = arith.constant 0 : i32
    %c0_i32_1 = arith.constant 0 : i32
    return %c0_i32, %c0_i32_0 : i32, i32
  }
  func.func @transform_13(%arg0: i32) -> (i32, i32, i32) {
    %c0_i32 = arith.constant 0 : i32
    %c0_i32_0 = arith.constant 0 : i32
    %c0_i32_1 = arith.constant 0 : i32
    return %arg0, %c0_i32, %c0_i32_0 : i32, i32, i32
  }
}

module attributes {stable_mosaic.version = 11 : i64} {
  func.func @_encoder_layer_kernel(%arg0: i32, %arg1: memref<1x32x64xf32, #tpu.memory_space<vmem>>, %arg2: memref<32x96xbf16, #tpu.memory_space<vmem>>, %arg3: memref<1x96xf32, #tpu.memory_space<vmem>>, %arg4: memref<32x32xbf16, #tpu.memory_space<vmem>>, %arg5: memref<1x32xf32, #tpu.memory_space<vmem>>, %arg6: memref<1x32xf32, #tpu.memory_space<vmem>>, %arg7: memref<1x32xf32, #tpu.memory_space<vmem>>, %arg8: memref<32x64xbf16, #tpu.memory_space<vmem>>, %arg9: memref<1x64xf32, #tpu.memory_space<vmem>>, %arg10: memref<64x32xbf16, #tpu.memory_space<vmem>>, %arg11: memref<1x32xf32, #tpu.memory_space<vmem>>, %arg12: memref<1x32xf32, #tpu.memory_space<vmem>>, %arg13: memref<1x32xf32, #tpu.memory_space<vmem>>, %arg14: memref<1x32x64xf32, #tpu.memory_space<vmem>>) attributes {dimension_semantics = [#tpu.dimension_semantics<parallel>], iteration_bounds = array<i64: 2>, scalar_prefetch = 0 : i64, scratch_operands = 0 : i64, tpu.core_type = #tpu.core_type<tc>, window_params = [{transform_indices = @transform_0, window_bounds = array<i64: 1, 32, 64>}, {pipeline_mode = #tpu.pipeline_mode<synchronous>, transform_indices = @transform_1, window_bounds = array<i64: 32, 96>}, {pipeline_mode = #tpu.pipeline_mode<synchronous>, transform_indices = @transform_2, window_bounds = array<i64: 1, 96>}, {pipeline_mode = #tpu.pipeline_mode<synchronous>, transform_indices = @transform_3, window_bounds = array<i64: 32, 32>}, {pipeline_mode = #tpu.pipeline_mode<synchronous>, transform_indices = @transform_4, window_bounds = array<i64: 1, 32>}, {pipeline_mode = #tpu.pipeline_mode<synchronous>, transform_indices = @transform_5, window_bounds = array<i64: 1, 32>}, {pipeline_mode = #tpu.pipeline_mode<synchronous>, transform_indices = @transform_6, window_bounds = array<i64: 1, 32>}, {pipeline_mode = #tpu.pipeline_mode<synchronous>, transform_indices = @transform_7, window_bounds = array<i64: 32, 64>}, {pipeline_mode = #tpu.pipeline_mode<synchronous>, transform_indices = @transform_8, window_bounds = array<i64: 1, 64>}, {pipeline_mode = #tpu.pipeline_mode<synchronous>, transform_indices = @transform_9, window_bounds = array<i64: 64, 32>}, {pipeline_mode = #tpu.pipeline_mode<synchronous>, transform_indices = @transform_10, window_bounds = array<i64: 1, 32>}, {pipeline_mode = #tpu.pipeline_mode<synchronous>, transform_indices = @transform_11, window_bounds = array<i64: 1, 32>}, {pipeline_mode = #tpu.pipeline_mode<synchronous>, transform_indices = @transform_12, window_bounds = array<i64: 1, 32>}, {transform_indices = @transform_13, window_bounds = array<i64: 1, 32, 64>}]} {
    %c0 = arith.constant 0 : index
    %c0_0 = arith.constant 0 : index
    %c0_1 = arith.constant 0 : index
    %0 = vector.load %arg1[%c0, %c0_0, %c0_1] : memref<1x32x64xf32, #tpu.memory_space<vmem>>, vector<1x32x64xf32>
    %1 = vector.shape_cast %0 : vector<1x32x64xf32> to vector<32x64xf32>
    %2 = tpu.transpose %1, [1, 0] : vector<32x64xf32> -> vector<64x32xf32>
    %3 = arith.truncf %2 : vector<64x32xf32> to vector<64x32xbf16>
    %c0_2 = arith.constant 0 : index
    %c0_3 = arith.constant 0 : index
    %4 = vector.load %arg2[%c0_2, %c0_3] : memref<32x96xbf16, #tpu.memory_space<vmem>>, vector<32x96xbf16>
    %cst = arith.constant dense<0.000000e+00> : vector<64x96xf32>
    %5 = tpu.matmul %3, %4, %cst {dimension_numbers = #tpu.dot_dimension_numbers<[1], [0], [0], [1], [0, 0, 1, 1], [], []>} : vector<64x32xbf16>, vector<32x96xbf16>, vector<64x96xf32> -> vector<64x96xf32>
    %c0_4 = arith.constant 0 : index
    %c0_5 = arith.constant 0 : index
    %6 = vector.load %arg3[%c0_4, %c0_5] : memref<1x96xf32, #tpu.memory_space<vmem>>, vector<1x96xf32>
    %7 = vector.broadcast %6 : vector<1x96xf32> to vector<64x96xf32>
    %8 = arith.addf %5, %7 : vector<64x96xf32>
    %9 = vector.extract_strided_slice %8 {offsets = [0, 0], sizes = [64, 32], strides = [1, 1]} : vector<64x96xf32> to vector<64x32xf32>
    %cst_6 = arith.constant 0.353553385 : f32
    %10 = vector.broadcast %cst_6 : f32 to vector<64x32xf32>
    %11 = arith.mulf %9, %10 : vector<64x32xf32>
    %12 = arith.truncf %11 : vector<64x32xf32> to vector<64x32xbf16>
    %13 = vector.extract_strided_slice %8 {offsets = [0, 32], sizes = [64, 32], strides = [1, 1]} : vector<64x96xf32> to vector<64x32xf32>
    %14 = tpu.transpose %13, [1, 0] : vector<64x32xf32> -> vector<32x64xf32>
    %15 = arith.truncf %14 : vector<32x64xf32> to vector<32x64xbf16>
    %16 = vector.extract_strided_slice %8 {offsets = [0, 64], sizes = [64, 32], strides = [1, 1]} : vector<64x96xf32> to vector<64x32xf32>
    %17 = arith.truncf %16 : vector<64x32xf32> to vector<64x32xbf16>
    %18 = vector.extract_strided_slice %12 {offsets = [0, 0], sizes = [64, 8], strides = [1, 1]} : vector<64x32xbf16> to vector<64x8xbf16>
    %19 = vector.extract_strided_slice %15 {offsets = [0, 0], sizes = [8, 64], strides = [1, 1]} : vector<32x64xbf16> to vector<8x64xbf16>
    %cst_7 = arith.constant dense<0.000000e+00> : vector<64x64xf32>
    %20 = tpu.matmul %18, %19, %cst_7 {dimension_numbers = #tpu.dot_dimension_numbers<[1], [0], [0], [1], [0, 0, 1, 1], [], []>} : vector<64x8xbf16>, vector<8x64xbf16>, vector<64x64xf32> -> vector<64x64xf32>
    %cst_8 = arith.constant dense<0xFF800000> : vector<64xf32>
    %21 = vector.multi_reduction <maximumf>, %20, %cst_8 [1] : vector<64x64xf32> to vector<64xf32>
    %22 = vector.shape_cast %21 : vector<64xf32> to vector<64x1xf32>
    %23 = vector.broadcast %22 : vector<64x1xf32> to vector<64x64xf32>
    %24 = arith.subf %20, %23 : vector<64x64xf32>
    %25 = math.exp %24 : vector<64x64xf32>
    %cst_9 = arith.constant dense<0.000000e+00> : vector<64xf32>
    %26 = vector.multi_reduction <add>, %25, %cst_9 [1] : vector<64x64xf32> to vector<64xf32>
    %27 = vector.shape_cast %26 : vector<64xf32> to vector<64x1xf32>
    %28 = tpu.reciprocal %27 {approx = true} : vector<64x1xf32> -> vector<64x1xf32>
    %29 = vector.broadcast %28 : vector<64x1xf32> to vector<64x64xf32>
    %30 = arith.mulf %25, %29 : vector<64x64xf32>
    %31 = arith.truncf %30 : vector<64x64xf32> to vector<64x64xbf16>
    %32 = vector.extract_strided_slice %17 {offsets = [0, 0], sizes = [64, 8], strides = [1, 1]} : vector<64x32xbf16> to vector<64x8xbf16>
    %cst_10 = arith.constant dense<0.000000e+00> : vector<64x8xf32>
    %33 = tpu.matmul %31, %32, %cst_10 {dimension_numbers = #tpu.dot_dimension_numbers<[1], [0], [0], [1], [0, 0, 1, 1], [], []>} : vector<64x64xbf16>, vector<64x8xbf16>, vector<64x8xf32> -> vector<64x8xf32>
    %34 = vector.extract_strided_slice %12 {offsets = [0, 8], sizes = [64, 8], strides = [1, 1]} : vector<64x32xbf16> to vector<64x8xbf16>
    %35 = vector.extract_strided_slice %15 {offsets = [8, 0], sizes = [8, 64], strides = [1, 1]} : vector<32x64xbf16> to vector<8x64xbf16>
    %cst_11 = arith.constant dense<0.000000e+00> : vector<64x64xf32>
    %36 = tpu.matmul %34, %35, %cst_11 {dimension_numbers = #tpu.dot_dimension_numbers<[1], [0], [0], [1], [0, 0, 1, 1], [], []>} : vector<64x8xbf16>, vector<8x64xbf16>, vector<64x64xf32> -> vector<64x64xf32>
    %cst_12 = arith.constant dense<0xFF800000> : vector<64xf32>
    %37 = vector.multi_reduction <maximumf>, %36, %cst_12 [1] : vector<64x64xf32> to vector<64xf32>
    %38 = vector.shape_cast %37 : vector<64xf32> to vector<64x1xf32>
    %39 = vector.broadcast %38 : vector<64x1xf32> to vector<64x64xf32>
    %40 = arith.subf %36, %39 : vector<64x64xf32>
    %41 = math.exp %40 : vector<64x64xf32>
    %cst_13 = arith.constant dense<0.000000e+00> : vector<64xf32>
    %42 = vector.multi_reduction <add>, %41, %cst_13 [1] : vector<64x64xf32> to vector<64xf32>
    %43 = vector.shape_cast %42 : vector<64xf32> to vector<64x1xf32>
    %44 = tpu.reciprocal %43 {approx = true} : vector<64x1xf32> -> vector<64x1xf32>
    %45 = vector.broadcast %44 : vector<64x1xf32> to vector<64x64xf32>
    %46 = arith.mulf %41, %45 : vector<64x64xf32>
    %47 = arith.truncf %46 : vector<64x64xf32> to vector<64x64xbf16>
    %48 = vector.extract_strided_slice %17 {offsets = [0, 8], sizes = [64, 8], strides = [1, 1]} : vector<64x32xbf16> to vector<64x8xbf16>
    %cst_14 = arith.constant dense<0.000000e+00> : vector<64x8xf32>
    %49 = tpu.matmul %47, %48, %cst_14 {dimension_numbers = #tpu.dot_dimension_numbers<[1], [0], [0], [1], [0, 0, 1, 1], [], []>} : vector<64x64xbf16>, vector<64x8xbf16>, vector<64x8xf32> -> vector<64x8xf32>
    %50 = vector.extract_strided_slice %12 {offsets = [0, 16], sizes = [64, 8], strides = [1, 1]} : vector<64x32xbf16> to vector<64x8xbf16>
    %51 = vector.extract_strided_slice %15 {offsets = [16, 0], sizes = [8, 64], strides = [1, 1]} : vector<32x64xbf16> to vector<8x64xbf16>
    %cst_15 = arith.constant dense<0.000000e+00> : vector<64x64xf32>
    %52 = tpu.matmul %50, %51, %cst_15 {dimension_numbers = #tpu.dot_dimension_numbers<[1], [0], [0], [1], [0, 0, 1, 1], [], []>} : vector<64x8xbf16>, vector<8x64xbf16>, vector<64x64xf32> -> vector<64x64xf32>
    %cst_16 = arith.constant dense<0xFF800000> : vector<64xf32>
    %53 = vector.multi_reduction <maximumf>, %52, %cst_16 [1] : vector<64x64xf32> to vector<64xf32>
    %54 = vector.shape_cast %53 : vector<64xf32> to vector<64x1xf32>
    %55 = vector.broadcast %54 : vector<64x1xf32> to vector<64x64xf32>
    %56 = arith.subf %52, %55 : vector<64x64xf32>
    %57 = math.exp %56 : vector<64x64xf32>
    %cst_17 = arith.constant dense<0.000000e+00> : vector<64xf32>
    %58 = vector.multi_reduction <add>, %57, %cst_17 [1] : vector<64x64xf32> to vector<64xf32>
    %59 = vector.shape_cast %58 : vector<64xf32> to vector<64x1xf32>
    %60 = tpu.reciprocal %59 {approx = true} : vector<64x1xf32> -> vector<64x1xf32>
    %61 = vector.broadcast %60 : vector<64x1xf32> to vector<64x64xf32>
    %62 = arith.mulf %57, %61 : vector<64x64xf32>
    %63 = arith.truncf %62 : vector<64x64xf32> to vector<64x64xbf16>
    %64 = vector.extract_strided_slice %17 {offsets = [0, 16], sizes = [64, 8], strides = [1, 1]} : vector<64x32xbf16> to vector<64x8xbf16>
    %cst_18 = arith.constant dense<0.000000e+00> : vector<64x8xf32>
    %65 = tpu.matmul %63, %64, %cst_18 {dimension_numbers = #tpu.dot_dimension_numbers<[1], [0], [0], [1], [0, 0, 1, 1], [], []>} : vector<64x64xbf16>, vector<64x8xbf16>, vector<64x8xf32> -> vector<64x8xf32>
    %66 = vector.extract_strided_slice %12 {offsets = [0, 24], sizes = [64, 8], strides = [1, 1]} : vector<64x32xbf16> to vector<64x8xbf16>
    %67 = vector.extract_strided_slice %15 {offsets = [24, 0], sizes = [8, 64], strides = [1, 1]} : vector<32x64xbf16> to vector<8x64xbf16>
    %cst_19 = arith.constant dense<0.000000e+00> : vector<64x64xf32>
    %68 = tpu.matmul %66, %67, %cst_19 {dimension_numbers = #tpu.dot_dimension_numbers<[1], [0], [0], [1], [0, 0, 1, 1], [], []>} : vector<64x8xbf16>, vector<8x64xbf16>, vector<64x64xf32> -> vector<64x64xf32>
    %cst_20 = arith.constant dense<0xFF800000> : vector<64xf32>
    %69 = vector.multi_reduction <maximumf>, %68, %cst_20 [1] : vector<64x64xf32> to vector<64xf32>
    %70 = vector.shape_cast %69 : vector<64xf32> to vector<64x1xf32>
    %71 = vector.broadcast %70 : vector<64x1xf32> to vector<64x64xf32>
    %72 = arith.subf %68, %71 : vector<64x64xf32>
    %73 = math.exp %72 : vector<64x64xf32>
    %cst_21 = arith.constant dense<0.000000e+00> : vector<64xf32>
    %74 = vector.multi_reduction <add>, %73, %cst_21 [1] : vector<64x64xf32> to vector<64xf32>
    %75 = vector.shape_cast %74 : vector<64xf32> to vector<64x1xf32>
    %76 = tpu.reciprocal %75 {approx = true} : vector<64x1xf32> -> vector<64x1xf32>
    %77 = vector.broadcast %76 : vector<64x1xf32> to vector<64x64xf32>
    %78 = arith.mulf %73, %77 : vector<64x64xf32>
    %79 = arith.truncf %78 : vector<64x64xf32> to vector<64x64xbf16>
    %80 = vector.extract_strided_slice %17 {offsets = [0, 24], sizes = [64, 8], strides = [1, 1]} : vector<64x32xbf16> to vector<64x8xbf16>
    %cst_22 = arith.constant dense<0.000000e+00> : vector<64x8xf32>
    %81 = tpu.matmul %79, %80, %cst_22 {dimension_numbers = #tpu.dot_dimension_numbers<[1], [0], [0], [1], [0, 0, 1, 1], [], []>} : vector<64x64xbf16>, vector<64x8xbf16>, vector<64x8xf32> -> vector<64x8xf32>
    %82 = tpu.concatenate %33, %49, %65, %81 in 1 : vector<64x8xf32>, vector<64x8xf32>, vector<64x8xf32>, vector<64x8xf32> -> vector<64x32xf32>
    %83 = arith.truncf %82 : vector<64x32xf32> to vector<64x32xbf16>
    %c0_23 = arith.constant 0 : index
    %c0_24 = arith.constant 0 : index
    %84 = vector.load %arg4[%c0_23, %c0_24] : memref<32x32xbf16, #tpu.memory_space<vmem>>, vector<32x32xbf16>
    %cst_25 = arith.constant dense<0.000000e+00> : vector<64x32xf32>
    %85 = tpu.matmul %83, %84, %cst_25 {dimension_numbers = #tpu.dot_dimension_numbers<[1], [0], [0], [1], [0, 0, 1, 1], [], []>} : vector<64x32xbf16>, vector<32x32xbf16>, vector<64x32xf32> -> vector<64x32xf32>
    %c0_26 = arith.constant 0 : index
    %c0_27 = arith.constant 0 : index
    %86 = vector.load %arg5[%c0_26, %c0_27] : memref<1x32xf32, #tpu.memory_space<vmem>>, vector<1x32xf32>
    %87 = vector.broadcast %86 : vector<1x32xf32> to vector<64x32xf32>
    %88 = arith.addf %85, %87 : vector<64x32xf32>
    %89 = arith.addf %2, %88 : vector<64x32xf32>
    %c0_28 = arith.constant 0 : index
    %c0_29 = arith.constant 0 : index
    %90 = vector.load %arg6[%c0_28, %c0_29] : memref<1x32xf32, #tpu.memory_space<vmem>>, vector<1x32xf32>
    %c0_30 = arith.constant 0 : index
    %c0_31 = arith.constant 0 : index
    %91 = vector.load %arg7[%c0_30, %c0_31] : memref<1x32xf32, #tpu.memory_space<vmem>>, vector<1x32xf32>
    %cst_32 = arith.constant dense<0.000000e+00> : vector<64xf32>
    %92 = vector.multi_reduction <add>, %89, %cst_32 [1] : vector<64x32xf32> to vector<64xf32>
    %93 = vector.shape_cast %92 : vector<64xf32> to vector<64x1xf32>
    %cst_33 = arith.constant 3.200000e+01 : f32
    %94 = vector.broadcast %cst_33 : f32 to vector<64x1xf32>
    %95 = arith.divf %93, %94 : vector<64x1xf32>
    %96 = vector.broadcast %95 : vector<64x1xf32> to vector<64x32xf32>
    %97 = arith.subf %89, %96 : vector<64x32xf32>
    %98 = arith.mulf %97, %97 : vector<64x32xf32>
    %cst_34 = arith.constant dense<0.000000e+00> : vector<64xf32>
    %99 = vector.multi_reduction <add>, %98, %cst_34 [1] : vector<64x32xf32> to vector<64xf32>
    %100 = vector.shape_cast %99 : vector<64xf32> to vector<64x1xf32>
    %cst_35 = arith.constant 3.200000e+01 : f32
    %101 = vector.broadcast %cst_35 : f32 to vector<64x1xf32>
    %102 = arith.divf %100, %101 : vector<64x1xf32>
    %103 = vector.broadcast %95 : vector<64x1xf32> to vector<64x32xf32>
    %104 = arith.subf %89, %103 : vector<64x32xf32>
    %cst_36 = arith.constant 9.99999974E-6 : f32
    %105 = vector.broadcast %cst_36 : f32 to vector<64x1xf32>
    %106 = arith.addf %102, %105 : vector<64x1xf32>
    %107 = math.rsqrt %106 : vector<64x1xf32>
    %108 = vector.broadcast %107 : vector<64x1xf32> to vector<64x32xf32>
    %109 = arith.mulf %104, %108 : vector<64x32xf32>
    %110 = vector.broadcast %90 : vector<1x32xf32> to vector<64x32xf32>
    %111 = arith.mulf %109, %110 : vector<64x32xf32>
    %112 = vector.broadcast %91 : vector<1x32xf32> to vector<64x32xf32>
    %113 = arith.addf %111, %112 : vector<64x32xf32>
    %114 = arith.truncf %113 : vector<64x32xf32> to vector<64x32xbf16>
    %c0_37 = arith.constant 0 : index
    %c0_38 = arith.constant 0 : index
    %115 = vector.load %arg8[%c0_37, %c0_38] : memref<32x64xbf16, #tpu.memory_space<vmem>>, vector<32x64xbf16>
    %cst_39 = arith.constant dense<0.000000e+00> : vector<64x64xf32>
    %116 = tpu.matmul %114, %115, %cst_39 {dimension_numbers = #tpu.dot_dimension_numbers<[1], [0], [0], [1], [0, 0, 1, 1], [], []>} : vector<64x32xbf16>, vector<32x64xbf16>, vector<64x64xf32> -> vector<64x64xf32>
    %c0_40 = arith.constant 0 : index
    %c0_41 = arith.constant 0 : index
    %117 = vector.load %arg9[%c0_40, %c0_41] : memref<1x64xf32, #tpu.memory_space<vmem>>, vector<1x64xf32>
    %118 = vector.broadcast %117 : vector<1x64xf32> to vector<64x64xf32>
    %119 = arith.addf %116, %118 : vector<64x64xf32>
    %cst_42 = arith.constant 0.000000e+00 : f32
    %120 = vector.broadcast %cst_42 : f32 to vector<64x64xf32>
    %121 = arith.maximumf %119, %120 : vector<64x64xf32>
    %122 = arith.truncf %121 : vector<64x64xf32> to vector<64x64xbf16>
    %c0_43 = arith.constant 0 : index
    %c0_44 = arith.constant 0 : index
    %123 = vector.load %arg10[%c0_43, %c0_44] : memref<64x32xbf16, #tpu.memory_space<vmem>>, vector<64x32xbf16>
    %cst_45 = arith.constant dense<0.000000e+00> : vector<64x32xf32>
    %124 = tpu.matmul %122, %123, %cst_45 {dimension_numbers = #tpu.dot_dimension_numbers<[1], [0], [0], [1], [0, 0, 1, 1], [], []>} : vector<64x64xbf16>, vector<64x32xbf16>, vector<64x32xf32> -> vector<64x32xf32>
    %c0_46 = arith.constant 0 : index
    %c0_47 = arith.constant 0 : index
    %125 = vector.load %arg11[%c0_46, %c0_47] : memref<1x32xf32, #tpu.memory_space<vmem>>, vector<1x32xf32>
    %126 = vector.broadcast %125 : vector<1x32xf32> to vector<64x32xf32>
    %127 = arith.addf %124, %126 : vector<64x32xf32>
    %128 = arith.addf %113, %127 : vector<64x32xf32>
    %c0_48 = arith.constant 0 : index
    %c0_49 = arith.constant 0 : index
    %129 = vector.load %arg12[%c0_48, %c0_49] : memref<1x32xf32, #tpu.memory_space<vmem>>, vector<1x32xf32>
    %c0_50 = arith.constant 0 : index
    %c0_51 = arith.constant 0 : index
    %130 = vector.load %arg13[%c0_50, %c0_51] : memref<1x32xf32, #tpu.memory_space<vmem>>, vector<1x32xf32>
    %cst_52 = arith.constant dense<0.000000e+00> : vector<64xf32>
    %131 = vector.multi_reduction <add>, %128, %cst_52 [1] : vector<64x32xf32> to vector<64xf32>
    %132 = vector.shape_cast %131 : vector<64xf32> to vector<64x1xf32>
    %cst_53 = arith.constant 3.200000e+01 : f32
    %133 = vector.broadcast %cst_53 : f32 to vector<64x1xf32>
    %134 = arith.divf %132, %133 : vector<64x1xf32>
    %135 = vector.broadcast %134 : vector<64x1xf32> to vector<64x32xf32>
    %136 = arith.subf %128, %135 : vector<64x32xf32>
    %137 = arith.mulf %136, %136 : vector<64x32xf32>
    %cst_54 = arith.constant dense<0.000000e+00> : vector<64xf32>
    %138 = vector.multi_reduction <add>, %137, %cst_54 [1] : vector<64x32xf32> to vector<64xf32>
    %139 = vector.shape_cast %138 : vector<64xf32> to vector<64x1xf32>
    %cst_55 = arith.constant 3.200000e+01 : f32
    %140 = vector.broadcast %cst_55 : f32 to vector<64x1xf32>
    %141 = arith.divf %139, %140 : vector<64x1xf32>
    %142 = vector.broadcast %134 : vector<64x1xf32> to vector<64x32xf32>
    %143 = arith.subf %128, %142 : vector<64x32xf32>
    %cst_56 = arith.constant 9.99999974E-6 : f32
    %144 = vector.broadcast %cst_56 : f32 to vector<64x1xf32>
    %145 = arith.addf %141, %144 : vector<64x1xf32>
    %146 = math.rsqrt %145 : vector<64x1xf32>
    %147 = vector.broadcast %146 : vector<64x1xf32> to vector<64x32xf32>
    %148 = arith.mulf %143, %147 : vector<64x32xf32>
    %149 = vector.broadcast %129 : vector<1x32xf32> to vector<64x32xf32>
    %150 = arith.mulf %148, %149 : vector<64x32xf32>
    %151 = vector.broadcast %130 : vector<1x32xf32> to vector<64x32xf32>
    %152 = arith.addf %150, %151 : vector<64x32xf32>
    %153 = tpu.transpose %152, [1, 0] : vector<64x32xf32> -> vector<32x64xf32>
    %c0_57 = arith.constant 0 : index
    %c0_58 = arith.constant 0 : index
    %c0_59 = arith.constant 0 : index
    %154 = vector.load %arg14[%c0_57, %c0_58, %c0_59] : memref<1x32x64xf32, #tpu.memory_space<vmem>>, vector<1x32x64xf32>
    %155 = vector.shape_cast %154 : vector<1x32x64xf32> to vector<32x64xf32>
    %156 = vector.shape_cast %153 : vector<32x64xf32> to vector<1x32x64xf32>
    tpu.vector_store %arg14[%c0_57, %c0_58, %c0_59], %156 {strides = array<i32>} : memref<1x32x64xf32, #tpu.memory_space<vmem>>, vector<1x32x64xf32>,
    return
  }
  func.func @transform_0(%arg0: i32) -> (i32, i32, i32) {
    %c0_i32 = arith.constant 0 : i32
    %c0_i32_0 = arith.constant 0 : i32
    %c0_i32_1 = arith.constant 0 : i32
    return %arg0, %c0_i32, %c0_i32_0 : i32, i32, i32
  }
  func.func @transform_1(%arg0: i32) -> (i32, i32) {
    %c0_i32 = arith.constant 0 : i32
    %c0_i32_0 = arith.constant 0 : i32
    %c0_i32_1 = arith.constant 0 : i32
    return %c0_i32, %c0_i32_0 : i32, i32
  }
  func.func @transform_2(%arg0: i32) -> (i32, i32) {
    %c0_i32 = arith.constant 0 : i32
    %c0_i32_0 = arith.constant 0 : i32
    %c0_i32_1 = arith.constant 0 : i32
    return %c0_i32, %c0_i32_0 : i32, i32
  }
  func.func @transform_3(%arg0: i32) -> (i32, i32) {
    %c0_i32 = arith.constant 0 : i32
    %c0_i32_0 = arith.constant 0 : i32
    %c0_i32_1 = arith.constant 0 : i32
    return %c0_i32, %c0_i32_0 : i32, i32
  }
  func.func @transform_4(%arg0: i32) -> (i32, i32) {
    %c0_i32 = arith.constant 0 : i32
    %c0_i32_0 = arith.constant 0 : i32
    %c0_i32_1 = arith.constant 0 : i32
    return %c0_i32, %c0_i32_0 : i32, i32
  }
  func.func @transform_5(%arg0: i32) -> (i32, i32) {
    %c0_i32 = arith.constant 0 : i32
    %c0_i32_0 = arith.constant 0 : i32
    %c0_i32_1 = arith.constant 0 : i32
    return %c0_i32, %c0_i32_0 : i32, i32
  }
  func.func @transform_6(%arg0: i32) -> (i32, i32) {
    %c0_i32 = arith.constant 0 : i32
    %c0_i32_0 = arith.constant 0 : i32
    %c0_i32_1 = arith.constant 0 : i32
    return %c0_i32, %c0_i32_0 : i32, i32
  }
  func.func @transform_7(%arg0: i32) -> (i32, i32) {
    %c0_i32 = arith.constant 0 : i32
    %c0_i32_0 = arith.constant 0 : i32
    %c0_i32_1 = arith.constant 0 : i32
    return %c0_i32, %c0_i32_0 : i32, i32
  }
  func.func @transform_8(%arg0: i32) -> (i32, i32) {
    %c0_i32 = arith.constant 0 : i32
    %c0_i32_0 = arith.constant 0 : i32
    %c0_i32_1 = arith.constant 0 : i32
    return %c0_i32, %c0_i32_0 : i32, i32
  }
  func.func @transform_9(%arg0: i32) -> (i32, i32) {
    %c0_i32 = arith.constant 0 : i32
    %c0_i32_0 = arith.constant 0 : i32
    %c0_i32_1 = arith.constant 0 : i32
    return %c0_i32, %c0_i32_0 : i32, i32
  }
  func.func @transform_10(%arg0: i32) -> (i32, i32) {
    %c0_i32 = arith.constant 0 : i32
    %c0_i32_0 = arith.constant 0 : i32
    %c0_i32_1 = arith.constant 0 : i32
    return %c0_i32, %c0_i32_0 : i32, i32
  }
  func.func @transform_11(%arg0: i32) -> (i32, i32) {
    %c0_i32 = arith.constant 0 : i32
    %c0_i32_0 = arith.constant 0 : i32
    %c0_i32_1 = arith.constant 0 : i32
    return %c0_i32, %c0_i32_0 : i32, i32
  }
  func.func @transform_12(%arg0: i32) -> (i32, i32) {
    %c0_i32 = arith.constant 0 : i32
    %c0_i32_0 = arith.constant 0 : i32
    %c0_i32_1 = arith.constant 0 : i32
    return %c0_i32, %c0_i32_0 : i32, i32
  }
  func.func @transform_13(%arg0: i32) -> (i32, i32, i32) {
    %c0_i32 = arith.constant 0 : i32
    %c0_i32_0 = arith.constant 0 : i32
    %c0_i32_1 = arith.constant 0 : i32
    return %arg0, %c0_i32, %c0_i32_0 : i32, i32, i32
  }
}

</mosaic_0001>

<bundles_post_ra>
// kernel: tpu_custom_call.1
= control target key start
LH: loop header
LB: loop body
LE: loop exit
PB: predicated region body
PF: predicated region fallthrough
CT: control target
= control target key end

     0   :  { %18 = vsyncpa [#allocation3], 0  ;;  %s4358_s0 = inlined_call_operand.hbm [shape: f32[2,32,64], index: 0, kind: input, shape index: {}]   ;;  %s4359_s1 = inlined_call_operand.vmem [shape: bf16[32,96], index: 1, kind: input, shape index: {}]   ;;  %s4360_s2 = inlined_call_operand.vmem [shape: f32[1,96], index: 2, kind: input, shape index: {}]   ;;  %s4361_s3 = inlined_call_operand.vmem [shape: bf16[32,32], index: 3, kind: input, shape index: {}]   ;;  %s4362_s4 = inlined_call_operand.vmem [shape: f32[1,32], index: 4, kind: input, shape index: {}]   ;;  %s4363_s5 = inlined_call_operand.vmem [shape: f32[1,32], index: 5, kind: input, shape index: {}]   ;;  %s4364_s6 = inlined_call_operand.vmem [shape: f32[1,32], index: 6, kind: input, shape index: {}]   ;;  %s4365_s7 = inlined_call_operand.vmem [shape: bf16[32,64], index: 7, kind: input, shape index: {}]   ;;  %s4366_s8 = inlined_call_operand.vmem [shape: f32[1,64], index: 8, kind: input, shape index: {}]   ;;  %s4367_s9 = inlined_call_operand.vmem [shape: bf16[64,32], index: 9, kind: input, shape index: {}]   ;;  %s4368_s10 = inlined_call_operand.vmem [shape: f32[1,32], index: 10, kind: input, shape index: {}]   ;;  %s4369_s11 = inlined_call_operand.vmem [shape: f32[1,32], index: 11, kind: input, shape index: {}]   ;;  %s4370_s12 = inlined_call_operand.vmem [shape: f32[1,32], index: 12, kind: input, shape index: {}]   ;;  %s4371_s13 = inlined_call_operand.hbm [shape: f32[2,32,64], index: 13, kind: output, shape index: {}]  }
   0x1   :  { %20 = vsyncpa [#allocation3 + $0x1], 0 }
   0x2   :  { %21 = vsyncpa [#allocation4], 0 }
   0x3   :  { %23 = vsyncpa [#allocation4 + $0x1], 0  ;;  %s3427_s25 = smov 0   ;;  %s3429_s26 = smov 0  }
   0x4   :  { %s3431_s27 = smov 0   ;;  %s3433_s28 = smov 0  }
   0x5 LB: > { %4383 = sst [smem:[#allocation8_spill]] %s3327_s25  ;;  %s3448_s29 = sadd.s32 4294967295, %s3339_s28   ;;  %s3339_s28 = sphi %s3433_s28, %s4408_s28   ;;  %s3335_s27 = sphi %s3431_s27, %s4410_s27   ;;  %s3331_s26 = sphi %s3429_s26, %s4412_s26   ;;  %s3327_s25 = sphi %s3427_s25, %s4411_s25  }
   0x6   : > { %4384 = sst [smem:[#allocation9_spill]] %s3335_s27  ;;  %s2632_s30 = sadd.s32 4294967294, %s3339_s28  }
   0x7   : > { %s3452_s14 = sadd.s32 1, %s3339_s28   ;;  %s36_s15 = sadd.s32 1, %s3335_s27 }
   0x8   : > { %4385 = sst [smem:[#allocation10_spill]] %s3452_s14  ;;  %s33_s16 = ssub.s32 %s3339_s28, %s3452_s14 }
   0x9   : > { %p43_p0 = scmp.ne.s32.totalorder %s3335_s27, %s3331_s26  ;;  %p34_p1 = scmp.eq.s32.totalorder %s33_s16, 0 }
   0xa   : > { %p44_p2 = scmp.eq.s32.totalorder %s3339_s28, 0  ;;  %p49_p3 = scmp.ne.s32.totalorder %s3331_s26, %s3327_s25 }
   0xb   : > { %p50_p4 = scmp.eq.s32.totalorder %s3448_s29, 0  ;;  %p325_p7 = scmp.eq.s32.totalorder %s3448_s29, 1 }
   0xc   : > { %s3464_s17 = scalar_select %p34_p1, %s3335_s27, %s36_s15  }
   0xd   : > { %p3466_p5 = por %p44_p2, %p43_p0  ;;  %p3470_p6 = por %p50_p4, %p49_p3 }
   0xe   : > { %4386 = sst [smem:[#allocation11_spill]] %s3464_s17  ;;  %p331_p8 = scmp.eq.s32.totalorder %s2632_s30, 1 }
   0xf   : > { %p2964_p10 = scmp.lt.s32.totalorder %s3339_s28, 2  ;;  %p3477_p11 = por %p325_p7, %p43_p0 }
  0x10   : > { %p3481_p12 = por %p331_p8, %p49_p3  ;;  %s387_s22 = sand.u32 1, %s3335_s27  }
  0x11   : > { %s4389_s20 = scalar_select %p3477_p11, 1, 0 }
  0x12   : > { %s4390_s21 = scalar_select %p3481_p12, 1, 0 }
  0x13   : > { %s2712_s23 = sshll.u32 %s3339_s28, 9  ;;  %s2635_s24 = sshll.u32 %s387_s22, 5 }
  0x14   : > { %s3490_s17 = scalar_lea.hbm %s4358_s0, %s2712_s23  ;;  %s391_s30 = scalar_lea.vmem [#allocation2], %s2635_s24 }
  0x15   : > { %s398_s14 = sshll.u32 %s391_s30, 4  ;;  %p3494_p13 = pnand %p2964_p10, %p3466_p5  ;;  %s3498_s14 = int_to_ptr.vmem [resolvable:$true] %s398_s14 }
  0x16   : > { %s3500_s27 = scalar_lea.sflag [#allocation3], %s387_s22  ;;  %s3243_s15 = scalar_lea.hbm %s3490_s17, 512 }
  0x17   : > { %p3244_p0 = scmp.ne.s32.totalorder %s3490_s17, %s3243_s15  ;;  %p3245_p1 = pneg %p3494_p13 }
  0x18   : > { %s3248_s24 = scalar_lea.hbm %s4358_s0, 1024  ;;  %p3249_p4 = scmp.lt.u32.totalorder %s3490_s17, %s4358_s0 }
  0x19   : > { %p3246_p2 = pnand %p3245_p1, %p3244_p0  ;;  %p3250_p5 = scmp.lt.u32.totalorder %s3248_s24, %s3243_s15 }
  0x1a   : > { %p3252_p8 = scmp.lt.u32.totalorder %s3243_s15, %s3490_s17 }
  0x1b   : > { %p3247_p3 = pneg %p3246_p2  ;;  %p3251_p7 = por %p3250_p5, %p3249_p4 }
  0x1d   : > { %p3253_p10 = por %p3252_p8, %p3251_p7 }
  0x1f   : > { %p3254_p9 = pnand %p3253_p10, %p3247_p3 }
  0x21   : > { %3257 = shalt.err (!%p3254_p9)
}
  0x22   : > { %s3258_s22 = scalar_lea.vmem %s3498_s14, 512  ;;  %s3341_s23 = smov [#allocation2]  }
  0x23   : > { %p3259_p0 = scmp.ne.s32.totalorder %s3498_s14, %s3258_s22  ;;  %s3263_s18 = sshll.u32 %s3341_s23, 4  ;;  %s3264_s18 = int_to_ptr.vmem [resolvable:$false] %s3263_s18 }
  0x24   : > { %s3265_s16 = scalar_lea.vmem %s3264_s18, 1024  ;;  %p3266_p11 = scmp.lt.s32.totalorder %s3498_s14, %s3264_s18 }
  0x25   : > { %p3261_p2 = pnand %p3259_p0, %p3245_p1  ;;  %p3267_p4 = scmp.lt.s32.totalorder %s3265_s16, %s3258_s22 }
  0x27   : > { %p3262_p12 = pneg %p3261_p2  ;;  %p3268_p5 = por %p3267_p4, %p3266_p11 }
  0x29   : > { %p3269_p7 = pnand %p3268_p5, %p3262_p12 }
  0x2b   : > { %3272 = shalt.err (!%p3269_p7)
}
  0x2c   : > { %s3342_s15 = smov 128   ;;  %s3343_s24 = smov 8  }
  0x2d   : > { %2959 = dma.hbm_to_vmem [thread:$0]  (!%p3494_p13), %s3490_s17, 512, %s3498_s14, %s3500_s27, %s3342_s15, %s3342_s15, %s3343_s24  }
  0x2e   : > { %p2638_p9 = scmp.ge.s32.totalorder %s3339_s28, 1  ;;  %p406_p1 = scmp.lt.s32.totalorder %s3339_s28, 3 }
  0x30   : > { %p407_p3 = pnand %p2638_p9, %p406_p1 }
  0x32   : > { %410 = sbr.rel (%p407_p3) target bundleno = 3073 (0xc01), region = 72 }
  0x39   : > { %s3531_s30 = sand.u32 1, %s3331_s26  }
  0x3a   : > { %s2639_s22 = sshll.u32 %s3531_s30, 5  ;;  %s413_s23 = scalar_lea.sflag [#allocation3], %s3531_s30 }
  0x3b   : > { %s416_s18 = scalar_lea.vmem [#allocation2], %s2639_s22 }
  0x3c   : > { %3318 = dma.done.wait (%p3470_p6), %s413_s23, 512  }
  0x3d   : > { %3320 = vsyncadd (%p3470_p6), %s413_s23, 4294966784  ;;  %v460_v0 = vld [vmem:[%s416_s18] sm:$0xff]  ;;  %v461_v1 = vld [vmem:[%s416_s18 + $0x8] sm:$0xff]  ;;  %vm523_vm0 = vcmask 261120   ;;  %s3344_s15 = smov 96   ;;  %vm683_vm1 = vcmask 64512  }
  0x3e   : > { %464 = vxpose.xlu0.b32.start [1/4] (short) (narrow) %v460_v0, 64  ;;  %v3073_v2 = vld [vmem:[%s4359_s1] sm:$0xff]   ;;  %v462_v3 = vld [vmem:[%s416_s18 + $0x10] sm:$0xff]  ;;  %v3074_v4 = vld [vmem:[%s4359_s1 + $0x8] sm:$0xff]   ;;  %s3345_s24 = smov 120   ;;  %s3346_s23 = smov 112  }
  0x3f   : > { %2792 = vmatprep.subr.bf16.mxu0 %v3073_v2  ;;  %v463_v5 = vld [vmem:[%s416_s18 + $0x18] sm:$0xff]  ;;  %v2641_v18 = vld [vmem:[%s4360_s2] ss:$0 sm:$0xff]  ;;  %s3347_s18 = smov 104   ;;  %s3348_s25 = smov 64   ;;  %vm696_vm2 = vcmask 1043456  }
  0x40   : > { %2793 = vmatpush3.bf16.msra.mxu0 %v3073_v2  ;;  %s3349_s27 = smov 56   ;;  %s3350_s14 = smov 48   ;;  %vm765_vm3 = vcmask 523264   ;;  %vm1870_vm4 = vcmask 130048   ;;  %vm1879_vm5 = vcmask 195584  }
  0x41   : > { %2794 = vmatprep.subr.bf16.mxu0 %v3074_v4  ;;  %s3351_s17 = smov 40   ;;  %s3352_s19 = smov 8  }
  0x42   : > { %465 = vxpose.xlu0.b32.cont [2/4] (short) (narrow) %v461_v1, 64  ;;  %p4404_p11 = scmp.ne.s32.totalorder %s4389_s20, 0 }
  0x44   : > { %2795 = vmatpush3.bf16.msra.mxu0 %v3074_v4 }
  0x46   : > { %466 = vxpose.xlu0.b32.cont [3/4] (short) (narrow) %v462_v3, 64 }
  0x4a   : > { %467 = vxpose.xlu0.b32.end [4/4] (short) (narrow) %v463_v5, 64 }
  0xbe   : > { %v3547_v6 = vpop.trf.xlu0 }
  0xc2   : > { %v3549_v7 = vpop.trf.xlu0 }
  0xc3   : > { %4392 = vst [vmem:[#allocation12_spill] sm:$0xff] %v3549_v7  ;;  %v496_v8 = vpack.c.bf16 %v3549_v7, %v3547_v6 }
  0xc5   : > { %2796 = vmatprep.mubr.msk.bf16.mxu0 %vm523_vm0, %v496_v8 }
  0xc6   : > { %v3554_v9 = vpop.trf.xlu0 }
  0xca   : > { %v3556_v10 = vpop.trf.xlu0 }
  0xcb   : > { %4393 = vst [vmem:[#allocation13_spill] sm:$0xff] %v3556_v10  ;;  %v497_v11 = vpack.c.bf16 %v3556_v10, %v3554_v9 }
  0xcd   : > { %2797 = vmatmul.mubr.msk.bf16.vlgmr.msra.gmra.mrb[0].mxu0 %vm523_vm0, %v497_v11 }
  0xce   : > { %v3561_v12 = vpop.trf.xlu0 }
  0xcf   : > { %4394 = vst [vmem:[#allocation14_spill] sm:$0xff] %v3561_v12 }
  0xd2   : > { %v3563_v13 = vpop.trf.xlu0 }
  0xd3   : > { %4395 = vst [vmem:[#allocation15_spill] sm:$0xff] %v3563_v13  ;;  %v498_v14 = vpack.c.bf16 %v3563_v13, %v3561_v12 }
  0xd5   : > { %2800 = vmatprep.mubr.msk.bf16.mxu0 %vm523_vm0, %v498_v14 }
  0xd6   : > { %v3568_v15 = vpop.trf.xlu0 }
  0xd7   : > { %4396 = vst [vmem:[#allocation16_spill] sm:$0xff] %v3568_v15 }
  0xda   : > { %v3570_v16 = vpop.trf.xlu0 }
  0xdb   : > { %4397 = vst [vmem:[#allocation17_spill] sm:$0xff] %v3570_v16  ;;  %v499_v17 = vpack.c.bf16 %v3570_v16, %v3568_v15 }
  0xdd   : > { %2801 = vmatmul.mubr.msk.bf16.gmra.mrb[4].mxu0 %vm523_vm0, %v499_v17 }
 0x1a0   : > { %v2798_v19 = vpop.f32.mrb[0].mxu0 }
 0x1a1   : > { %v579_v20 = vadd.f32 %v2798_v19, %v2641_v18  ;;  %v570_v21 = vpop.f32.mrb[1].mxu0 }
 0x1a2   : > { %v571_v22 = vadd.f32 %v2641_v18, %v570_v21  ;;  %v2799_v23 = vpop.f32.mrb[2].mxu0 }
 0x1a3   : > { %v582_v24 = vadd.f32 %v2799_v23, %v2641_v18  ;;  %625 = vrot.lane.b32.xlu1 %v579_v20, %s3344_s15  ;;  %v573_v25 = vpop.f32.mrb[3].mxu0  ;;  %v603_v27 = vmul.f32 0.35355338, %v579_v20 }
 0x1a4   : > { %v574_v26 = vadd.f32 %v2641_v18, %v573_v25  ;;  %v601_v30 = vmul.f32 0.35355338, %v571_v22 }
 0x1a5   : > { %v604_v28 = vmul.f32 0.35355338, %v582_v24  ;;  %v3579_v29 = vpack.c.bf16 %v582_v24, %v579_v20 }
 0x1a6   : > { %v602_v31 = vmul.f32 0.35355338, %v574_v26  ;;  %v3581_v32 = vpack.c.bf16 %v574_v26, %v571_v22 }
 0x1a7   : > { %v3583_v33 = vpack.c.bf16 %v604_v28, %v603_v27  ;;  %621 = vrot.lane.b32.xlu1 %v571_v22, %s3344_s15 }
 0x1a8   : > { %v609_v34 = vpack.c.bf16 %v602_v31, %v601_v30 }
 0x1aa   : > { %2806 = vmatprep.mubr.msk.bf16.mxu1 %vm683_vm1, %v609_v34 }
 0x1ab   : > { %627 = vrot.lane.b32.xlu1 %v582_v24, %s3344_s15 }
 0x1af   : > { %623 = vrot.lane.b32.xlu1 %v574_v26, %s3344_s15 }
 0x1b0   : > { %v2802_v35 = vpop.f32.mrb[4].mxu0 }
 0x1b1   : > { %v595_v36 = vadd.f32 %v2802_v35, %v2641_v18  ;;  %v586_v37 = vpop.f32.mrb[5].mxu0 }
 0x1b2   : > { %v587_v38 = vadd.f32 %v2641_v18, %v586_v37  ;;  %v2803_v39 = vpop.f32.mrb[6].mxu0 }
 0x1b3   : > { %v598_v40 = vadd.f32 %v2803_v39, %v2641_v18  ;;  %633 = vrot.lane.b32.xlu1 %v595_v36, %s3344_s15  ;;  %v589_v41 = vpop.f32.mrb[7].mxu0  ;;  %v607_v43 = vmul.f32 0.35355338, %v595_v36 }
 0x1b4   : > { %v590_v42 = vadd.f32 %v2641_v18, %v589_v41  ;;  %629 = vrot.lane.b32.xlu0 %v587_v38, %s3344_s15  ;;  %v605_v46 = vmul.f32 0.35355338, %v587_v38 }
 0x1b5   : > { %v608_v44 = vmul.f32 0.35355338, %v598_v40  ;;  %v3591_v45 = vpack.c.bf16 %v598_v40, %v595_v36 }
 0x1b6   : > { %v606_v47 = vmul.f32 0.35355338, %v590_v42  ;;  %v3593_v48 = vpack.c.bf16 %v590_v42, %v587_v38 }
 0x1b7   : > { %v3595_v49 = vpack.c.bf16 %v608_v44, %v607_v43  ;;  %635 = vrot.lane.b32.xlu1 %v598_v40, %s3344_s15 }
 0x1b8   : > { %v3598_v50 = vpack.c.bf16 %v606_v47, %v605_v46  ;;  %955 = vrot.lane.b32.xlu0 %v609_v34, %s3345_s24 }
 0x1bb   : > { %631 = vrot.lane.b32.xlu1 %v590_v42, %s3344_s15 }
 0x1bc   : > { %957 = vrot.lane.b32.xlu0 %v3583_v33, %s3345_s24 }
 0x1c0   : > { %959 = vrot.lane.b32.xlu0 %v3598_v50, %s3345_s24 }
 0x1c4   : > { %961 = vrot.lane.b32.xlu0 %v3595_v49, %s3345_s24  ;;  %s3353_s24 = smov 16  }
 0x1c8   : > { %1226 = vrot.lane.b32.xlu0 %v609_v34, %s3346_s23 }
 0x1cc   : > { %1228 = vrot.lane.b32.xlu0 %v3583_v33, %s3346_s23 }
 0x1d0   : > { %1230 = vrot.lane.b32.xlu0 %v3598_v50, %s3346_s23 }
 0x1d4   : > { %1495 = vrot.lane.b32.xlu0 %v609_v34, %s3347_s18 }
 0x1d8   : > { %1497 = vrot.lane.b32.xlu0 %v3583_v33, %s3347_s18 }
 0x1dc   : > { %1499 = vrot.lane.b32.xlu0 %v3598_v50, %s3347_s18 }
 0x1e0   : > { %1501 = vrot.lane.b32.xlu0 %v3595_v49, %s3347_s18 }
 0x1e4   : > { %864 = vrot.lane.b32.xlu0 %v3579_v29, %s3348_s25 }
 0x1e8   : > { %1137 = vrot.lane.b32.xlu0 %v3581_v32, %s3349_s27 }
 0x1ec   : > { %1139 = vrot.lane.b32.xlu0 %v3579_v29, %s3349_s27 }
 0x1f0   : > { %1143 = vrot.lane.b32.xlu0 %v3591_v45, %s3349_s27 }
 0x1f4   : > { %1408 = vrot.lane.b32.xlu0 %v3579_v29, %s3350_s14 }
 0x215   : > { %v626_v51 = vpop.permute.xlu1 %625 }
 0x219   : > { %v622_v52 = vpop.permute.xlu1 %621 }
 0x21a   : > { %645 = vxpose.xlu1.b32.start [1/8] (short) (narrow) %v622_v52, 32 }
 0x21d   : > { %v628_v53 = vpop.permute.xlu1 %627 }
 0x221   : > { %v624_v54 = vpop.permute.xlu1 %623 }
 0x222   : > { %646 = vxpose.xlu1.b32.cont [2/8] (short) (narrow) %v624_v54, 32 }
 0x225   : > { %v634_v55 = vpop.permute.xlu1 %633 }
 0x226   : > { %647 = vxpose.xlu1.b32.cont [3/8] (short) (narrow) %v626_v51, 32  ;;  %v630_v56 = vpop.permute.xlu0 %629 }
 0x229   : > { %v636_v58 = vpop.permute.xlu1 %635 }
 0x22a   : > { %648 = vxpose.xlu1.b32.cont [4/8] (short) (narrow) %v628_v53, 32  ;;  %v956_v57 = vpop.permute.xlu0 %955 }
 0x22b   : > { %2832 = vmatprep.mubr.msk.bf16.mxu0 %vm683_vm1, %v956_v57 }
 0x22d   : > { %v632_v59 = vpop.permute.xlu1 %631 }
 0x22e   : > { %649 = vxpose.xlu1.b32.cont [5/8] (short) (narrow) %v630_v56, 32  ;;  %v958_v60 = vpop.permute.xlu0 %957 }
 0x232   : > { %650 = vxpose.xlu1.b32.cont [6/8] (short) (narrow) %v632_v59, 32  ;;  %v960_v61 = vpop.permute.xlu0 %959 }
 0x236   : > { %651 = vxpose.xlu1.b32.cont [7/8] (short) (narrow) %v634_v55, 32  ;;  %v962_v63 = vpop.permute.xlu0 %961 }
 0x23a   : > { %652 = vxpose.xlu1.b32.end [8/8] (short) (narrow) %v636_v58, 32  ;;  %v1227_v4 = vpop.permute.xlu0 %1226 }
 0x23e   : > { %v1229_v17 = vpop.permute.xlu0 %1228 }
 0x242   : > { %v1231_v20 = vpop.permute.xlu0 %1230 }
 0x246   : > { %v1496_v21 = vpop.permute.xlu0 %1495 }
 0x24a   : > { %v1498_v23 = vpop.permute.xlu0 %1497 }
 0x24e   : > { %v1500_v24 = vpop.permute.xlu0 %1499 }
 0x252   : > { %v1502_v25 = vpop.permute.xlu0 %1501 }
 0x256   : > { %v865_v28 = vpop.permute.xlu0 %864 }
 0x258   : > { %1232 = vrot.lane.b32.xlu1 %v3595_v49, %s3346_s23 }
 0x25c   : > { %862 = vrot.lane.b32.xlu1 %v3581_v32, %s3348_s25 }
 0x260   : > { %866 = vrot.lane.b32.xlu1 %v3593_v48, %s3348_s25 }
 0x264   : > { %868 = vrot.lane.b32.xlu1 %v3591_v45, %s3348_s25  ;;  %s3354_s25 = smov 24  }
 0x268   : > { %1141 = vrot.lane.b32.xlu1 %v3593_v48, %s3349_s27 }
 0x26c   : > { %1406 = vrot.lane.b32.xlu1 %v3581_v32, %s3350_s14 }
 0x270   : > { %1410 = vrot.lane.b32.xlu1 %v3593_v48, %s3350_s14 }
 0x29e   : > { %v661_v62 = vpop.trf.xlu1 }
 0x2a2   : > { %v662_v0 = vpop.trf.xlu1 }
 0x2a3   : > { %v677_v1 = vpack.c.bf16 %v662_v0, %v661_v62 }
 0x2a5   : > { %v964_v2 = vrot.slane %v677_v1, 4  ;;  %2948 = vmatprep.subr.msk.bf16.mxu1 %vm696_vm2, %v677_v1  ;;  %v698_v3 = vsel %vm696_vm2, %v677_v1, 0 }
 0x2a6   : > { %2805 = vmatpush3.bf16.msra.mxu1 %v698_v3  ;;  %v663_v5 = vpop.trf.xlu1 }
 0x2a7   : > { %2949 = vmatprep.subr.msk.bf16.mxu0 %vm696_vm2, %v964_v2  ;;  %v978_v8 = vsel %vm696_vm2, %v964_v2, 0 }
 0x2a8   : > { %2831 = vmatpush3.bf16.msra.mxu0 %v978_v8 }
 0x2a9   : > { %2807 = vmatmul.mubr.msk.bf16.vlgmr.msra.gmra.mrb[0].mxu1 %vm683_vm1, %v3583_v33  ;;  %v3654_v33 = vpop.permute.xlu0 %1137 }
 0x2aa   : > { %2810 = vmatprep.mubr.msk.bf16.mxu1 %vm683_vm1, %v3598_v50  ;;  %v664_v11 = vpop.trf.xlu1 }
 0x2ab   : > { %2833 = vmatmul.mubr.msk.bf16.vlgmr.msra.gmra.mrb[8].mxu0 %vm683_vm1, %v958_v60  ;;  %v678_v14 = vpack.c.bf16 %v664_v11, %v663_v5 }
 0x2ac   : > { %2836 = vmatprep.mubr.msk.bf16.mxu0 %vm683_vm1, %v960_v61 }
 0x2ad   : > { %v1504_v18 = vrot.slane %v678_v14, 4  ;;  %2950 = vmatprep.subr.msk.bf16.mxu0 %vm696_vm2, %v678_v14  ;;  %v1247_v19 = vsel %vm696_vm2, %v678_v14, 0 }
 0x2ae   : > { %2857 = vmatpush3.bf16.msra.mxu0 %v1247_v19 }
 0x2af   : > { %2951 = vmatprep.subr.msk.bf16.mxu0 %vm696_vm2, %v1504_v18  ;;  %v1518_v22 = vsel %vm696_vm2, %v1504_v18, 0 }
 0x2b1   : > { %2811 = vmatmul.mubr.msk.bf16.gmra.mrb[4].mxu1 %vm683_vm1, %v3595_v49 }
 0x2b3   : > { %2837 = vmatmul.mubr.msk.bf16.gmra.mrb[12].mxu0 %vm683_vm1, %v962_v63 }
 0x2b4   : > { %2858 = vmatprep.mubr.msk.bf16.mxu0 %vm683_vm1, %v1227_v4 }
 0x2bb   : > { %2859 = vmatmul.mubr.msk.bf16.vlgmr.msra.gmra.mrb[16].mxu0 %vm683_vm1, %v1229_v17 }
 0x2bc   : > { %2862 = vmatprep.mubr.msk.bf16.mxu0 %vm683_vm1, %v1231_v20  ;;  %2883 = vmatpush3.bf16.msra.mxu0 %v1518_v22 }
 0x2ca   : > { %v1233_v26 = vpop.permute.xlu1 %1232 }
 0x2cb   : > { %2863 = vmatmul.mubr.msk.bf16.gmra.mrb[20].mxu0 %vm683_vm1, %v1233_v26 }
 0x2cc   : > { %2884 = vmatprep.mubr.msk.bf16.mxu0 %vm683_vm1, %v1496_v21 }
 0x2ce   : > { %v863_v27 = vpop.permute.xlu1 %862 }
 0x2cf   : > { %2814 = vmatprep.subr.bf16.mxu1 %v863_v27 }
 0x2d0   : > { %2815 = vmatpush3.bf16.msra.mxu1 %v863_v27 }
 0x2d1   : > { %2816 = vmatprep.subr.bf16.mxu1 %v865_v28 }
 0x2d2   : > { %v867_v30 = vpop.permute.xlu1 %866 }
 0x2d3   : > { %2885 = vmatmul.mubr.msk.bf16.vlgmr.msra.gmra.mrb[24].mxu0 %vm683_vm1, %v1498_v23 }
 0x2d4   : > { %2817 = vmatpush3.bf16.msra.mxu1 %v865_v28  ;;  %2888 = vmatprep.mubr.msk.bf16.mxu0 %vm683_vm1, %v1500_v24 }
 0x2d5   : > { %2818 = vmatprep.subr.bf16.mxu1 %v867_v30 }
 0x2d6   : > { %v869_v31 = vpop.permute.xlu1 %868 }
 0x2d8   : > { %2819 = vmatpush3.bf16.msra.mxu1 %v867_v30 }
 0x2d9   : > { %2820 = vmatprep.subr.bf16.mxu1 %v869_v31 }
 0x2db   : > { %2889 = vmatmul.mubr.msk.bf16.gmra.mrb[28].mxu0 %vm683_vm1, %v1502_v25 }
 0x2dc   : > { %2821 = vmatpush3.bf16.msra.mxu1 %v869_v31 }
 0x2dd   : > { %2840 = vmatprep.subr.bf16.mxu1 %v3654_v33 }
 0x37c   : > { %v3657_v34 = vpop.f32.mrb[0].mxu1 }
 0x37d   : > { %v3659_v35 = vpop.f32.mrb[1].mxu1  ;;  %v772_v36 = vsel %vm765_vm3, %v3657_v34, -inf }
 0x37e   : > { %v3663_v37 = vpop.f32.mrb[2].mxu1  ;;  %v3665_v38 = vpop.f32.mrb[8].mxu0  ;;  %773 = vmax.xlane.f32.xlu0 %v772_v36  ;;  %v766_v44 = vsel %vm765_vm3, %v3659_v35, -inf }
 0x37f   : > { %v3667_v39 = vpop.f32.mrb[3].mxu1  ;;  %v3669_v40 = vpop.f32.mrb[9].mxu0  ;;  %v1051_v41 = vsel %vm765_vm3, %v3665_v38, -inf  ;;  %v775_v50 = vsel %vm765_vm3, %v3663_v37, -inf }
 0x380   : > { %v3673_v42 = vpop.f32.mrb[10].mxu0  ;;  %1052 = vmax.xlane.f32.xlu1 %v1051_v41  ;;  %v769_v46 = vsel %vm765_vm3, %v3667_v39, -inf  ;;  %v1045_v55 = vsel %vm765_vm3, %v3669_v40, -inf }
 0x381   : > { %v3675_v43 = vpop.f32.mrb[11].mxu0  ;;  %v1054_v58 = vsel %vm765_vm3, %v3673_v42, -inf }
 0x382   : > { %767 = vmax.xlane.f32.xlu0 %v766_v44  ;;  %v1048_v60 = vsel %vm765_vm3, %v3675_v43, -inf }
 0x384   : > { %770 = vmax.xlane.f32.xlu1 %v769_v46  ;;  %v3681_v47 = vpop.f32.mrb[4].mxu1 }
 0x385   : > { %v3683_v49 = vpop.f32.mrb[5].mxu1  ;;  %v784_v59 = vsel %vm765_vm3, %v3681_v47, -inf }
 0x386   : > { %776 = vmax.xlane.f32.xlu0 %v775_v50  ;;  %v3687_v51 = vpop.f32.mrb[6].mxu1  ;;  %v3689_v52 = vpop.f32.mrb[12].mxu0  ;;  %v778_v2 = vsel %vm765_vm3, %v3683_v49, -inf }
 0x387   : > { %v3691_v53 = vpop.f32.mrb[7].mxu1  ;;  %v3693_v54 = vpop.f32.mrb[13].mxu0  ;;  %v1063_v63 = vsel %vm765_vm3, %v3689_v52, -inf  ;;  %v787_v4 = vsel %vm765_vm3, %v3687_v51, -inf }
 0x388   : > { %1046 = vmax.xlane.f32.xlu1 %v1045_v55  ;;  %v3697_v56 = vpop.f32.mrb[14].mxu0  ;;  %v1057_v3 = vsel %vm765_vm3, %v3693_v54, -inf  ;;  %v781_v8 = vsel %vm765_vm3, %v3691_v53, -inf }
 0x389   : > { %v3699_v57 = vpop.f32.mrb[15].mxu0  ;;  %v1066_v14 = vsel %vm765_vm3, %v3697_v56, -inf }
 0x38a   : > { %1055 = vmax.xlane.f32.xlu0 %v1054_v58  ;;  %v1060_v22 = vsel %vm765_vm3, %v3699_v57, -inf }
 0x38c   : > { %785 = vmax.xlane.f32.xlu1 %v784_v59 }
 0x38e   : > { %1049 = vmax.xlane.f32.xlu0 %v1048_v60  ;;  %v3707_v61 = vpop.f32.mrb[16].mxu0 }
 0x38f   : > { %v3709_v62 = vpop.f32.mrb[17].mxu0  ;;  %v1320_v5 = vsel %vm765_vm3, %v3707_v61, -inf }
 0x390   : > { %v3713_v0 = vpop.f32.mrb[18].mxu0  ;;  %1064 = vmax.xlane.f32.xlu1 %v1063_v63  ;;  %v1314_v11 = vsel %vm765_vm3, %v3709_v62, -inf }
 0x391   : > { %v3715_v1 = vpop.f32.mrb[19].mxu0  ;;  %v1323_v24 = vsel %vm765_vm3, %v3713_v0, -inf }
 0x392   : > { %779 = vmax.xlane.f32.xlu0 %v778_v2  ;;  %v1317_v31 = vsel %vm765_vm3, %v3715_v1, -inf }
 0x394   : > { %1058 = vmax.xlane.f32.xlu1 %v1057_v3 }
 0x396   : > { %788 = vmax.xlane.f32.xlu0 %v787_v4 }
 0x398   : > { %1321 = vmax.xlane.f32.xlu1 %v1320_v5  ;;  %v3791_v5 = vpop.permute.xlu0 %1139 }
 0x39a   : > { %782 = vmax.xlane.f32.xlu0 %v781_v8  ;;  %v3793_v8 = vpop.permute.xlu1 %1141 }
 0x39c   : > { %1315 = vmax.xlane.f32.xlu1 %v1314_v11  ;;  %v3795_v11 = vpop.permute.xlu0 %1143 }
 0x39e   : > { %v3731_v17 = vpop.f32.mrb[20].mxu0  ;;  %1067 = vmax.xlane.f32.xlu0 %v1066_v14  ;;  %v3797_v14 = vpop.permute.xlu1 %1406 }
 0x39f   : > { %v3733_v18 = vpop.f32.mrb[21].mxu0  ;;  %v1332_v19 = vsel %vm765_vm3, %v3731_v17, -inf }
 0x3a0   : > { %v3737_v20 = vpop.f32.mrb[22].mxu0  ;;  %1333 = vmax.xlane.f32.xlu1 %v1332_v19  ;;  %v1326_v23 = vsel %vm765_vm3, %v3733_v18, -inf  ;;  %v3799_v19 = vpop.permute.xlu0 %1408 }
 0x3a1   : > { %v3739_v21 = vpop.f32.mrb[23].mxu0  ;;  %v1335_v41 = vsel %vm765_vm3, %v3737_v20, -inf }
 0x3a2   : > { %1061 = vmax.xlane.f32.xlu0 %v1060_v22  ;;  %v1329_v59 = vsel %vm765_vm3, %v3739_v21, -inf  ;;  %v3801_v22 = vpop.permute.xlu1 %1410 }
 0x3a4   : > { %1327 = vmax.xlane.f32.xlu1 %v1326_v23 }
 0x3a6   : > { %v3747_v25 = vpop.f32.mrb[24].mxu0  ;;  %1324 = vmax.xlane.f32.xlu0 %v1323_v24 }
 0x3a7   : > { %v3749_v26 = vpop.f32.mrb[25].mxu0  ;;  %v1591_v27 = vsel %vm765_vm3, %v3747_v25, -inf }
 0x3a8   : > { %v3753_v28 = vpop.f32.mrb[26].mxu0  ;;  %1592 = vmax.xlane.f32.xlu1 %v1591_v27  ;;  %v1585_v36 = vsel %vm765_vm3, %v3749_v26, -inf }
 0x3a9   : > { %v3755_v30 = vpop.f32.mrb[27].mxu0  ;;  %v1594_v63 = vsel %vm765_vm3, %v3753_v28, -inf }
 0x3aa   : > { %1318 = vmax.xlane.f32.xlu0 %v1317_v31  ;;  %v1588_v2 = vsel %vm765_vm3, %v3755_v30, -inf }
 0x3ac   : > { %1586 = vmax.xlane.f32.xlu1 %v1585_v36 }
 0x3ae   : > { %v3763_v44 = vpop.f32.mrb[28].mxu0  ;;  %1336 = vmax.xlane.f32.xlu0 %v1335_v41 }
 0x3af   : > { %v3765_v46 = vpop.f32.mrb[29].mxu0  ;;  %v1603_v50 = vsel %vm765_vm3, %v3763_v44, -inf }
 0x3b0   : > { %v3769_v55 = vpop.f32.mrb[30].mxu0  ;;  %1604 = vmax.xlane.f32.xlu1 %v1603_v50  ;;  %v1597_v60 = vsel %vm765_vm3, %v3765_v46, -inf }
 0x3b1   : > { %v3771_v58 = vpop.f32.mrb[31].mxu0  ;;  %v1606_v3 = vsel %vm765_vm3, %v3769_v55, -inf }
 0x3b2   : > { %1330 = vmax.xlane.f32.xlu0 %v1329_v59  ;;  %v1600_v4 = vsel %vm765_vm3, %v3771_v58, -inf }
 0x3b4   : > { %1598 = vmax.xlane.f32.xlu1 %v1597_v60 }
 0x3b6   : > { %1595 = vmax.xlane.f32.xlu0 %v1594_v63 }
 0x3ba   : > { %1589 = vmax.xlane.f32.xlu0 %v1588_v2 }
 0x3be   : > { %1607 = vmax.xlane.f32.xlu0 %v1606_v3 }
 0x3c2   : > { %1601 = vmax.xlane.f32.xlu0 %v1600_v4 }
 0x3c5   : > { %1677 = vrot.lane.b32.xlu1 %v3581_v32, %s3351_s17 }
 0x3c9   : > { %1679 = vrot.lane.b32.xlu1 %v3579_v29, %s3351_s17 }
 0x3d8   : > { %1412 = vrot.lane.b32.xlu0 %v3591_v45, %s3350_s14  ;;  %s2713_s14 = sshll.u32 %s3448_s29, 9  ;;  %s3355_s29 = smov [#allocation5]  }
 0x3d9   : > { %s4312_s15 = scalar_lea.hbm %s4371_s13, %s2713_s14  ;;  %s3277_s23 = sshll.u32 %s3355_s29, 4  ;;  %s3278_s23 = int_to_ptr.vmem [resolvable:$false] %s3277_s23 }
 0x3da   : > { %s3279_s18 = scalar_lea.vmem %s3278_s23, 1024 }
 0x40b   : > { %v774_v23 = vpop.xlane.xlu0 %773 }
 0x40c   : > { %v792_v32 = vsub.f32 %v3657_v34, %v774_v23 }
 0x40d   : > { %v1053_v24 = vpop.xlane.xlu1 %1052 }
 0x40e   : > { %v802_v29 = vmul.f32 1.442695, %v792_v32  ;;  %v1071_v41 = vsub.f32 %v3665_v38, %v1053_v24 }
 0x40f   : > { %v768_v27 = vpop.xlane.xlu0 %767 }
 0x410   : > { %3083 = vpow2.f32 %v802_v29  ;;  %v790_v31 = vsub.f32 %v3659_v35, %v768_v27  ;;  %v1081_v3 = vmul.f32 1.442695, %v1071_v41 }
 0x411   : > { %v771_v36 = vpop.xlane.xlu1 %770 }
 0x412   : > { %v798_v50 = vmul.f32 1.442695, %v790_v31  ;;  %v791_v63 = vsub.f32 %v3667_v39, %v771_v36 }
 0x413   : > { %v777_v59 = vpop.xlane.xlu0 %776 }
 0x414   : > { %3085 = vpow2.f32 %v798_v50  ;;  %v793_v60 = vsub.f32 %v3663_v37, %v777_v59  ;;  %v800_v23 = vmul.f32 1.442695, %v791_v63 }
 0x415   : > { %v1047_v2 = vpop.xlane.xlu1 %1046 }
 0x416   : > { %v804_v4 = vmul.f32 1.442695, %v793_v60  ;;  %v1069_v35 = vsub.f32 %v3669_v40, %v1047_v2 }
 0x417   : > { %v1056_v34 = vpop.xlane.xlu0 %1055 }
 0x418   : > { %3087 = vpow2.f32 %v804_v4  ;;  %v1072_v39 = vsub.f32 %v3673_v42, %v1056_v34  ;;  %v1077_v41 = vmul.f32 1.442695, %v1069_v35 }
 0x419   : > { %v786_v32 = vpop.xlane.xlu1 %785  ;;  %3089 = vpow2.f32 %v1081_v3 }
 0x41a   : > { %v3808_v29 = vpop.eup %3083  ;;  %v796_v38 = vsub.f32 %v3681_v47, %v786_v32  ;;  %3091 = vpow2.f32 %v800_v23  ;;  %v1083_v60 = vmul.f32 1.442695, %v1072_v39 }
 0x41b   : > { %v1050_v24 = vpop.xlane.xlu0 %1049  ;;  %v820_v37 = vsel %vm765_vm3, %v3808_v29, 0.0 }
 0x41c   : > { %v810_v27 = vmul.f32 1.442695, %v796_v38  ;;  %821 = vadd.xlane.f32.xlu1 %v820_v37  ;;  %v1070_v63 = vsub.f32 %v3675_v43, %v1050_v24 }
 0x41d   : > { %v1065_v31 = vpop.xlane.xlu1 %1064 }
 0x41e   : > { %v3815_v36 = vpop.eup %3085  ;;  %3093 = vpow2.f32 %v810_v27  ;;  %v1075_v50 = vsub.f32 %v3689_v52, %v1065_v31 }
 0x41f   : > { %v780_v59 = vpop.xlane.xlu0 %779  ;;  %v814_v40 = vsel %vm765_vm3, %v3815_v36, 0.0  ;;  %3095 = vpow2.f32 %v1077_v41 }
 0x420   : > { %v794_v47 = vsub.f32 %v3683_v49, %v780_v59  ;;  %815 = vadd.xlane.f32.xlu1 %v814_v40  ;;  %v1089_v42 = vmul.f32 1.442695, %v1075_v50  ;;  %v1079_v49 = vmul.f32 1.442695, %v1070_v63 }
 0x421   : > { %v1059_v2 = vpop.xlane.xlu1 %1058 }
 0x422   : > { %v3822_v3 = vpop.eup %3087  ;;  %v806_v4 = vmul.f32 1.442695, %v794_v47  ;;  %v1073_v34 = vsub.f32 %v3693_v54, %v1059_v2 }
 0x423   : > { %v789_v23 = vpop.xlane.xlu0 %788  ;;  %v823_v52 = vsel %vm765_vm3, %v3822_v3, 0.0  ;;  %v3827_v32 = vpop.eup %3089 }
 0x424   : > { %3097 = vpow2.f32 %v806_v4  ;;  %824 = vadd.xlane.f32.xlu0 %v823_v52  ;;  %v1085_v43 = vmul.f32 1.442695, %v1073_v34  ;;  %v797_v38 = vsub.f32 %v3687_v51, %v789_v23  ;;  %v3830_v24 = vpop.eup %3091  ;;  %v1099_v54 = vsel %vm765_vm3, %v3827_v32, 0.0 }
 0x425   : > { %3099 = vpow2.f32 %v1083_v60  ;;  %v1322_v35 = vpop.xlane.xlu1 %1321  ;;  %v817_v40 = vsel %vm765_vm3, %v3830_v24, 0.0 }
 0x426   : > { %3101 = vpow2.f32 %v1089_v42  ;;  %v1340_v39 = vsub.f32 %v3707_v61, %v1322_v35  ;;  %v812_v50 = vmul.f32 1.442695, %v797_v38 }
 0x427   : > { %v783_v37 = vpop.xlane.xlu0 %782  ;;  %3103 = vpow2.f32 %v1079_v49 }
 0x428   : > { %v3834_v27 = vpop.eup %3093  ;;  %1100 = vadd.xlane.f32.xlu0 %v1099_v54  ;;  %3105 = vpow2.f32 %v1085_v43  ;;  %v795_v51 = vsub.f32 %v3691_v53, %v783_v37  ;;  %v1350_v63 = vmul.f32 1.442695, %v1340_v39 }
 0x429   : > { %v1316_v31 = vpop.xlane.xlu1 %1315  ;;  %v832_v41 = vsel %vm765_vm3, %v3834_v27, 0.0  ;;  %v3842_v47 = vpop.eup %3095  ;;  %3107 = vpow2.f32 %v812_v50 }
 0x42a   : > { %833 = vadd.xlane.f32.xlu1 %v832_v41  ;;  %v1338_v61 = vsub.f32 %v3709_v62, %v1316_v31  ;;  %v808_v4 = vmul.f32 1.442695, %v795_v51  ;;  %v1093_v49 = vsel %vm765_vm3, %v3842_v47, 0.0 }
 0x42b   : > { %v1068_v59 = vpop.xlane.xlu0 %1067 }
 0x42c   : > { %v1076_v60 = vsub.f32 %v3697_v56, %v1068_v59  ;;  %818 = vadd.xlane.f32.xlu0 %v817_v40  ;;  %v1346_v35 = vmul.f32 1.442695, %v1338_v61 }
 0x42d   : > { %v1334_v2 = vpop.xlane.xlu1 %1333 }
 0x42e   : > { %v3846_v42 = vpop.eup %3097  ;;  %v1091_v34 = vmul.f32 1.442695, %v1076_v60  ;;  %v1344_v50 = vsub.f32 %v3731_v17, %v1334_v2 }
 0x42f   : > { %v3848_v53 = vpop.eup %3099  ;;  %v1062_v23 = vpop.xlane.xlu0 %1061  ;;  %v826_v52 = vsel %vm765_vm3, %v3846_v42, 0.0 }
 0x430   : > { %v3854_v56 = vpop.eup %3101  ;;  %3109 = vpow2.f32 %v1091_v34  ;;  %v1074_v62 = vsub.f32 %v3699_v57, %v1062_v23  ;;  %827 = vadd.xlane.f32.xlu1 %v826_v52  ;;  %1094 = vadd.xlane.f32.xlu0 %v1093_v49  ;;  %v1102_v31 = vsel %vm765_vm3, %v3848_v53, 0.0  ;;  %v1358_v34 = vmul.f32 1.442695, %v1344_v50 }
 0x431   : > { %3111 = vpow2.f32 %v1350_v63  ;;  %v1328_v43 = vpop.xlane.xlu1 %1327  ;;  %v3857_v37 = vpop.eup %3103  ;;  %v1111_v39 = vsel %vm765_vm3, %v3854_v56, 0.0 }
 0x432   : > { %3113 = vpow2.f32 %v808_v4  ;;  %v1087_v38 = vmul.f32 1.442695, %v1074_v62  ;;  %v3863_v41 = vpop.eup %3105  ;;  %v1342_v59 = vsub.f32 %v3733_v18, %v1328_v43  ;;  %v1096_v61 = vsel %vm765_vm3, %v3857_v37, 0.0 }
 0x433   : > { %v1325_v54 = vpop.xlane.xlu0 %1324  ;;  %3115 = vpow2.f32 %v1346_v35  ;;  %v1105_v63 = vsel %vm765_vm3, %v3863_v41, 0.0  ;;  %v3872_v4 = vpop.eup %3107 }
 0x434   : > { %v1341_v57 = vsub.f32 %v3713_v0, %v1325_v54  ;;  %1112 = vadd.xlane.f32.xlu1 %v1111_v39  ;;  %1103 = vadd.xlane.f32.xlu0 %v1102_v31  ;;  %3117 = vpow2.f32 %v1087_v38  ;;  %v1354_v23 = vmul.f32 1.442695, %v1342_v59  ;;  %v835_v62 = vsel %vm765_vm3, %v3872_v4, 0.0 }
 0x435   : > { %v1593_v51 = vpop.xlane.xlu1 %1592 }
 0x436   : > { %v1352_v40 = vmul.f32 1.442695, %v1341_v57  ;;  %v1611_v38 = vsub.f32 %v3747_v25, %v1593_v51 }
 0x437   : > { %v1319_v60 = vpop.xlane.xlu0 %1318 }
 0x438   : > { %v1339_v0 = vsub.f32 %v3715_v1, %v1319_v60  ;;  %1106 = vadd.xlane.f32.xlu1 %v1105_v63  ;;  %1097 = vadd.xlane.f32.xlu0 %v1096_v61  ;;  %3119 = vpow2.f32 %v1352_v40  ;;  %v1621_v25 = vmul.f32 1.442695, %v1611_v38 }
 0x439   : > { %v1587_v17 = vpop.xlane.xlu1 %1586 }
 0x43a   : > { %v3875_v2 = vpop.eup %3109  ;;  %v1348_v18 = vmul.f32 1.442695, %v1339_v0  ;;  %v1609_v39 = vsub.f32 %v3749_v26, %v1587_v17 }
 0x43b   : > { %v3877_v52 = vpop.eup %3111  ;;  %v1337_v49 = vpop.xlane.xlu0 %1336  ;;  %v1114_v35 = vsel %vm765_vm3, %v3875_v2, 0.0 }
 0x43c   : > { %v3883_v43 = vpop.eup %3113  ;;  %3121 = vpow2.f32 %v1348_v18  ;;  %v1345_v1 = vsub.f32 %v3737_v20, %v1337_v49  ;;  %836 = vadd.xlane.f32.xlu0 %v835_v62  ;;  %1115 = vadd.xlane.f32.xlu1 %v1114_v35  ;;  %v1368_v40 = vsel %vm765_vm3, %v3877_v52, 0.0  ;;  %v1617_v51 = vmul.f32 1.442695, %v1609_v39 }
 0x43d   : > { %3123 = vpow2.f32 %v1358_v34  ;;  %v1605_v54 = vpop.xlane.xlu1 %1604  ;;  %v3888_v57 = vpop.eup %3115  ;;  %v829_v59 = vsel %vm765_vm3, %v3883_v43, 0.0 }
 0x43e   : > { %3125 = vpow2.f32 %v1354_v23  ;;  %v1360_v31 = vmul.f32 1.442695, %v1345_v1  ;;  %v3894_v20 = vpop.eup %3117  ;;  %v1362_v0 = vsel %vm765_vm3, %v3888_v57, 0.0 }
 0x43f   : > { %v1331_v50 = vpop.xlane.xlu0 %1330  ;;  %v1108_v34 = vsel %vm765_vm3, %v3894_v20, 0.0 }
 0x440   : > { %v1343_v60 = vsub.f32 %v3739_v21, %v1331_v50  ;;  %830 = vadd.xlane.f32.xlu0 %v829_v59  ;;  %1369 = vadd.xlane.f32.xlu1 %v1368_v40  ;;  %3127 = vpow2.f32 %v1360_v31  ;;  %v1615_v21 = vsub.f32 %v3763_v44, %v1605_v54 }
 0x441   : > { %v1599_v63 = vpop.xlane.xlu1 %1598 }
 0x442   : > { %v1356_v26 = vmul.f32 1.442695, %v1343_v60  ;;  %v3901_v17 = vpop.eup %3119  ;;  %v1613_v49 = vsub.f32 %v3765_v46, %v1599_v63  ;;  %v1629_v44 = vmul.f32 1.442695, %v1615_v21 }
 0x443   : > { %v1596_v61 = vpop.xlane.xlu0 %1595  ;;  %v1371_v38 = vsel %vm765_vm3, %v3901_v17, 0.0 }
 0x444   : > { %3129 = vpow2.f32 %v1356_v26  ;;  %v1612_v23 = vsub.f32 %v3753_v28, %v1596_v61  ;;  %1363 = vadd.xlane.f32.xlu1 %v1362_v0  ;;  %1109 = vadd.xlane.f32.xlu0 %v1108_v34  ;;  %v1625_v54 = vmul.f32 1.442695, %v1613_v49 }
 0x445   : > { %3131 = vpow2.f32 %v1621_v25 }
 0x446   : > { %v3905_v18 = vpop.eup %3121  ;;  %3133 = vpow2.f32 %v1617_v51  ;;  %v1623_v62 = vmul.f32 1.442695, %v1612_v23 }
 0x447   : > { %v3908_v35 = vpop.eup %3123  ;;  %v1590_v1 = vpop.xlane.xlu0 %1589  ;;  %v1365_v28 = vsel %vm765_vm3, %v3905_v18, 0.0 }
 0x448   : > { %v3914_v39 = vpop.eup %3125  ;;  %v1610_v31 = vsub.f32 %v3755_v30, %v1590_v1  ;;  %1372 = vadd.xlane.f32.xlu1 %v1371_v38  ;;  %1366 = vadd.xlane.f32.xlu0 %v1365_v28  ;;  %3135 = vpow2.f32 %v1623_v62  ;;  %v1380_v40 = vsel %vm765_vm3, %v3908_v35, 0.0 }
 0x449   : > { %v1374_v59 = vsel %vm765_vm3, %v3914_v39, 0.0 }
 0x44a   : > { %v1619_v46 = vmul.f32 1.442695, %v1610_v31  ;;  %v3921_v60 = vpop.eup %3127 }
 0x44b   : > { %v1608_v50 = vpop.xlane.xlu0 %1607  ;;  %v1383_v61 = vsel %vm765_vm3, %v3921_v60, 0.0 }
 0x44c   : > { %3137 = vpow2.f32 %v1619_v46  ;;  %v1616_v25 = vsub.f32 %v3769_v55, %v1608_v50  ;;  %1375 = vadd.xlane.f32.xlu1 %v1374_v59  ;;  %1381 = vadd.xlane.f32.xlu0 %v1380_v40 }
 0x44d   : > { %3139 = vpow2.f32 %v1629_v44 }
 0x44e   : > { %v3924_v30 = vpop.eup %3129  ;;  %3141 = vpow2.f32 %v1625_v54  ;;  %v1631_v51 = vmul.f32 1.442695, %v1616_v25  ;;  %v3967_v25 = vpop.permute.xlu1 %1677 }
 0x44f   : > { %v3926_v26 = vpop.eup %3131  ;;  %v1602_v63 = vpop.xlane.xlu0 %1601  ;;  %v1377_v0 = vsel %vm765_vm3, %v3924_v30, 0.0 }
 0x450   : > { %v3932_v34 = vpop.eup %3133  ;;  %v1614_v55 = vsub.f32 %v3771_v58, %v1602_v63  ;;  %1384 = vadd.xlane.f32.xlu1 %v1383_v61  ;;  %1378 = vadd.xlane.f32.xlu0 %v1377_v0  ;;  %3143 = vpow2.f32 %v1631_v51  ;;  %v1639_v49 = vsel %vm765_vm3, %v3926_v26, 0.0 }
 0x451   : > { %v1633_v21 = vsel %vm765_vm3, %v3932_v34, 0.0 }
 0x452   : > { %v1627_v23 = vmul.f32 1.442695, %v1614_v55  ;;  %v3939_v62 = vpop.eup %3135  ;;  %v3969_v51 = vpop.permute.xlu1 %1679 }
 0x453   : > { %v1642_v58 = vsel %vm765_vm3, %v3939_v62, 0.0  ;;  %v3971_v63 = vpop.permute.xlu0 %1412 }
 0x454   : > { %3145 = vpow2.f32 %v1627_v23  ;;  %1634 = vadd.xlane.f32.xlu1 %v1633_v21  ;;  %1640 = vadd.xlane.f32.xlu0 %v1639_v49 }
 0x456   : > { %v3941_v1 = vpop.eup %3137 }
 0x457   : > { %v3943_v38 = vpop.eup %3139  ;;  %v1636_v28 = vsel %vm765_vm3, %v3941_v1, 0.0 }
 0x458   : > { %v3949_v31 = vpop.eup %3141  ;;  %1643 = vadd.xlane.f32.xlu1 %v1642_v58  ;;  %1637 = vadd.xlane.f32.xlu0 %v1636_v28  ;;  %v1651_v54 = vsel %vm765_vm3, %v3943_v38, 0.0 }
 0x459   : > { %v1645_v44 = vsel %vm765_vm3, %v3949_v31, 0.0 }
 0x45a   : > { %v3955_v46 = vpop.eup %3143 }
 0x45b   : > { %v1654_v59 = vsel %vm765_vm3, %v3955_v46, 0.0 }
 0x45c   : > { %1646 = vadd.xlane.f32.xlu1 %v1645_v44  ;;  %1652 = vadd.xlane.f32.xlu0 %v1651_v54 }
 0x45e   : > { %v3957_v50 = vpop.eup %3145 }
 0x45f   : > { %v1648_v40 = vsel %vm765_vm3, %v3957_v50, 0.0 }
 0x460   : > { %1655 = vadd.xlane.f32.xlu1 %v1654_v59  ;;  %1649 = vadd.xlane.f32.xlu0 %v1648_v40 }
 0x471   : > { %1683 = vrot.lane.b32.xlu1 %v3591_v45, %s3351_s17 }
 0x476   : > { %1681 = vrot.lane.b32.xlu0 %v3593_v48, %s3351_s17 }
 0x4a9   : > { %v822_v61 = vpop.xlane.xlu1 %821 }
 0x4ad   : > { %v816_v55 = vpop.xlane.xlu1 %815 }
 0x4b1   : > { %v825_v0 = vpop.xlane.xlu0 %824 }
 0x4b2   : > { %3147 = vrcp.f32 %v825_v0 }
 0x4b3   : > { %3149 = vrcp.f32 %v816_v55 }
 0x4b4   : > { %3151 = vrcp.f32 %v822_v61 }
 0x4b5   : > { %v1101_v23 = vpop.xlane.xlu0 %1100 }
 0x4b7   : > { %v834_v21 = vpop.xlane.xlu1 %833 }
 0x4b9   : > { %v819_v49 = vpop.xlane.xlu0 %818 }
 0x4ba   : > { %3153 = vrcp.f32 %v819_v49 }
 0x4bb   : > { %3155 = vrcp.f32 %v834_v21 }
 0x4bc   : > { %v3148_v28 = vpop.eup %3147 }
 0x4bd   : > { %v828_v45 = vpop.xlane.xlu1 %827  ;;  %v1095_v58 = vpop.xlane.xlu0 %1094  ;;  %v849_v16 = vmul.f32 %v3148_v28, %v3822_v3 }
 0x4be   : > { %v3150_v54 = vpop.eup %3149  ;;  %3157 = vrcp.f32 %v828_v45 }
 0x4bf   : > { %v3152_v59 = vpop.eup %3151  ;;  %v846_v12 = vmul.f32 %v3150_v54, %v3815_v36 }
 0x4c0   : > { %v848_v61 = vmul.f32 %v3152_v59, %v3808_v29 }
 0x4c1   : > { %v1113_v48 = vpop.xlane.xlu1 %1112  ;;  %v1104_v44 = vpop.xlane.xlu0 %1103 }
 0x4c2   : > { %v855_v49 = vpack.c.bf16 %v849_v16, %v848_v61 }
 0x4c4   : > { %v3154_v40 = vpop.eup %3153 }
 0x4c5   : > { %v1107_v13 = vpop.xlane.xlu1 %1106  ;;  %v1098_v15 = vpop.xlane.xlu0 %1097  ;;  %v847_v0 = vmul.f32 %v3154_v40, %v3830_v24 }
 0x4c6   : > { %v3156_v29 = vpop.eup %3155 }
 0x4c7   : > { %v854_v55 = vpack.c.bf16 %v847_v0, %v846_v12 }
 0x4c9   : > { %v1116_v10 = vpop.xlane.xlu1 %1115  ;;  %2822 = vmatprep.mubr.msk.bf16.mxu1 %vm765_vm3, %v854_v55  ;;  %v837_v7 = vpop.xlane.xlu0 %836 }
 0x4ca   : > { %2823 = vmatmul.mubr.msk.bf16.vlgmr.msra.gmra.mrb[8].mxu1 %vm765_vm3, %v855_v49  ;;  %3159 = vrcp.f32 %v837_v7  ;;  %v3158_v7 = vpop.eup %3157 }
 0x4cb   : > { %2841 = vmatpush3.bf16.msra.mxu1 %v3654_v33  ;;  %3161 = vrcp.f32 %v1098_v15  ;;  %v850_v28 = vmul.f32 %v3158_v7, %v3846_v42 }
 0x4cc   : > { %2842 = vmatprep.subr.bf16.mxu1 %v3791_v5  ;;  %3163 = vrcp.f32 %v1095_v58 }
 0x4cd   : > { %v1370_v36 = vpop.xlane.xlu1 %1369  ;;  %v831_v3 = vpop.xlane.xlu0 %830 }
 0x4ce   : > { %3165 = vrcp.f32 %v831_v3 }
 0x4cf   : > { %2843 = vmatpush3.bf16.msra.mxu1 %v3791_v5  ;;  %3167 = vrcp.f32 %v1104_v44 }
 0x4d0   : > { %2844 = vmatprep.subr.bf16.mxu1 %v3793_v8 }
 0x4d1   : > { %v1364_v12 = vpop.xlane.xlu1 %1363  ;;  %v1110_v16 = vpop.xlane.xlu0 %1109 }
 0x4d2   : > { %3169 = vrcp.f32 %v1110_v16 }
 0x4d3   : > { %2845 = vmatpush3.bf16.msra.mxu1 %v3793_v8  ;;  %3171 = vrcp.f32 %v1101_v23  ;;  %v852_v23 = vmul.f32 %v3156_v29, %v3834_v27 }
 0x4d4   : > { %2846 = vmatprep.subr.bf16.mxu1 %v3795_v11  ;;  %v3160_v24 = vpop.eup %3159  ;;  %3173 = vrcp.f32 %v1107_v13 }
 0x4d5   : > { %v1373_v33 = vpop.xlane.xlu1 %1372  ;;  %v1367_v15 = vpop.xlane.xlu0 %1366  ;;  %v853_v8 = vmul.f32 %v3160_v24, %v3872_v4  ;;  %3175 = vrcp.f32 %v1116_v10 }
 0x4d6   : > { %v3162_v21 = vpop.eup %3161  ;;  %3177 = vrcp.f32 %v1367_v15 }
 0x4d7   : > { %2847 = vmatpush3.bf16.msra.mxu1 %v3795_v11  ;;  %v3164_v5 = vpop.eup %3163  ;;  %v1126_v54 = vmul.f32 %v3162_v21, %v3857_v37  ;;  %v857_v0 = vpack.c.bf16 %v853_v8, %v852_v23  ;;  %3179 = vrcp.f32 %v1113_v48 }
 0x4d8   : > { %2866 = vmatprep.subr.bf16.mxu1 %v3797_v14  ;;  %v3166_v45 = vpop.eup %3165  ;;  %v1125_v11 = vmul.f32 %v3164_v5, %v3842_v47  ;;  %3181 = vrcp.f32 %v1364_v12 }
 0x4d9   : > { %v1382_v58 = vpop.xlane.xlu0 %1381  ;;  %v851_v44 = vmul.f32 %v3166_v45, %v3883_v43  ;;  %v1376_v59 = vpop.xlane.xlu1 %1375  ;;  %3183 = vrcp.f32 %v1373_v33 }
 0x4da   : > { %v3168_v61 = vpop.eup %3167  ;;  %v1133_v4 = vpack.c.bf16 %v1126_v54, %v1125_v11 }
 0x4db   : > { %v856_v13 = vpack.c.bf16 %v851_v44, %v850_v28  ;;  %v1128_v10 = vmul.f32 %v3168_v61, %v3848_v53 }
 0x4dc   : > { %v3170_v42 = vpop.eup %3169 }
 0x4dd   : > { %v1379_v40 = vpop.xlane.xlu0 %1378  ;;  %2826 = vmatprep.mubr.msk.bf16.mxu1 %vm765_vm3, %v856_v13  ;;  %v3172_v37 = vpop.eup %3171  ;;  %v1130_v55 = vmul.f32 %v3170_v42, %v3894_v20 }
 0x4de   : > { %2827 = vmatmul.mubr.msk.bf16.gmra.mrb[12].mxu1 %vm765_vm3, %v857_v0  ;;  %v3174_v27 = vpop.eup %3173  ;;  %v1385_v43 = vpop.xlane.xlu1 %1384  ;;  %v1127_v49 = vmul.f32 %v3172_v37, %v3827_v32  ;;  %3185 = vrcp.f32 %v1379_v40 }
 0x4df   : > { %2848 = vmatprep.mubr.msk.bf16.mxu1 %vm765_vm3, %v1133_v4  ;;  %v1129_v48 = vmul.f32 %v3174_v27, %v3863_v41  ;;  %v3176_v12 = vpop.eup %3175  ;;  %3187 = vrcp.f32 %v1370_v36 }
 0x4e0   : > { %v1134_v3 = vpack.c.bf16 %v1128_v10, %v1127_v49  ;;  %v3178_v7 = vpop.eup %3177  ;;  %3189 = vrcp.f32 %v1376_v59  ;;  %v1132_v41 = vmul.f32 %v3176_v12, %v3875_v2 }
 0x4e1   : > { %v1641_v47 = vpop.xlane.xlu0 %1640  ;;  %v1135_v29 = vpack.c.bf16 %v1130_v55, %v1129_v48  ;;  %v3180_v53 = vpop.eup %3179  ;;  %v1395_v20 = vmul.f32 %v3178_v7, %v3905_v18  ;;  %3191 = vrcp.f32 %v1385_v43 }
 0x4e2   : > { %v1635_v15 = vpop.xlane.xlu1 %1634  ;;  %v3182_v32 = vpop.eup %3181  ;;  %v1131_v36 = vmul.f32 %v3180_v53, %v3854_v56 }
 0x4e3   : > { %v1394_v24 = vmul.f32 %v3182_v32, %v3888_v57  ;;  %v3184_v5 = vpop.eup %3183 }
 0x4e4   : > { %v1397_v56 = vmul.f32 %v3184_v5, %v3901_v17 }
 0x4e5   : > { %v1638_v16 = vpop.xlane.xlu0 %1637  ;;  %v1402_v45 = vpack.c.bf16 %v1395_v20, %v1394_v24 }
 0x4e6   : > { %2849 = vmatmul.mubr.msk.bf16.vlgmr.msra.gmra.mrb[16].mxu1 %vm765_vm3, %v1134_v3  ;;  %v1644_v21 = vpop.xlane.xlu1 %1643  ;;  %3193 = vrcp.f32 %v1638_v16 }
 0x4e7   : > { %2867 = vmatpush3.bf16.msra.mxu1 %v3797_v14  ;;  %2852 = vmatprep.mubr.msk.bf16.mxu1 %vm765_vm3, %v1135_v29  ;;  %v1136_v14 = vpack.c.bf16 %v1132_v41, %v1131_v36  ;;  %3195 = vrcp.f32 %v1382_v58 }
 0x4e8   : > { %2868 = vmatprep.subr.bf16.mxu1 %v3799_v19  ;;  %v3186_v8 = vpop.eup %3185  ;;  %3197 = vrcp.f32 %v1635_v15 }
 0x4e9   : > { %v1653_v33 = vpop.xlane.xlu0 %1652  ;;  %v3188_v2 = vpop.eup %3187  ;;  %v1399_v18 = vmul.f32 %v3186_v8, %v3924_v30  ;;  %3199 = vrcp.f32 %v1644_v21  ;;  %v3075_v21 = vld [vmem:[%s4361_s3] sm:$0xff]  }
 0x4ea   : > { %v1396_v58 = vmul.f32 %v3188_v2, %v3877_v52  ;;  %v1647_v28 = vpop.xlane.xlu1 %1646  ;;  %2908 = vmatprep.subr.bf16.mxu0 %v3075_v21 }
 0x4eb   : > { %2869 = vmatpush3.bf16.msra.mxu1 %v3799_v19  ;;  %v3190_v19 = vpop.eup %3189  ;;  %2909 = vmatpush3.bf16.msra.mxu0 %v3075_v21 }
 0x4ec   : > { %2870 = vmatprep.subr.bf16.mxu1 %v3801_v22  ;;  %v1398_v44 = vmul.f32 %v3190_v19, %v3914_v39  ;;  %v1403_v54 = vpack.c.bf16 %v1397_v56, %v1396_v58 }
 0x4ed   : > { %v1650_v57 = vpop.xlane.xlu0 %1649 }
 0x4ee   : > { %2853 = vmatmul.mubr.msk.bf16.gmra.mrb[20].mxu1 %vm765_vm3, %v1136_v14  ;;  %3201 = vrcp.f32 %v1650_v57  ;;  %v1404_v17 = vpack.c.bf16 %v1399_v18, %v1398_v44 }
 0x4ef   : > { %2871 = vmatpush3.bf16.msra.mxu1 %v3801_v22  ;;  %2874 = vmatprep.mubr.msk.bf16.mxu1 %vm765_vm3, %v1402_v45  ;;  %v3192_v22 = vpop.eup %3191  ;;  %3203 = vrcp.f32 %v1641_v47 }
 0x4f0   : > { %2872 = vmatprep.subr.bf16.mxu1 %v3971_v63  ;;  %v3194_v59 = vpop.eup %3193  ;;  %3205 = vrcp.f32 %v1647_v28  ;;  %v1401_v39 = vmul.f32 %v3192_v22, %v3921_v60  ;;  %v3076_v28 = vld [vmem:[%s4361_s3 + $0x8] sm:$0xff]  }
 0x4f1   : > { %v3196_v30 = vpop.eup %3195  ;;  %v1666_v23 = vmul.f32 %v3194_v59, %v3941_v1  ;;  %v1682_v11 = vpop.permute.xlu0 %1681  ;;  %2910 = vmatprep.subr.bf16.mxu0 %v3076_v28 }
 0x4f2   : > { %v3198_v52 = vpop.eup %3197  ;;  %v1400_v13 = vmul.f32 %v3196_v30, %v3908_v35  ;;  %2911 = vmatpush3.bf16.msra.mxu0 %v3076_v28 }
 0x4f3   : > { %2873 = vmatpush3.bf16.msra.mxu1 %v3971_v63  ;;  %v1656_v63 = vpop.xlane.xlu1 %1655  ;;  %v1665_v40 = vmul.f32 %v3198_v52, %v3932_v34  ;;  %v3200_v0 = vpop.eup %3199 }
 0x4f4   : > { %2892 = vmatprep.subr.bf16.mxu1 %v3967_v25  ;;  %3207 = vrcp.f32 %v1656_v63  ;;  %v1668_v1 = vmul.f32 %v3200_v0, %v3939_v62 }
 0x4f5   : > { %3209 = vrcp.f32 %v1653_v33  ;;  %v1673_v61 = vpack.c.bf16 %v1666_v23, %v1665_v40 }
 0x4f6   : > { %2875 = vmatmul.mubr.msk.bf16.vlgmr.msra.gmra.mrb[24].mxu1 %vm765_vm3, %v1403_v54 }
 0x4f7   : > { %2893 = vmatpush3.bf16.msra.mxu1 %v3967_v25  ;;  %2878 = vmatprep.mubr.msk.bf16.mxu1 %vm765_vm3, %v1404_v17  ;;  %v1405_v25 = vpack.c.bf16 %v1401_v39, %v1400_v13  ;;  %v1684_v60 = vpop.permute.xlu1 %1683 }
 0x4f8   : > { %2894 = vmatprep.subr.bf16.mxu1 %v3969_v51  ;;  %v3202_v4 = vpop.eup %3201 }
 0x4f9   : > { %v3204_v42 = vpop.eup %3203 }
 0x4fa   : > { %v3206_v35 = vpop.eup %3205  ;;  %v1667_v34 = vmul.f32 %v3204_v42, %v3926_v26 }
 0x4fb   : > { %2895 = vmatpush3.bf16.msra.mxu1 %v3969_v51  ;;  %v1670_v51 = vmul.f32 %v3202_v4, %v3957_v50  ;;  %v1669_v37 = vmul.f32 %v3206_v35, %v3949_v31 }
 0x4fc   : > { %2896 = vmatprep.subr.bf16.mxu1 %v1682_v11  ;;  %v1674_v27 = vpack.c.bf16 %v1668_v1, %v1667_v34 }
 0x4fd   : > { %v1675_v43 = vpack.c.bf16 %v1670_v51, %v1669_v37 }
 0x4fe   : > { %2879 = vmatmul.mubr.msk.bf16.gmra.mrb[28].mxu1 %vm765_vm3, %v1405_v25  ;;  %v3208_v10 = vpop.eup %3207 }
 0x4ff   : > { %2897 = vmatpush3.bf16.msra.mxu1 %v1682_v11  ;;  %2900 = vmatprep.mubr.msk.bf16.mxu1 %vm765_vm3, %v1673_v61  ;;  %v3210_v47 = vpop.eup %3209  ;;  %v1672_v55 = vmul.f32 %v3208_v10, %v3955_v46 }
 0x500   : > { %2898 = vmatprep.subr.bf16.mxu1 %v1684_v60  ;;  %v1671_v62 = vmul.f32 %v3210_v47, %v3943_v38 }
 0x502   : > { %v1676_v49 = vpack.c.bf16 %v1672_v55, %v1671_v62 }
 0x503   : > { %2899 = vmatpush3.bf16.msra.mxu1 %v1684_v60 }
 0x506   : > { %2901 = vmatmul.mubr.msk.bf16.vlgmr.msra.gmra.mrb[32].mxu1 %vm765_vm3, %v1674_v27 }
 0x507   : > { %2904 = vmatprep.mubr.msk.bf16.mxu1 %vm765_vm3, %v1675_v43 }
 0x50e   : > { %2905 = vmatmul.mubr.msk.bf16.gmra.mrb[36].mxu1 %vm765_vm3, %v1676_v49 }
 0x59d   : > { %v4040_v50 = vpop.f32.mrb[8].mxu1 }
 0x59e   : > { %v4042_v26 = vpop.f32.mrb[9].mxu1 }
 0x59f   : > { %v4044_v31 = vpop.f32.mrb[10].mxu1 }
 0x5a0   : > { %v4046_v48 = vpop.f32.mrb[11].mxu1 }
 0x5b1   : > { %v4048_v3 = vpop.f32.mrb[12].mxu1 }
 0x5b2   : > { %v4050_v12 = vpop.f32.mrb[13].mxu1 }
 0x5b3   : > { %v4052_v16 = vpop.f32.mrb[14].mxu1 }
 0x5b4   : > { %v4054_v46 = vpop.f32.mrb[15].mxu1 }
 0x5b9   : > { %v2850_v38 = vpop.f32.mrb[16].mxu1 }
 0x5ba   : > { %v1195_v29 = vpop.f32.mrb[17].mxu1 }
 0x5bb   : > { %v2851_v7 = vpop.f32.mrb[18].mxu1 }
 0x5bc   : > { %v3013_v15 = vpack.i.bf16 %v2851_v7, %v2850_v38  ;;  %v1198_v53 = vpop.f32.mrb[19].mxu1 }
 0x5bd   : > { %v3018_v32 = vpack.i.bf16 %v1198_v53, %v1195_v29 }
 0x5be   : > { %3014 = vrot.lane.b32.xlu1 %v3013_v15, %s3352_s19 }
 0x5bf   : > { %3019 = vrot.lane.b32.xlu0 %v3018_v32, %s3352_s19 }
 0x5c1   : > { %v2854_v41 = vpop.f32.mrb[20].mxu1 }
 0x5c2   : > { %v1211_v20 = vpop.f32.mrb[21].mxu1 }
 0x5c3   : > { %v2855_v36 = vpop.f32.mrb[22].mxu1 }
 0x5c4   : > { %v3023_v33 = vpack.i.bf16 %v2855_v36, %v2854_v41  ;;  %v1214_v24 = vpop.f32.mrb[23].mxu1 }
 0x5c5   : > { %v3028_v14 = vpack.i.bf16 %v1214_v24, %v1211_v20 }
 0x5c6   : > { %3024 = vrot.lane.b32.xlu1 %v3023_v33, %s3352_s19 }
 0x5c7   : > { %3029 = vrot.lane.b32.xlu0 %v3028_v14, %s3352_s19 }
 0x5c9   : > { %v2876_v5 = vpop.f32.mrb[24].mxu1 }
 0x5ca   : > { %v1464_v45 = vpop.f32.mrb[25].mxu1 }
 0x5cb   : > { %v2877_v8 = vpop.f32.mrb[26].mxu1 }
 0x5cc   : > { %v3033_v2 = vpack.i.bf16 %v2877_v8, %v2876_v5  ;;  %v1467_v19 = vpop.f32.mrb[27].mxu1 }
 0x5cd   : > { %v3038_v56 = vpack.i.bf16 %v1467_v19, %v1464_v45 }
 0x5ce   : > { %3034 = vrot.lane.b32.xlu1 %v3033_v2, %s3353_s24 }
 0x5cf   : > { %3039 = vrot.lane.b32.xlu0 %v3038_v56, %s3353_s24 }
 0x5d1   : > { %v2880_v57 = vpop.f32.mrb[28].mxu1 }
 0x5d2   : > { %v1480_v18 = vpop.f32.mrb[29].mxu1 }
 0x5d3   : > { %v2881_v58 = vpop.f32.mrb[30].mxu1 }
 0x5d4   : > { %v3058_v44 = vpack.i.bf16 %v2881_v58, %v2880_v57  ;;  %v1483_v54 = vpop.f32.mrb[31].mxu1 }
 0x5d5   : > { %v3053_v22 = vpack.i.bf16 %v1483_v54, %v1480_v18 }
 0x5d9   : > { %v2902_v17 = vpop.f32.mrb[32].mxu1 }
 0x5da   : > { %v1735_v59 = vpop.f32.mrb[33].mxu1 }
 0x5db   : > { %v2903_v30 = vpop.f32.mrb[34].mxu1 }
 0x5dc   : > { %v3043_v52 = vpack.i.bf16 %v2903_v30, %v2902_v17  ;;  %v1738_v63 = vpop.f32.mrb[35].mxu1 }
 0x5dd   : > { %v3048_v39 = vpack.i.bf16 %v1738_v63, %v1735_v59 }
 0x5de   : > { %3044 = vrot.lane.b32.xlu1 %v3043_v52, %s3354_s25 }
 0x5df   : > { %3049 = vrot.lane.b32.xlu0 %v3048_v39, %s3354_s25 }
 0x5e1   : > { %v2906_v23 = vpop.f32.mrb[36].mxu1 }
 0x5e2   : > { %3059 = vrot.lane.b32.xlu1 %v3058_v44, %s3353_s24  ;;  %v1751_v13 = vpop.f32.mrb[37].mxu1 }
 0x5e3   : > { %3054 = vrot.lane.b32.xlu0 %v3053_v22, %s3353_s24  ;;  %v2907_v11 = vpop.f32.mrb[38].mxu1 }
 0x5e4   : > { %v3068_v40 = vpack.i.bf16 %v2907_v11, %v2906_v23  ;;  %v1754_v25 = vpop.f32.mrb[39].mxu1 }
 0x5e5   : > { %v3063_v0 = vpack.i.bf16 %v1754_v25, %v1751_v13 }
 0x5e6   : > { %3069 = vrot.lane.b32.xlu1 %v3068_v40, %s3354_s25 }
 0x5e7   : > { %3064 = vrot.lane.b32.xlu0 %v3063_v0, %s3354_s25  ;;  %s458_s25 = scalar_lea.vmem [#allocation5], %s2639_s22  ;;  %s2546_s22 = scalar_lea.sflag [#allocation4], %s3531_s30 }
 0x5e8   : > { %s2559_s27 = sshll.u32 %s458_s25, 4  ;;  %s4307_s27 = int_to_ptr.vmem [resolvable:$true] %s2559_s27 }
 0x5e9   : > { %s3273_s24 = scalar_lea.vmem %s4307_s27, 512  ;;  %p3280_p8 = scmp.lt.s32.totalorder %s4307_s27, %s3278_s23 }
 0x5ea   : > { %p3274_p6 = scmp.ne.s32.totalorder %s4307_s27, %s3273_s24  ;;  %p3281_p10 = scmp.lt.s32.totalorder %s3279_s18, %s3273_s24 }
 0x5ec   : > { %p3275_p12 = pnand %p3274_p6, %p4404_p11  ;;  %p3282_p0 = por %p3281_p10, %p3280_p8 }
 0x5ee   : > { %p3276_p13 = pneg %p3275_p12 }
 0x5f0   : > { %p3283_p2 = pnand %p3282_p0, %p3276_p13 }
 0x630   : > { %v3015_v61 = vpop.permute.xlu1 %3014 }
 0x631   : > { %v3020_v4 = vpop.permute.xlu0 %3019  ;;  %v3017_v1 = vunpack.i.h.bf16 %v3015_v61  ;;  %v3016_v51 = vunpack.i.l.bf16 %v3015_v61 }
 0x632   : > { %v3022_v34 = vunpack.i.h.bf16 %v3020_v4  ;;  %v3021_v27 = vunpack.i.l.bf16 %v3020_v4 }
 0x633   : > { %v1865_v62 = vsel %vm683_vm1, %v4044_v31, %v3017_v1  ;;  %v1864_v49 = vsel %vm683_vm1, %v4040_v50, %v3016_v51 }
 0x634   : > { %v1863_v38 = vsel %vm683_vm1, %v4046_v48, %v3022_v34  ;;  %v1862_v7 = vsel %vm683_vm1, %v4042_v26, %v3021_v27 }
 0x638   : > { %v3025_v42 = vpop.permute.xlu1 %3024 }
 0x639   : > { %v3030_v60 = vpop.permute.xlu0 %3029  ;;  %v3027_v15 = vunpack.i.h.bf16 %v3025_v42  ;;  %v3026_v14 = vunpack.i.l.bf16 %v3025_v42  ;;  %v2680_v42 = vld [vmem:[%s4362_s4] ss:$0 sm:$0xff] }
 0x63a   : > { %v3032_v2 = vunpack.i.h.bf16 %v3030_v60  ;;  %v3031_v19 = vunpack.i.l.bf16 %v3030_v60 }
 0x63b   : > { %v1869_v54 = vsel %vm683_vm1, %v4052_v16, %v3027_v15  ;;  %v1868_v22 = vsel %vm683_vm1, %v4048_v3, %v3026_v14  ;;  %v4402_v14 = vld [vmem:[#allocation15_spill] sm:$0xff] }
 0x63c   : > { %v1867_v59 = vsel %vm683_vm1, %v4054_v46, %v3032_v2  ;;  %v1866_v30 = vsel %vm683_vm1, %v4050_v12, %v3031_v19 }
 0x640   : > { %v3035_v35 = vpop.permute.xlu1 %3034 }
 0x641   : > { %v3040_v37 = vpop.permute.xlu0 %3039  ;;  %v3037_v10 = vunpack.i.h.bf16 %v3035_v35  ;;  %v3036_v43 = vunpack.i.l.bf16 %v3035_v35 }
 0x642   : > { %v3042_v47 = vunpack.i.h.bf16 %v3040_v37  ;;  %v3041_v55 = vunpack.i.l.bf16 %v3040_v37 }
 0x643   : > { %v1874_v20 = vsel %vm1870_vm4, %v1865_v62, %v3037_v10  ;;  %v1873_v36 = vsel %vm1870_vm4, %v1864_v49, %v3036_v43 }
 0x644   : > { %v1871_v50 = vsel %vm1870_vm4, %v1862_v7, %v3041_v55  ;;  %v1872_v24 = vsel %vm1870_vm4, %v1863_v38, %v3042_v47  ;;  %v4398_v55 = vld [vmem:[#allocation12_spill] sm:$0xff]  ;;  %v4399_v7 = vld [vmem:[#allocation13_spill] sm:$0xff] }
 0x650   : > { %v3045_v29 = vpop.permute.xlu1 %3044 }
 0x651   : > { %v3047_v53 = vunpack.i.h.bf16 %v3045_v29  ;;  %v3046_v32 = vunpack.i.l.bf16 %v3045_v29  ;;  %v3050_v41 = vpop.permute.xlu0 %3049 }
 0x652   : > { %v3052_v31 = vunpack.i.h.bf16 %v3050_v41  ;;  %v3051_v33 = vunpack.i.l.bf16 %v3050_v41 }
 0x653   : > { %v1883_v48 = vsel %vm1879_vm5, %v1874_v20, %v3047_v53  ;;  %v1882_v21 = vsel %vm1879_vm5, %v1873_v36, %v3046_v32 }
 0x654   : > { %v1889_v26 = vpack.c.bf16 %v1883_v48, %v1882_v21  ;;  %v1880_v5 = vsel %vm1879_vm5, %v1871_v50, %v3051_v33  ;;  %v1881_v45 = vsel %vm1879_vm5, %v1872_v24, %v3052_v31  ;;  %v3060_v8 = vpop.permute.xlu1 %3059  ;;  %v4401_v24 = vld [vmem:[#allocation16_spill] sm:$0xff] }
 0x655   : > { %v1888_v56 = vpack.c.bf16 %v1881_v45, %v1880_v5  ;;  %v3055_v57 = vpop.permute.xlu0 %3054  ;;  %v3062_v18 = vunpack.i.h.bf16 %v3060_v8  ;;  %v3061_v58 = vunpack.i.l.bf16 %v3060_v8  ;;  %v4403_v45 = vld [vmem:[#allocation17_spill] sm:$0xff] }
 0x656   : > { %v3057_v28 = vunpack.i.h.bf16 %v3055_v57  ;;  %v3056_v44 = vunpack.i.l.bf16 %v3055_v57 }
 0x657   : > { %2912 = vmatprep.mubr.msk.bf16.mxu0 %vm523_vm0, %v1888_v56  ;;  %v1878_v23 = vsel %vm1870_vm4, %v1869_v54, %v3062_v18  ;;  %v1877_v13 = vsel %vm1870_vm4, %v1868_v22, %v3061_v58 }
 0x658   : > { %v3070_v17 = vpop.permute.xlu1 %3069  ;;  %2913 = vmatmul.mubr.msk.bf16.vlgmr.msra.gmra.mrb[32].mxu0 %vm523_vm0, %v1889_v26  ;;  %v1875_v3 = vsel %vm1870_vm4, %v1866_v30, %v3056_v44  ;;  %v1876_v40 = vsel %vm1870_vm4, %v1867_v59, %v3057_v28 }
 0x659   : > { %v3072_v52 = vunpack.i.h.bf16 %v3070_v17  ;;  %v3071_v63 = vunpack.i.l.bf16 %v3070_v17  ;;  %v3065_v39 = vpop.permute.xlu0 %3064 }
 0x65a   : > { %v3067_v16 = vunpack.i.h.bf16 %v3065_v39  ;;  %v3066_v11 = vunpack.i.l.bf16 %v3065_v39 }
 0x65b   : > { %v1887_v25 = vsel %vm1879_vm5, %v1878_v23, %v3072_v52  ;;  %v1886_v46 = vsel %vm1879_vm5, %v1877_v13, %v3071_v63 }
 0x65c   : > { %v1891_v0 = vpack.c.bf16 %v1887_v25, %v1886_v46  ;;  %v1884_v12 = vsel %vm1879_vm5, %v1875_v3, %v3066_v11  ;;  %v1885_v61 = vsel %vm1879_vm5, %v1876_v40, %v3067_v16 }
 0x65d   : > { %v1890_v4 = vpack.c.bf16 %v1885_v61, %v1884_v12 }
 0x65f   : > { %2916 = vmatprep.mubr.msk.bf16.mxu0 %vm523_vm0, %v1890_v4 }
 0x660   : > { %2917 = vmatmul.mubr.msk.bf16.gmra.mrb[36].mxu0 %vm523_vm0, %v1891_v0 }
 0x72b   : > { %v2914_v60 = vpop.f32.mrb[32].mxu0 }
 0x72c   : > { %v1961_v35 = vpop.f32.mrb[33].mxu0  ;;  %v1970_v1 = vadd.f32 %v2914_v60, %v2680_v42 }
 0x72d   : > { %v1962_v51 = vadd.f32 %v2680_v42, %v1961_v35  ;;  %v2915_v34 = vpop.f32.mrb[34].mxu0 }
 0x72e   : > { %v1964_v37 = vpop.f32.mrb[35].mxu0  ;;  %v1973_v43 = vadd.f32 %v2915_v34, %v2680_v42  ;;  %v1994_v47 = vadd.f32 %v1970_v1, %v3554_v9  ;;  %v4400_v9 = vld [vmem:[#allocation14_spill] sm:$0xff] }
 0x72f   : > { %v1992_v27 = vadd.f32 %v1962_v51, %v3547_v6  ;;  %v1965_v10 = vadd.f32 %v2680_v42, %v1964_v37 }
 0x730   : > { %v1995_v15 = vadd.f32 %v1973_v43, %v4399_v7  ;;  %v2008_v6 = vsel %vm523_vm0, %v1994_v47, 0.0  ;;  %v3078_v7 = vld [vmem:[%s4365_s7 + $0x8] sm:$0xff]  }
 0x731   : > { %v1993_v62 = vadd.f32 %v1965_v10, %v4398_v55  ;;  %v2002_v49 = vsel %vm523_vm0, %v1992_v27, 0.0 }
 0x732   : > { %2003 = vadd.xlane.f32.xlu0 %v2002_v49  ;;  %v2011_v50 = vsel %vm523_vm0, %v1995_v15, 0.0 }
 0x733   : > { %v2918_v38 = vpop.f32.mrb[36].mxu0  ;;  %v2005_v29 = vsel %vm523_vm0, %v1993_v62, 0.0 }
 0x734   : > { %v1977_v53 = vpop.f32.mrb[37].mxu0  ;;  %2006 = vadd.xlane.f32.xlu1 %v2005_v29  ;;  %v1986_v32 = vadd.f32 %v2918_v38, %v2680_v42  ;;  %v3077_v29 = vld [vmem:[%s4365_s7] sm:$0xff]  }
 0x735   : > { %v1978_v41 = vadd.f32 %v2680_v42, %v1977_v53  ;;  %v2919_v20 = vpop.f32.mrb[38].mxu0  ;;  %2920 = vmatprep.subr.bf16.mxu1 %v3077_v29  ;;  %v3080_v53 = vld [vmem:[%s4367_s9 + $0x8] sm:$0xff]  }
 0x736   : > { %v1980_v36 = vpop.f32.mrb[39].mxu0  ;;  %2009 = vadd.xlane.f32.xlu0 %v2008_v6  ;;  %v1998_v48 = vadd.f32 %v1986_v32, %v4401_v24  ;;  %v1989_v21 = vadd.f32 %v2919_v20, %v2680_v42  ;;  %2921 = vmatpush3.bf16.msra.mxu1 %v3077_v29 }
 0x737   : > { %v1996_v31 = vadd.f32 %v1978_v41, %v4400_v9  ;;  %v1981_v33 = vadd.f32 %v2680_v42, %v1980_v36  ;;  %2922 = vmatprep.subr.bf16.mxu1 %v3078_v7 }
 0x738   : > { %v1999_v8 = vadd.f32 %v1989_v21, %v4403_v45  ;;  %v2020_v2 = vsel %vm523_vm0, %v1998_v48, 0.0 }
 0x739   : > { %v1997_v26 = vadd.f32 %v1981_v33, %v4402_v14  ;;  %v2014_v5 = vsel %vm523_vm0, %v1996_v31, 0.0 }
 0x73a   : > { %2015 = vadd.xlane.f32.xlu1 %v2014_v5  ;;  %2012 = vadd.xlane.f32.xlu0 %v2011_v50  ;;  %v2023_v56 = vsel %vm523_vm0, %v1999_v8, 0.0 }
 0x73b   : > { %v2017_v19 = vsel %vm523_vm0, %v1997_v26, 0.0  ;;  %2923 = vmatpush3.bf16.msra.mxu1 %v3078_v7 }
 0x73e   : > { %2021 = vadd.xlane.f32.xlu1 %v2020_v2  ;;  %2018 = vadd.xlane.f32.xlu0 %v2017_v19 }
 0x742   : > { %2024 = vadd.xlane.f32.xlu0 %v2023_v56 }
 0x7bf   : > { %v2004_v57 = vpop.xlane.xlu0 %2003 }
 0x7c0   : > { %v2027_v18 = vmul.f32 0.03125, %v2004_v57  ;;  %v2687_v57 = vld [vmem:[%s4363_s5] ss:$0 sm:$0xff] }
 0x7c1   : > { %v2007_v58 = vpop.xlane.xlu1 %2006 }
 0x7c2   : > { %v4121_v28 = vsub.f32 %v1992_v27, %v2027_v18  ;;  %v2028_v44 = vmul.f32 0.03125, %v2007_v58 }
 0x7c3   : > { %v2010_v54 = vpop.xlane.xlu0 %2009 }
 0x7c4   : > { %v4123_v22 = vsub.f32 %v1993_v62, %v2028_v44  ;;  %v2029_v17 = vmul.f32 0.03125, %v2010_v54  ;;  %v2043_v59 = vmul.f32 %v4121_v28, %v4121_v28 }
 0x7c6   : > { %v4127_v30 = vsub.f32 %v1994_v47, %v2029_v17  ;;  %v2051_v52 = vsel %vm523_vm0, %v2043_v59, 0.0  ;;  %v2044_v63 = vmul.f32 %v4123_v22, %v4123_v22 }
 0x7c7   : > { %v2016_v39 = vpop.xlane.xlu1 %2015  ;;  %2052 = vadd.xlane.f32.xlu1 %v2051_v52  ;;  %v2013_v23 = vpop.xlane.xlu0 %2012 }
 0x7c8   : > { %v2031_v13 = vmul.f32 0.03125, %v2016_v39  ;;  %v2030_v16 = vmul.f32 0.03125, %v2013_v23  ;;  %v2054_v11 = vsel %vm523_vm0, %v2044_v63, 0.0  ;;  %v2045_v3 = vmul.f32 %v4127_v30, %v4127_v30  ;;  %v2688_v23 = vld [vmem:[%s4364_s6] ss:$0 sm:$0xff] }
 0x7c9   : > { %2055 = vadd.xlane.f32.xlu0 %v2054_v11 }
 0x7ca   : > { %v4135_v40 = vsub.f32 %v1996_v31, %v2031_v13  ;;  %v4137_v25 = vsub.f32 %v1995_v15, %v2030_v16  ;;  %v2057_v46 = vsel %vm523_vm0, %v2045_v3, 0.0  ;;  %v3079_v15 = vld [vmem:[%s4367_s9] sm:$0xff]  }
 0x7cb   : > { %v2022_v0 = vpop.xlane.xlu1 %2021  ;;  %2058 = vadd.xlane.f32.xlu1 %v2057_v46  ;;  %v2019_v12 = vpop.xlane.xlu0 %2018  ;;  %2932 = vmatprep.subr.bf16.mxu0 %v3079_v15 }
 0x7cc   : > { %v2033_v61 = vmul.f32 0.03125, %v2022_v0  ;;  %v2032_v4 = vmul.f32 0.03125, %v2019_v12  ;;  %v2047_v42 = vmul.f32 %v4135_v40, %v4135_v40  ;;  %v2046_v60 = vmul.f32 %v4137_v25, %v4137_v25  ;;  %2933 = vmatpush3.bf16.msra.mxu0 %v3079_v15  ;;  %v3081_v15 = vld [vmem:[%s4367_s9 + $0x10] sm:$0xff]  }
 0x7cd   : > { %2934 = vmatprep.subr.bf16.mxu0 %v3080_v53 }
 0x7ce   : > { %v4144_v35 = vsub.f32 %v1998_v48, %v2033_v61  ;;  %v4146_v1 = vsub.f32 %v1997_v26, %v2032_v4  ;;  %v2063_v51 = vsel %vm523_vm0, %v2047_v42, 0.0  ;;  %v2060_v34 = vsel %vm523_vm0, %v2046_v60, 0.0 }
 0x7cf   : > { %2064 = vadd.xlane.f32.xlu1 %v2063_v51  ;;  %2061 = vadd.xlane.f32.xlu0 %v2060_v34  ;;  %v2025_v37 = vpop.xlane.xlu0 %2024 }
 0x7d0   : > { %v2034_v27 = vmul.f32 0.03125, %v2025_v37  ;;  %v2049_v10 = vmul.f32 %v4144_v35, %v4144_v35  ;;  %v2048_v43 = vmul.f32 %v4146_v1, %v4146_v1  ;;  %2935 = vmatpush3.bf16.msra.mxu0 %v3080_v53  ;;  %v3082_v53 = vld [vmem:[%s4367_s9 + $0x18] sm:$0xff]  }
 0x7d1   : > { %2936 = vmatprep.subr.bf16.mxu0 %v3081_v15 }
 0x7d2   : > { %v4154_v47 = vsub.f32 %v1999_v8, %v2034_v27  ;;  %v2069_v55 = vsel %vm523_vm0, %v2049_v10, 0.0  ;;  %v2066_v62 = vsel %vm523_vm0, %v2048_v43, 0.0 }
 0x7d3   : > { %2070 = vadd.xlane.f32.xlu1 %v2069_v55  ;;  %2067 = vadd.xlane.f32.xlu0 %v2066_v62 }
 0x7d4   : > { %v2050_v49 = vmul.f32 %v4154_v47, %v4154_v47  ;;  %2937 = vmatpush3.bf16.msra.mxu0 %v3081_v15 }
 0x7d5   : > { %2938 = vmatprep.subr.bf16.mxu0 %v3082_v53 }
 0x7d6   : > { %v2072_v38 = vsel %vm523_vm0, %v2050_v49, 0.0 }
 0x7d7   : > { %2073 = vadd.xlane.f32.xlu0 %v2072_v38 }
 0x7d8   : > { %2939 = vmatpush3.bf16.msra.mxu0 %v3082_v53 }
 0x854   : > { %v2053_v32 = vpop.xlane.xlu1 %2052 }
 0x855   : > { %v2075_v41 = vmul.f32 0.03125, %v2053_v32  ;;  %v2689_v32 = vld [vmem:[%s4366_s8] ss:$0 sm:$0xff] }
 0x856   : > { %v2056_v20 = vpop.xlane.xlu0 %2055 }
 0x857   : > { %v2083_v6 = vadd.f32 1e-05, %v2075_v41  ;;  %v2076_v36 = vmul.f32 0.03125, %v2056_v20 }
 0x858   : > { %v2059_v9 = vpop.xlane.xlu1 %2058 }
 0x859   : > { %3211 = vrsqrt.f32 %v2083_v6  ;;  %v2084_v31 = vadd.f32 1e-05, %v2076_v36  ;;  %v2077_v33 = vmul.f32 0.03125, %v2059_v9 }
 0x85b   : > { %3213 = vrsqrt.f32 %v2084_v31  ;;  %v2085_v50 = vadd.f32 1e-05, %v2077_v33 }
 0x85c   : > { %v2065_v24 = vpop.xlane.xlu1 %2064  ;;  %v2062_v48 = vpop.xlane.xlu0 %2061 }
 0x85d   : > { %3215 = vrsqrt.f32 %v2085_v50  ;;  %v2079_v21 = vmul.f32 0.03125, %v2065_v24  ;;  %v2078_v14 = vmul.f32 0.03125, %v2062_v48 }
 0x85f   : > { %v2087_v26 = vadd.f32 1e-05, %v2079_v21  ;;  %v2086_v5 = vadd.f32 1e-05, %v2078_v14 }
 0x860   : > { %v2071_v45 = vpop.xlane.xlu1 %2070  ;;  %v2068_v8 = vpop.xlane.xlu0 %2067 }
 0x861   : > { %3217 = vrsqrt.f32 %v2087_v26  ;;  %v2081_v2 = vmul.f32 0.03125, %v2071_v45  ;;  %v2080_v19 = vmul.f32 0.03125, %v2068_v8 }
 0x862   : > { %3219 = vrsqrt.f32 %v2086_v5 }
 0x863   : > { %v3212_v56 = vpop.eup %3211  ;;  %v2089_v18 = vadd.f32 1e-05, %v2081_v2  ;;  %v2088_v58 = vadd.f32 1e-05, %v2080_v19 }
 0x864   : > { %v2099_v44 = vmul.f32 %v3212_v56, %v4121_v28  ;;  %v2074_v54 = vpop.xlane.xlu0 %2073 }
 0x865   : > { %v3214_v17 = vpop.eup %3213  ;;  %3221 = vrsqrt.f32 %v2089_v18  ;;  %v2082_v59 = vmul.f32 0.03125, %v2074_v54 }
 0x866   : > { %v2100_v52 = vmul.f32 %v3214_v17, %v4123_v22  ;;  %3223 = vrsqrt.f32 %v2088_v58  ;;  %v2113_v63 = vmul.f32 %v2687_v57, %v2099_v44 }
 0x867   : > { %v3216_v39 = vpop.eup %3215  ;;  %v2090_v13 = vadd.f32 1e-05, %v2082_v59 }
 0x868   : > { %v2114_v16 = vmul.f32 %v2687_v57, %v2100_v52  ;;  %v2101_v11 = vmul.f32 %v3216_v39, %v4127_v30  ;;  %v4182_v3 = vadd.f32 %v2688_v23, %v2113_v63  ;;  %v2696_v39 = vld [vmem:[%s4368_s10] ss:$0 sm:$0xff] }
 0x869   : > { %3225 = vrsqrt.f32 %v2090_v13 }
 0x86a   : > { %v4184_v28 = vadd.f32 %v2688_v23, %v2114_v16  ;;  %v2115_v12 = vmul.f32 %v2687_v57, %v2101_v11 }
 0x86b   : > { %v3218_v46 = vpop.eup %3217 }
 0x86c   : > { %v3220_v0 = vpop.eup %3219  ;;  %v2135_v22 = vpack.c.bf16 %v4184_v28, %v4182_v3  ;;  %v2103_v61 = vmul.f32 %v3218_v46, %v4135_v40  ;;  %v4192_v34 = vadd.f32 %v2688_v23, %v2115_v12 }
 0x86d   : > { %v2102_v4 = vmul.f32 %v3220_v0, %v4137_v25 }
 0x86e   : > { %2924 = vmatprep.mubr.msk.bf16.mxu1 %vm523_vm0, %v2135_v22  ;;  %v2117_v10 = vmul.f32 %v2687_v57, %v2103_v61 }
 0x86f   : > { %v3222_v42 = vpop.eup %3221  ;;  %v2116_v60 = vmul.f32 %v2687_v57, %v2102_v4 }
 0x870   : > { %v3224_v30 = vpop.eup %3223  ;;  %v2105_v51 = vmul.f32 %v3222_v42, %v4144_v35  ;;  %v4201_v49 = vadd.f32 %v2688_v23, %v2117_v10 }
 0x871   : > { %v4194_v37 = vadd.f32 %v2688_v23, %v2116_v60  ;;  %v2104_v27 = vmul.f32 %v3224_v30, %v4146_v1 }
 0x872   : > { %v2119_v62 = vmul.f32 %v2687_v57, %v2105_v51 }
 0x873   : > { %v3226_v43 = vpop.eup %3225  ;;  %v2136_v40 = vpack.c.bf16 %v4194_v37, %v4192_v34  ;;  %v2118_v55 = vmul.f32 %v2687_v57, %v2104_v27 }
 0x874   : > { %v2106_v25 = vmul.f32 %v3226_v43, %v4154_v47  ;;  %v4207_v1 = vadd.f32 %v2688_v23, %v2119_v62 }
 0x875   : > { %2925 = vmatmul.mubr.msk.bf16.vlgmr.msra.gmra.mrb[40].mxu1 %vm523_vm0, %v2136_v40  ;;  %v4203_v35 = vadd.f32 %v2688_v23, %v2118_v55 }
 0x876   : > { %v2120_v38 = vmul.f32 %v2687_v57, %v2106_v25 }
 0x877   : > { %v2137_v29 = vpack.c.bf16 %v4203_v35, %v4201_v49 }
 0x878   : > { %v4209_v7 = vadd.f32 %v2688_v23, %v2120_v38 }
 0x879   : > { %2928 = vmatprep.mubr.msk.bf16.mxu1 %vm523_vm0, %v2137_v29 }
 0x87a   : > { %v2138_v47 = vpack.c.bf16 %v4209_v7, %v4207_v1 }
 0x87d   : > { %2929 = vmatmul.mubr.msk.bf16.gmra.mrb[44].mxu1 %vm523_vm0, %v2138_v47 }
 0x948   : > { %v2926_v41 = vpop.f32.mrb[40].mxu1 }
 0x949   : > { %v2217_v20 = vadd.f32 %v2926_v41, %v2689_v32  ;;  %v2208_v6 = vpop.f32.mrb[41].mxu1 }
 0x94a   : > { %v2209_v36 = vadd.f32 %v2689_v32, %v2208_v6  ;;  %v2927_v9 = vpop.f32.mrb[42].mxu1 }
 0x94b   : > { %v2220_v31 = vadd.f32 %v2927_v9, %v2689_v32  ;;  %v2211_v33 = vpop.f32.mrb[43].mxu1  ;;  %v2241_v24 = vmax.f32 %v2217_v20, 0.0 }
 0x94c   : > { %v2212_v50 = vadd.f32 %v2689_v32, %v2211_v33  ;;  %v2239_v21 = vmax.f32 %v2209_v36, 0.0 }
 0x94d   : > { %v2242_v48 = vmax.f32 %v2220_v31, 0.0 }
 0x94e   : > { %v2240_v14 = vmax.f32 %v2212_v50, 0.0 }
 0x94f   : > { %v2248_v26 = vpack.c.bf16 %v2242_v48, %v2241_v24 }
 0x950   : > { %v2247_v5 = vpack.c.bf16 %v2240_v14, %v2239_v21  ;;  %v2930_v45 = vpop.f32.mrb[44].mxu1 }
 0x951   : > { %v2233_v8 = vadd.f32 %v2930_v45, %v2689_v32  ;;  %v2224_v2 = vpop.f32.mrb[45].mxu1 }
 0x952   : > { %v2225_v19 = vadd.f32 %v2689_v32, %v2224_v2  ;;  %v2931_v56 = vpop.f32.mrb[46].mxu1  ;;  %2940 = vmatprep.mubr.msk.bf16.mxu0 %vm765_vm3, %v2247_v5 }
 0x953   : > { %v2236_v57 = vadd.f32 %v2931_v56, %v2689_v32  ;;  %v2227_v18 = vpop.f32.mrb[47].mxu1  ;;  %2941 = vmatmul.mubr.msk.bf16.vlgmr.msra.gmra.mrb[40].mxu0 %vm765_vm3, %v2248_v26  ;;  %v2245_v44 = vmax.f32 %v2233_v8, 0.0 }
 0x954   : > { %v2228_v58 = vadd.f32 %v2689_v32, %v2227_v18  ;;  %v2243_v17 = vmax.f32 %v2225_v19, 0.0 }
 0x955   : > { %v2246_v54 = vmax.f32 %v2236_v57, 0.0 }
 0x956   : > { %v2244_v59 = vmax.f32 %v2228_v58, 0.0 }
 0x957   : > { %v2250_v52 = vpack.c.bf16 %v2246_v54, %v2245_v44 }
 0x958   : > { %v2249_v63 = vpack.c.bf16 %v2244_v59, %v2243_v17 }
 0x95a   : > { %2944 = vmatprep.mubr.msk.bf16.mxu0 %vm765_vm3, %v2249_v63 }
 0x95b   : > { %2945 = vmatmul.mubr.msk.bf16.gmra.mrb[44].mxu0 %vm765_vm3, %v2250_v52 }
 0xa26   : > { %v2942_v23 = vpop.f32.mrb[40].mxu0 }
 0xa27   : > { %v2336_v13 = vpop.f32.mrb[41].mxu0  ;;  %v2345_v16 = vadd.f32 %v2942_v23, %v2696_v39 }
 0xa28   : > { %v2337_v11 = vadd.f32 %v2696_v39, %v2336_v13  ;;  %v2943_v46 = vpop.f32.mrb[42].mxu0 }
 0xa29   : > { %v2339_v0 = vpop.f32.mrb[43].mxu0  ;;  %v2348_v12 = vadd.f32 %v2943_v46, %v2696_v39  ;;  %v2369_v4 = vadd.f32 %v2345_v16, %v4192_v34 }
 0xa2a   : > { %v2367_v22 = vadd.f32 %v2337_v11, %v4182_v3  ;;  %v2340_v61 = vadd.f32 %v2696_v39, %v2339_v0 }
 0xa2b   : > { %v2370_v30 = vadd.f32 %v2348_v12, %v4194_v37  ;;  %v2383_v3 = vsel %vm523_vm0, %v2369_v4, 0.0 }
 0xa2c   : > { %v2368_v42 = vadd.f32 %v2340_v61, %v4184_v28  ;;  %v2377_v60 = vsel %vm523_vm0, %v2367_v22, 0.0 }
 0xa2d   : > { %2378 = vadd.xlane.f32.xlu1 %v2377_v60  ;;  %v2386_v38 = vsel %vm523_vm0, %v2370_v30, 0.0 }
 0xa2e   : > { %v2946_v51 = vpop.f32.mrb[44].mxu0  ;;  %v2380_v27 = vsel %vm523_vm0, %v2368_v42, 0.0 }
 0xa2f   : > { %2381 = vadd.xlane.f32.xlu0 %v2380_v27  ;;  %v2352_v10 = vpop.f32.mrb[45].mxu0  ;;  %v2361_v43 = vadd.f32 %v2946_v51, %v2696_v39 }
 0xa30   : > { %v2353_v40 = vadd.f32 %v2696_v39, %v2352_v10  ;;  %v2947_v55 = vpop.f32.mrb[46].mxu0 }
 0xa31   : > { %2384 = vadd.xlane.f32.xlu1 %v2383_v3  ;;  %v2355_v25 = vpop.f32.mrb[47].mxu0  ;;  %v2364_v28 = vadd.f32 %v2947_v55, %v2696_v39  ;;  %v2373_v37 = vadd.f32 %v2361_v43, %v4207_v1 }
 0xa32   : > { %v2371_v34 = vadd.f32 %v2353_v40, %v4201_v49  ;;  %v2356_v62 = vadd.f32 %v2696_v39, %v2355_v25 }
 0xa33   : > { %2387 = vadd.xlane.f32.xlu0 %v2386_v38  ;;  %v2374_v15 = vadd.f32 %v2364_v28, %v4209_v7  ;;  %v2395_v32 = vsel %vm523_vm0, %v2373_v37, 0.0 }
 0xa34   : > { %v2372_v29 = vadd.f32 %v2356_v62, %v4203_v35  ;;  %v2389_v47 = vsel %vm523_vm0, %v2371_v34, 0.0 }
 0xa35   : > { %2390 = vadd.xlane.f32.xlu1 %v2389_v47  ;;  %v2398_v49 = vsel %vm523_vm0, %v2374_v15, 0.0 }
 0xa36   : > { %v2392_v53 = vsel %vm523_vm0, %v2372_v29, 0.0 }
 0xa37   : > { %2393 = vadd.xlane.f32.xlu0 %v2392_v53  ;;  %v2705_v53 = vld [vmem:[%s4369_s11] ss:$0 sm:$0xff] }
 0xa39   : > { %2396 = vadd.xlane.f32.xlu1 %v2395_v32 }
 0xa3b   : > { %2399 = vadd.xlane.f32.xlu0 %v2398_v49 }
 0xaba   : > { %v2379_v41 = vpop.xlane.xlu1 %2378 }
 0xabb   : > { %v2401_v20 = vmul.f32 0.03125, %v2379_v41 }
 0xabc   : > { %v2382_v6 = vpop.xlane.xlu0 %2381 }
 0xabd   : > { %v4247_v1 = vsub.f32 %v2367_v22, %v2401_v20  ;;  %v2402_v35 = vmul.f32 0.03125, %v2382_v6  ;;  %v2706_v20 = vld [vmem:[%s4370_s12] ss:$0 sm:$0xff] }
 0xabe   : > { %v2385_v36 = vpop.xlane.xlu1 %2384 }
 0xabf   : > { %v4249_v9 = vsub.f32 %v2368_v42, %v2402_v35  ;;  %v2403_v31 = vmul.f32 0.03125, %v2385_v36  ;;  %v2417_v7 = vmul.f32 %v4247_v1, %v4247_v1 }
 0xac0   : > { %v2388_v33 = vpop.xlane.xlu0 %2387 }
 0xac1   : > { %v4253_v50 = vsub.f32 %v2369_v4, %v2403_v31  ;;  %v2404_v24 = vmul.f32 0.03125, %v2388_v33  ;;  %v2425_v48 = vsel %vm523_vm0, %v2417_v7, 0.0  ;;  %v2418_v21 = vmul.f32 %v4249_v9, %v4249_v9 }
 0xac2   : > { %2426 = vadd.xlane.f32.xlu1 %v2425_v48  ;;  %v2391_v14 = vpop.xlane.xlu1 %2390 }
 0xac3   : > { %v4258_v26 = vsub.f32 %v2370_v30, %v2404_v24  ;;  %v2405_v5 = vmul.f32 0.03125, %v2391_v14  ;;  %v2428_v45 = vsel %vm523_vm0, %v2418_v21, 0.0  ;;  %v2419_v8 = vmul.f32 %v4253_v50, %v4253_v50 }
 0xac4   : > { %2429 = vadd.xlane.f32.xlu0 %v2428_v45  ;;  %v2394_v2 = vpop.xlane.xlu0 %2393 }
 0xac5   : > { %v4263_v19 = vsub.f32 %v2371_v34, %v2405_v5  ;;  %v2406_v56 = vmul.f32 0.03125, %v2394_v2  ;;  %v2431_v57 = vsel %vm523_vm0, %v2419_v8, 0.0  ;;  %v2420_v18 = vmul.f32 %v4258_v26, %v4258_v26 }
 0xac6   : > { %2432 = vadd.xlane.f32.xlu1 %v2431_v57  ;;  %v2397_v58 = vpop.xlane.xlu1 %2396 }
 0xac7   : > { %v4268_v44 = vsub.f32 %v2372_v29, %v2406_v56  ;;  %v2407_v54 = vmul.f32 0.03125, %v2397_v58  ;;  %v2434_v17 = vsel %vm523_vm0, %v2420_v18, 0.0  ;;  %v2421_v59 = vmul.f32 %v4263_v19, %v4263_v19 }
 0xac8   : > { %2435 = vadd.xlane.f32.xlu0 %v2434_v17  ;;  %v2400_v52 = vpop.xlane.xlu0 %2399 }
 0xac9   : > { %v4273_v63 = vsub.f32 %v2373_v37, %v2407_v54  ;;  %v2408_v39 = vmul.f32 0.03125, %v2400_v52  ;;  %v2437_v23 = vsel %vm523_vm0, %v2421_v59, 0.0  ;;  %v2422_v13 = vmul.f32 %v4268_v44, %v4268_v44 }
 0xaca   : > { %2438 = vadd.xlane.f32.xlu1 %v2437_v23 }
 0xacb   : > { %v4278_v16 = vsub.f32 %v2374_v15, %v2408_v39  ;;  %v2440_v11 = vsel %vm523_vm0, %v2422_v13, 0.0  ;;  %v2423_v46 = vmul.f32 %v4273_v63, %v4273_v63 }
 0xacc   : > { %2441 = vadd.xlane.f32.xlu0 %v2440_v11 }
 0xacd   : > { %v2443_v0 = vsel %vm523_vm0, %v2423_v46, 0.0  ;;  %v2424_v22 = vmul.f32 %v4278_v16, %v4278_v16 }
 0xace   : > { %2444 = vadd.xlane.f32.xlu1 %v2443_v0 }
 0xacf   : > { %v2446_v12 = vsel %vm523_vm0, %v2424_v22, 0.0 }
 0xad0   : > { %2447 = vadd.xlane.f32.xlu0 %v2446_v12 }
 0xb4f   : > { %v2427_v61 = vpop.xlane.xlu1 %2426 }
 0xb50   : > { %v2449_v4 = vmul.f32 0.03125, %v2427_v61 }
 0xb51   : > { %v2430_v42 = vpop.xlane.xlu0 %2429 }
 0xb52   : > { %v2457_v60 = vadd.f32 1e-05, %v2449_v4  ;;  %v2450_v30 = vmul.f32 0.03125, %v2430_v42 }
 0xb53   : > { %v2433_v51 = vpop.xlane.xlu1 %2432 }
 0xb54   : > { %3227 = vrsqrt.f32 %v2457_v60  ;;  %v2458_v27 = vadd.f32 1e-05, %v2450_v30  ;;  %v2451_v10 = vmul.f32 0.03125, %v2433_v51 }
 0xb55   : > { %v2436_v43 = vpop.xlane.xlu0 %2435 }
 0xb56   : > { %3229 = vrsqrt.f32 %v2458_v27  ;;  %v2459_v40 = vadd.f32 1e-05, %v2451_v10  ;;  %v2452_v55 = vmul.f32 0.03125, %v2436_v43 }
 0xb57   : > { %v2439_v3 = vpop.xlane.xlu1 %2438 }
 0xb58   : > { %3231 = vrsqrt.f32 %v2459_v40  ;;  %v2460_v25 = vadd.f32 1e-05, %v2452_v55  ;;  %v2453_v34 = vmul.f32 0.03125, %v2439_v3 }
 0xb59   : > { %v2442_v28 = vpop.xlane.xlu0 %2441 }
 0xb5a   : > { %3233 = vrsqrt.f32 %v2460_v25  ;;  %v2461_v62 = vadd.f32 1e-05, %v2453_v34  ;;  %v2454_v38 = vmul.f32 0.03125, %v2442_v28 }
 0xb5b   : > { %v2445_v37 = vpop.xlane.xlu1 %2444 }
 0xb5c   : > { %3235 = vrsqrt.f32 %v2461_v62  ;;  %v2462_v47 = vadd.f32 1e-05, %v2454_v38  ;;  %v2455_v15 = vmul.f32 0.03125, %v2445_v37 }
 0xb5d   : > { %v2448_v32 = vpop.xlane.xlu0 %2447 }
 0xb5e   : > { %v3228_v29 = vpop.eup %3227  ;;  %3237 = vrsqrt.f32 %v2462_v47  ;;  %v2463_v31 = vadd.f32 1e-05, %v2455_v15  ;;  %v2456_v7 = vmul.f32 0.03125, %v2448_v32 }
 0xb5f   : > { %v2473_v49 = vmul.f32 %v3228_v29, %v4247_v1 }
 0xb60   : > { %v3230_v41 = vpop.eup %3229  ;;  %3239 = vrsqrt.f32 %v2463_v31  ;;  %v2464_v1 = vadd.f32 1e-05, %v2456_v7 }
 0xb61   : > { %v2487_v6 = vmul.f32 %v2705_v53, %v2473_v49  ;;  %v2474_v35 = vmul.f32 %v3230_v41, %v4249_v9 }
 0xb62   : > { %v3232_v36 = vpop.eup %3231  ;;  %3241 = vrsqrt.f32 %v2464_v1 }
 0xb63   : > { %v2501_v33 = vadd.f32 %v2706_v20, %v2487_v6  ;;  %v2488_v24 = vmul.f32 %v2705_v53, %v2474_v35  ;;  %v2475_v48 = vmul.f32 %v3232_v36, %v4253_v50 }
 0xb64   : > { %v3234_v21 = vpop.eup %3233 }
 0xb65   : > { %2509 = vxpose.xlu1.b32.start [1/8] (short) (narrow) %v2501_v33, 32  ;;  %v2502_v14 = vadd.f32 %v2706_v20, %v2488_v24  ;;  %v2489_v5 = vmul.f32 %v2705_v53, %v2475_v48  ;;  %v2476_v45 = vmul.f32 %v3234_v21, %v4258_v26 }
 0xb66   : > { %v3236_v8 = vpop.eup %3235 }
 0xb67   : > { %v2503_v9 = vadd.f32 %v2706_v20, %v2489_v5  ;;  %v2490_v2 = vmul.f32 %v2705_v53, %v2476_v45  ;;  %v2477_v56 = vmul.f32 %v3236_v8, %v4263_v19 }
 0xb68   : > { %v3238_v57 = vpop.eup %3237 }
 0xb69   : > { %2510 = vxpose.xlu1.b32.cont [2/8] (short) (narrow) %v2502_v14, 32  ;;  %v2504_v18 = vadd.f32 %v2706_v20, %v2490_v2  ;;  %v2491_v58 = vmul.f32 %v2705_v53, %v2477_v56  ;;  %v2478_v50 = vmul.f32 %v3238_v57, %v4268_v44 }
 0xb6a   : > { %v3240_v54 = vpop.eup %3239 }
 0xb6b   : > { %v2505_v17 = vadd.f32 %v2706_v20, %v2491_v58  ;;  %v2492_v59 = vmul.f32 %v2705_v53, %v2478_v50  ;;  %v2479_v26 = vmul.f32 %v3240_v54, %v4273_v63 }
 0xb6c   : > { %v3242_v52 = vpop.eup %3241 }
 0xb6d   : > { %2511 = vxpose.xlu1.b32.cont [3/8] (short) (narrow) %v2503_v9, 32  ;;  %v2506_v39 = vadd.f32 %v2706_v20, %v2492_v59  ;;  %v2493_v23 = vmul.f32 %v2705_v53, %v2479_v26  ;;  %v2480_v19 = vmul.f32 %v3242_v52, %v4278_v16 }
 0xb6f   : > { %v2507_v13 = vadd.f32 %v2706_v20, %v2493_v23  ;;  %v2494_v11 = vmul.f32 %v2705_v53, %v2480_v19 }
 0xb71   : > { %2512 = vxpose.xlu1.b32.cont [4/8] (short) (narrow) %v2504_v18, 32  ;;  %v2508_v44 = vadd.f32 %v2706_v20, %v2494_v11 }
 0xb75   : > { %2513 = vxpose.xlu1.b32.cont [5/8] (short) (narrow) %v2505_v17, 32 }
 0xb79   : > { %2514 = vxpose.xlu1.b32.cont [6/8] (short) (narrow) %v2506_v39, 32 }
 0xb7d   : > { %2515 = vxpose.xlu1.b32.cont [7/8] (short) (narrow) %v2507_v13, 32 }
 0xb81   : > { %2516 = vxpose.xlu1.b32.end [8/8] (short) (narrow) %v2508_v44, 32 }
 0xbe5   : > { %v2525_v46 = vpop.trf.xlu1 }
 0xbe6   : > { %2541 = vst.msk [vmem:[%s458_s25] sm:$0xff] %vm765_vm3, %v2525_v46 }
 0xbe9   : > { %v2526_v63 = vpop.trf.xlu1 }
 0xbea   : > { %2542 = vst.msk [vmem:[%s458_s25 + $0x8] sm:$0xff] %vm765_vm3, %v2526_v63 }
 0xbed   : > { %v2527_v0 = vpop.trf.xlu1 }
 0xbee   : > { %2543 = vst.msk [vmem:[%s458_s25 + $0x10] sm:$0xff] %vm765_vm3, %v2527_v0 }
 0xbf1   : > { %v2528_v16 = vpop.trf.xlu1 }
 0xbf2   : > { %2544 = vst.msk [vmem:[%s458_s25 + $0x18] sm:$0xff] %vm765_vm3, %v2528_v16 }
 0xbf3   : > { %3286 = shalt.err (!%p3283_p2)
}
 0xbf4   : > { %s3287_s25 = scalar_lea.hbm %s4312_s15, 512  ;;  %s3291_s16 = scalar_lea.hbm %s4371_s13, 1024 }
 0xbf5   : > { %p3288_p4 = scmp.ne.s32.totalorder %s4312_s15, %s3287_s25  ;;  %p3292_p9 = scmp.lt.u32.totalorder %s4312_s15, %s4371_s13 }
 0xbf6   : > { %p3293_p1 = scmp.lt.u32.totalorder %s3291_s16, %s3287_s25  ;;  %p3295_p6 = scmp.lt.u32.totalorder %s3287_s25, %s4312_s15 }
 0xbf7   : > { %p3289_p5 = pnand %p3288_p4, %p4404_p11 }
 0xbf8   : > { %p3294_p3 = por %p3293_p1, %p3292_p9 }
 0xbf9   : > { %p3290_p7 = pneg %p3289_p5 }
 0xbfa   : > { %p3296_p12 = por %p3295_p6, %p3294_p3 }
 0xbfc   : > { %p3297_p13 = pnand %p3296_p12, %p3290_p7 }
 0xbfe   : > { %3300 = shalt.err (!%p3297_p13)
}
 0xbff   : > { %s3356_s24 = smov 128  }
 0xc00   : > { %2954 = dma.vmem_to_hbm [thread:$0]  (%p4404_p11), %s4307_s27, 512, %s4312_s15, %s2546_s22, %s3356_s24, %s3356_s24, %s3352_s19  }
 0xc01 PF: > { %s4405_s18 = sld [smem:[#allocation8_spill]]  ;;  %p4406_p8 = scmp.ne.s32.totalorder %s4390_s21, 0 }
 0xc02   : > { %p4407_p10 = scmp.ge.s32.totalorder %s3339_s28, 2 }
 0xc04   : > { %p2961_p0 = pnand %p4407_p10, %p4406_p8 }
 0xc07   : > { %s2574_s14 = sand.u32 1, %s4405_s18  }
 0xc08   : > { %s2575_s25 = scalar_lea.sflag [#allocation4], %s2574_s14 }
 0xc09   : > { %3322 = dma.done.wait (!%p2961_p0), %s2575_s25, 512  }
 0xc0a   : > { %3324 = vsyncadd (!%p2961_p0), %s2575_s25, 4294966784  ;;  %s4408_s28 = sld [smem:[#allocation10_spill]]  ;;  %s4409_s20 = sld [smem:[#allocation9_spill]] }
 0xc0b   : > { %s4410_s27 = sld [smem:[#allocation11_spill]]  ;;  %s4411_s25 = smov %s3331_s26 }
 0xc10   : > { %p26_p2 = scmp.ge.s32.totalorder %s4408_s28, 4   ;;  %s4412_s26 = smov %s4409_s20 }
 0xc12   :  { %28 = sbr.rel (!%p26_p2) target bundleno = 5 (0x5), region = 117 }
 0xc19   :  { %2580 = vsyncpa [#allocation3], 1 }
 0xc1a   :  { %2582 = vsyncpa [#allocation3 + $0x1], 1 }
 0xc1b   :  { %2583 = vsyncpa [#allocation4], 1 }
 0xc1c   :  { %2585 = vsyncpa [#allocation4 + $0x1], 1 }

// kernel: tpu_custom_call.1
= control target key start
LH: loop header
LB: loop body
LE: loop exit
PB: predicated region body
PF: predicated region fallthrough
CT: control target
= control target key end

     0   :  { %18 = vsyncpa [#allocation3], 0  ;;  %s4358_s0 = inlined_call_operand.hbm [shape: f32[2,32,64], index: 0, kind: input, shape index: {}]   ;;  %s4359_s1 = inlined_call_operand.vmem [shape: bf16[32,96], index: 1, kind: input, shape index: {}]   ;;  %s4360_s2 = inlined_call_operand.vmem [shape: f32[1,96], index: 2, kind: input, shape index: {}]   ;;  %s4361_s3 = inlined_call_operand.vmem [shape: bf16[32,32], index: 3, kind: input, shape index: {}]   ;;  %s4362_s4 = inlined_call_operand.vmem [shape: f32[1,32], index: 4, kind: input, shape index: {}]   ;;  %s4363_s5 = inlined_call_operand.vmem [shape: f32[1,32], index: 5, kind: input, shape index: {}]   ;;  %s4364_s6 = inlined_call_operand.vmem [shape: f32[1,32], index: 6, kind: input, shape index: {}]   ;;  %s4365_s7 = inlined_call_operand.vmem [shape: bf16[32,64], index: 7, kind: input, shape index: {}]   ;;  %s4366_s8 = inlined_call_operand.vmem [shape: f32[1,64], index: 8, kind: input, shape index: {}]   ;;  %s4367_s9 = inlined_call_operand.vmem [shape: bf16[64,32], index: 9, kind: input, shape index: {}]   ;;  %s4368_s10 = inlined_call_operand.vmem [shape: f32[1,32], index: 10, kind: input, shape index: {}]   ;;  %s4369_s11 = inlined_call_operand.vmem [shape: f32[1,32], index: 11, kind: input, shape index: {}]   ;;  %s4370_s12 = inlined_call_operand.vmem [shape: f32[1,32], index: 12, kind: input, shape index: {}]   ;;  %s4371_s13 = inlined_call_operand.hbm [shape: f32[2,32,64], index: 13, kind: output, shape index: {}]  }
   0x1   :  { %20 = vsyncpa [#allocation3 + $0x1], 0 }
   0x2   :  { %21 = vsyncpa [#allocation4], 0 }
   0x3   :  { %23 = vsyncpa [#allocation4 + $0x1], 0  ;;  %s3427_s25 = smov 0   ;;  %s3429_s26 = smov 0  }
   0x4   :  { %s3431_s27 = smov 0   ;;  %s3433_s28 = smov 0  }
   0x5 LB: > { %4383 = sst [smem:[#allocation8_spill]] %s3327_s25  ;;  %s3448_s29 = sadd.s32 4294967295, %s3339_s28   ;;  %s3339_s28 = sphi %s3433_s28, %s4408_s28   ;;  %s3335_s27 = sphi %s3431_s27, %s4410_s27   ;;  %s3331_s26 = sphi %s3429_s26, %s4412_s26   ;;  %s3327_s25 = sphi %s3427_s25, %s4411_s25  }
   0x6   : > { %4384 = sst [smem:[#allocation9_spill]] %s3335_s27  ;;  %s2632_s30 = sadd.s32 4294967294, %s3339_s28  }
   0x7   : > { %s3452_s14 = sadd.s32 1, %s3339_s28   ;;  %s36_s15 = sadd.s32 1, %s3335_s27 }
   0x8   : > { %4385 = sst [smem:[#allocation10_spill]] %s3452_s14  ;;  %s33_s16 = ssub.s32 %s3339_s28, %s3452_s14 }
   0x9   : > { %p43_p0 = scmp.ne.s32.totalorder %s3335_s27, %s3331_s26  ;;  %p34_p1 = scmp.eq.s32.totalorder %s33_s16, 0 }
   0xa   : > { %p44_p2 = scmp.eq.s32.totalorder %s3339_s28, 0  ;;  %p49_p3 = scmp.ne.s32.totalorder %s3331_s26, %s3327_s25 }
   0xb   : > { %p50_p4 = scmp.eq.s32.totalorder %s3448_s29, 0  ;;  %p325_p7 = scmp.eq.s32.totalorder %s3448_s29, 1 }
   0xc   : > { %s3464_s17 = scalar_select %p34_p1, %s3335_s27, %s36_s15  }
   0xd   : > { %p3466_p5 = por %p44_p2, %p43_p0  ;;  %p3470_p6 = por %p50_p4, %p49_p3 }
   0xe   : > { %4386 = sst [smem:[#allocation11_spill]] %s3464_s17  ;;  %p331_p8 = scmp.eq.s32.totalorder %s2632_s30, 1 }
   0xf   : > { %p2964_p10 = scmp.lt.s32.totalorder %s3339_s28, 2  ;;  %p3477_p11 = por %p325_p7, %p43_p0 }
  0x10   : > { %p3481_p12 = por %p331_p8, %p49_p3  ;;  %s387_s22 = sand.u32 1, %s3335_s27  }
  0x11   : > { %s4389_s20 = scalar_select %p3477_p11, 1, 0 }
  0x12   : > { %s4390_s21 = scalar_select %p3481_p12, 1, 0 }
  0x13   : > { %s2712_s23 = sshll.u32 %s3339_s28, 9  ;;  %s2635_s24 = sshll.u32 %s387_s22, 5 }
  0x14   : > { %s3490_s17 = scalar_lea.hbm %s4358_s0, %s2712_s23  ;;  %s391_s30 = scalar_lea.vmem [#allocation2], %s2635_s24 }
  0x15   : > { %s398_s14 = sshll.u32 %s391_s30, 4  ;;  %p3494_p13 = pnand %p2964_p10, %p3466_p5  ;;  %s3498_s14 = int_to_ptr.vmem [resolvable:$true] %s398_s14 }
  0x16   : > { %s3500_s27 = scalar_lea.sflag [#allocation3], %s387_s22  ;;  %s3243_s15 = scalar_lea.hbm %s3490_s17, 512 }
  0x17   : > { %p3244_p0 = scmp.ne.s32.totalorder %s3490_s17, %s3243_s15  ;;  %p3245_p1 = pneg %p3494_p13 }
  0x18   : > { %s3248_s24 = scalar_lea.hbm %s4358_s0, 1024  ;;  %p3249_p4 = scmp.lt.u32.totalorder %s3490_s17, %s4358_s0 }
  0x19   : > { %p3246_p2 = pnand %p3245_p1, %p3244_p0  ;;  %p3250_p5 = scmp.lt.u32.totalorder %s3248_s24, %s3243_s15 }
  0x1a   : > { %p3252_p8 = scmp.lt.u32.totalorder %s3243_s15, %s3490_s17 }
  0x1b   : > { %p3247_p3 = pneg %p3246_p2  ;;  %p3251_p7 = por %p3250_p5, %p3249_p4 }
  0x1d   : > { %p3253_p10 = por %p3252_p8, %p3251_p7 }
  0x1f   : > { %p3254_p9 = pnand %p3253_p10, %p3247_p3 }
  0x21   : > { %3257 = shalt.err (!%p3254_p9)
}
  0x22   : > { %s3258_s22 = scalar_lea.vmem %s3498_s14, 512  ;;  %s3341_s23 = smov [#allocation2]  }
  0x23   : > { %p3259_p0 = scmp.ne.s32.totalorder %s3498_s14, %s3258_s22  ;;  %s3263_s18 = sshll.u32 %s3341_s23, 4  ;;  %s3264_s18 = int_to_ptr.vmem [resolvable:$false] %s3263_s18 }
  0x24   : > { %s3265_s16 = scalar_lea.vmem %s3264_s18, 1024  ;;  %p3266_p11 = scmp.lt.s32.totalorder %s3498_s14, %s3264_s18 }
  0x25   : > { %p3261_p2 = pnand %p3259_p0, %p3245_p1  ;;  %p3267_p4 = scmp.lt.s32.totalorder %s3265_s16, %s3258_s22 }
  0x27   : > { %p3262_p12 = pneg %p3261_p2  ;;  %p3268_p5 = por %p3267_p4, %p3266_p11 }
  0x29   : > { %p3269_p7 = pnand %p3268_p5, %p3262_p12 }
  0x2b   : > { %3272 = shalt.err (!%p3269_p7)
}
  0x2c   : > { %s3342_s15 = smov 128   ;;  %s3343_s24 = smov 8  }
  0x2d   : > { %2959 = dma.hbm_to_vmem [thread:$0]  (!%p3494_p13), %s3490_s17, 512, %s3498_s14, %s3500_s27, %s3342_s15, %s3342_s15, %s3343_s24  }
  0x2e   : > { %p2638_p9 = scmp.ge.s32.totalorder %s3339_s28, 1  ;;  %p406_p1 = scmp.lt.s32.totalorder %s3339_s28, 3 }
  0x30   : > { %p407_p3 = pnand %p2638_p9, %p406_p1 }
  0x32   : > { %410 = sbr.rel (%p407_p3) target bundleno = 3073 (0xc01), region = 72 }
  0x39   : > { %s3531_s30 = sand.u32 1, %s3331_s26  }
  0x3a   : > { %s2639_s22 = sshll.u32 %s3531_s30, 5  ;;  %s413_s23 = scalar_lea.sflag [#allocation3], %s3531_s30 }
  0x3b   : > { %s416_s18 = scalar_lea.vmem [#allocation2], %s2639_s22 }
  0x3c   : > { %3318 = dma.done.wait (%p3470_p6), %s413_s23, 512  }
  0x3d   : > { %3320 = vsyncadd (%p3470_p6), %s413_s23, 4294966784  ;;  %v460_v0 = vld [vmem:[%s416_s18] sm:$0xff]  ;;  %v461_v1 = vld [vmem:[%s416_s18 + $0x8] sm:$0xff]  ;;  %vm523_vm0 = vcmask 261120   ;;  %s3344_s15 = smov 96   ;;  %vm683_vm1 = vcmask 64512  }
  0x3e   : > { %464 = vxpose.xlu0.b32.start [1/4] (short) (narrow) %v460_v0, 64  ;;  %v3073_v2 = vld [vmem:[%s4359_s1] sm:$0xff]   ;;  %v462_v3 = vld [vmem:[%s416_s18 + $0x10] sm:$0xff]  ;;  %v3074_v4 = vld [vmem:[%s4359_s1 + $0x8] sm:$0xff]   ;;  %s3345_s24 = smov 120   ;;  %s3346_s23 = smov 112  }
  0x3f   : > { %2792 = vmatprep.subr.bf16.mxu0 %v3073_v2  ;;  %v463_v5 = vld [vmem:[%s416_s18 + $0x18] sm:$0xff]  ;;  %v2641_v18 = vld [vmem:[%s4360_s2] ss:$0 sm:$0xff]  ;;  %s3347_s18 = smov 104   ;;  %s3348_s25 = smov 64   ;;  %vm696_vm2 = vcmask 1043456  }
  0x40   : > { %2793 = vmatpush3.bf16.msra.mxu0 %v3073_v2  ;;  %s3349_s27 = smov 56   ;;  %s3350_s14 = smov 48   ;;  %vm765_vm3 = vcmask 523264   ;;  %vm1870_vm4 = vcmask 130048   ;;  %vm1879_vm5 = vcmask 195584  }
  0x41   : > { %2794 = vmatprep.subr.bf16.mxu0 %v3074_v4  ;;  %s3351_s17 = smov 40   ;;  %s3352_s19 = smov 8  }
  0x42   : > { %465 = vxpose.xlu0.b32.cont [2/4] (short) (narrow) %v461_v1, 64  ;;  %p4404_p11 = scmp.ne.s32.totalorder %s4389_s20, 0 }
  0x44   : > { %2795 = vmatpush3.bf16.msra.mxu0 %v3074_v4 }
  0x46   : > { %466 = vxpose.xlu0.b32.cont [3/4] (short) (narrow) %v462_v3, 64 }
  0x4a   : > { %467 = vxpose.xlu0.b32.end [4/4] (short) (narrow) %v463_v5, 64 }
  0xbe   : > { %v3547_v6 = vpop.trf.xlu0 }
  0xc2   : > { %v3549_v7 = vpop.trf.xlu0 }
  0xc3   : > { %4392 = vst [vmem:[#allocation12_spill] sm:$0xff] %v3549_v7  ;;  %v496_v8 = vpack.c.bf16 %v3549_v7, %v3547_v6 }
  0xc5   : > { %2796 = vmatprep.mubr.msk.bf16.mxu0 %vm523_vm0, %v496_v8 }
  0xc6   : > { %v3554_v9 = vpop.trf.xlu0 }
  0xca   : > { %v3556_v10 = vpop.trf.xlu0 }
  0xcb   : > { %4393 = vst [vmem:[#allocation13_spill] sm:$0xff] %v3556_v10  ;;  %v497_v11 = vpack.c.bf16 %v3556_v10, %v3554_v9 }
  0xcd   : > { %2797 = vmatmul.mubr.msk.bf16.vlgmr.msra.gmra.mrb[0].mxu0 %vm523_vm0, %v497_v11 }
  0xce   : > { %v3561_v12 = vpop.trf.xlu0 }
  0xcf   : > { %4394 = vst [vmem:[#allocation14_spill] sm:$0xff] %v3561_v12 }
  0xd2   : > { %v3563_v13 = vpop.trf.xlu0 }
  0xd3   : > { %4395 = vst [vmem:[#allocation15_spill] sm:$0xff] %v3563_v13  ;;  %v498_v14 = vpack.c.bf16 %v3563_v13, %v3561_v12 }
  0xd5   : > { %2800 = vmatprep.mubr.msk.bf16.mxu0 %vm523_vm0, %v498_v14 }
  0xd6   : > { %v3568_v15 = vpop.trf.xlu0 }
  0xd7   : > { %4396 = vst [vmem:[#allocation16_spill] sm:$0xff] %v3568_v15 }
  0xda   : > { %v3570_v16 = vpop.trf.xlu0 }
  0xdb   : > { %4397 = vst [vmem:[#allocation17_spill] sm:$0xff] %v3570_v16  ;;  %v499_v17 = vpack.c.bf16 %v3570_v16, %v3568_v15 }
  0xdd   : > { %2801 = vmatmul.mubr.msk.bf16.gmra.mrb[4].mxu0 %vm523_vm0, %v499_v17 }
 0x1a0   : > { %v2798_v19 = vpop.f32.mrb[0].mxu0 }
 0x1a1   : > { %v579_v20 = vadd.f32 %v2798_v19, %v2641_v18  ;;  %v570_v21 = vpop.f32.mrb[1].mxu0 }
 0x1a2   : > { %v571_v22 = vadd.f32 %v2641_v18, %v570_v21  ;;  %v2799_v23 = vpop.f32.mrb[2].mxu0 }
 0x1a3   : > { %v582_v24 = vadd.f32 %v2799_v23, %v2641_v18  ;;  %625 = vrot.lane.b32.xlu1 %v579_v20, %s3344_s15  ;;  %v573_v25 = vpop.f32.mrb[3].mxu0  ;;  %v603_v27 = vmul.f32 0.35355338, %v579_v20 }
 0x1a4   : > { %v574_v26 = vadd.f32 %v2641_v18, %v573_v25  ;;  %v601_v30 = vmul.f32 0.35355338, %v571_v22 }
 0x1a5   : > { %v604_v28 = vmul.f32 0.35355338, %v582_v24  ;;  %v3579_v29 = vpack.c.bf16 %v582_v24, %v579_v20 }
 0x1a6   : > { %v602_v31 = vmul.f32 0.35355338, %v574_v26  ;;  %v3581_v32 = vpack.c.bf16 %v574_v26, %v571_v22 }
 0x1a7   : > { %v3583_v33 = vpack.c.bf16 %v604_v28, %v603_v27  ;;  %621 = vrot.lane.b32.xlu1 %v571_v22, %s3344_s15 }
 0x1a8   : > { %v609_v34 = vpack.c.bf16 %v602_v31, %v601_v30 }
 0x1aa   : > { %2806 = vmatprep.mubr.msk.bf16.mxu1 %vm683_vm1, %v609_v34 }
 0x1ab   : > { %627 = vrot.lane.b32.xlu1 %v582_v24, %s3344_s15 }
 0x1af   : > { %623 = vrot.lane.b32.xlu1 %v574_v26, %s3344_s15 }
 0x1b0   : > { %v2802_v35 = vpop.f32.mrb[4].mxu0 }
 0x1b1   : > { %v595_v36 = vadd.f32 %v2802_v35, %v2641_v18  ;;  %v586_v37 = vpop.f32.mrb[5].mxu0 }
 0x1b2   : > { %v587_v38 = vadd.f32 %v2641_v18, %v586_v37  ;;  %v2803_v39 = vpop.f32.mrb[6].mxu0 }
 0x1b3   : > { %v598_v40 = vadd.f32 %v2803_v39, %v2641_v18  ;;  %633 = vrot.lane.b32.xlu1 %v595_v36, %s3344_s15  ;;  %v589_v41 = vpop.f32.mrb[7].mxu0  ;;  %v607_v43 = vmul.f32 0.35355338, %v595_v36 }
 0x1b4   : > { %v590_v42 = vadd.f32 %v2641_v18, %v589_v41  ;;  %629 = vrot.lane.b32.xlu0 %v587_v38, %s3344_s15  ;;  %v605_v46 = vmul.f32 0.35355338, %v587_v38 }
 0x1b5   : > { %v608_v44 = vmul.f32 0.35355338, %v598_v40  ;;  %v3591_v45 = vpack.c.bf16 %v598_v40, %v595_v36 }
 0x1b6   : > { %v606_v47 = vmul.f32 0.35355338, %v590_v42  ;;  %v3593_v48 = vpack.c.bf16 %v590_v42, %v587_v38 }
 0x1b7   : > { %v3595_v49 = vpack.c.bf16 %v608_v44, %v607_v43  ;;  %635 = vrot.lane.b32.xlu1 %v598_v40, %s3344_s15 }
 0x1b8   : > { %v3598_v50 = vpack.c.bf16 %v606_v47, %v605_v46  ;;  %955 = vrot.lane.b32.xlu0 %v609_v34, %s3345_s24 }
 0x1bb   : > { %631 = vrot.lane.b32.xlu1 %v590_v42, %s3344_s15 }
 0x1bc   : > { %957 = vrot.lane.b32.xlu0 %v3583_v33, %s3345_s24 }
 0x1c0   : > { %959 = vrot.lane.b32.xlu0 %v3598_v50, %s3345_s24 }
 0x1c4   : > { %961 = vrot.lane.b32.xlu0 %v3595_v49, %s3345_s24  ;;  %s3353_s24 = smov 16  }
 0x1c8   : > { %1226 = vrot.lane.b32.xlu0 %v609_v34, %s3346_s23 }
 0x1cc   : > { %1228 = vrot.lane.b32.xlu0 %v3583_v33, %s3346_s23 }
 0x1d0   : > { %1230 = vrot.lane.b32.xlu0 %v3598_v50, %s3346_s23 }
 0x1d4   : > { %1495 = vrot.lane.b32.xlu0 %v609_v34, %s3347_s18 }
 0x1d8   : > { %1497 = vrot.lane.b32.xlu0 %v3583_v33, %s3347_s18 }
 0x1dc   : > { %1499 = vrot.lane.b32.xlu0 %v3598_v50, %s3347_s18 }
 0x1e0   : > { %1501 = vrot.lane.b32.xlu0 %v3595_v49, %s3347_s18 }
 0x1e4   : > { %864 = vrot.lane.b32.xlu0 %v3579_v29, %s3348_s25 }
 0x1e8   : > { %1137 = vrot.lane.b32.xlu0 %v3581_v32, %s3349_s27 }
 0x1ec   : > { %1139 = vrot.lane.b32.xlu0 %v3579_v29, %s3349_s27 }
 0x1f0   : > { %1143 = vrot.lane.b32.xlu0 %v3591_v45, %s3349_s27 }
 0x1f4   : > { %1408 = vrot.lane.b32.xlu0 %v3579_v29, %s3350_s14 }
 0x215   : > { %v626_v51 = vpop.permute.xlu1 %625 }
 0x219   : > { %v622_v52 = vpop.permute.xlu1 %621 }
 0x21a   : > { %645 = vxpose.xlu1.b32.start [1/8] (short) (narrow) %v622_v52, 32 }
 0x21d   : > { %v628_v53 = vpop.permute.xlu1 %627 }
 0x221   : > { %v624_v54 = vpop.permute.xlu1 %623 }
 0x222   : > { %646 = vxpose.xlu1.b32.cont [2/8] (short) (narrow) %v624_v54, 32 }
 0x225   : > { %v634_v55 = vpop.permute.xlu1 %633 }
 0x226   : > { %647 = vxpose.xlu1.b32.cont [3/8] (short) (narrow) %v626_v51, 32  ;;  %v630_v56 = vpop.permute.xlu0 %629 }
 0x229   : > { %v636_v58 = vpop.permute.xlu1 %635 }
 0x22a   : > { %648 = vxpose.xlu1.b32.cont [4/8] (short) (narrow) %v628_v53, 32  ;;  %v956_v57 = vpop.permute.xlu0 %955 }
 0x22b   : > { %2832 = vmatprep.mubr.msk.bf16.mxu0 %vm683_vm1, %v956_v57 }
 0x22d   : > { %v632_v59 = vpop.permute.xlu1 %631 }
 0x22e   : > { %649 = vxpose.xlu1.b32.cont [5/8] (short) (narrow) %v630_v56, 32  ;;  %v958_v60 = vpop.permute.xlu0 %957 }
 0x232   : > { %650 = vxpose.xlu1.b32.cont [6/8] (short) (narrow) %v632_v59, 32  ;;  %v960_v61 = vpop.permute.xlu0 %959 }
 0x236   : > { %651 = vxpose.xlu1.b32.cont [7/8] (short) (narrow) %v634_v55, 32  ;;  %v962_v63 = vpop.permute.xlu0 %961 }
 0x23a   : > { %652 = vxpose.xlu1.b32.end [8/8] (short) (narrow) %v636_v58, 32  ;;  %v1227_v4 = vpop.permute.xlu0 %1226 }
 0x23e   : > { %v1229_v17 = vpop.permute.xlu0 %1228 }
 0x242   : > { %v1231_v20 = vpop.permute.xlu0 %1230 }
 0x246   : > { %v1496_v21 = vpop.permute.xlu0 %1495 }
 0x24a   : > { %v1498_v23 = vpop.permute.xlu0 %1497 }
 0x24e   : > { %v1500_v24 = vpop.permute.xlu0 %1499 }
 0x252   : > { %v1502_v25 = vpop.permute.xlu0 %1501 }
 0x256   : > { %v865_v28 = vpop.permute.xlu0 %864 }
 0x258   : > { %1232 = vrot.lane.b32.xlu1 %v3595_v49, %s3346_s23 }
 0x25c   : > { %862 = vrot.lane.b32.xlu1 %v3581_v32, %s3348_s25 }
 0x260   : > { %866 = vrot.lane.b32.xlu1 %v3593_v48, %s3348_s25 }
 0x264   : > { %868 = vrot.lane.b32.xlu1 %v3591_v45, %s3348_s25  ;;  %s3354_s25 = smov 24  }
 0x268   : > { %1141 = vrot.lane.b32.xlu1 %v3593_v48, %s3349_s27 }
 0x26c   : > { %1406 = vrot.lane.b32.xlu1 %v3581_v32, %s3350_s14 }
 0x270   : > { %1410 = vrot.lane.b32.xlu1 %v3593_v48, %s3350_s14 }
 0x29e   : > { %v661_v62 = vpop.trf.xlu1 }
 0x2a2   : > { %v662_v0 = vpop.trf.xlu1 }
 0x2a3   : > { %v677_v1 = vpack.c.bf16 %v662_v0, %v661_v62 }
 0x2a5   : > { %v964_v2 = vrot.slane %v677_v1, 4  ;;  %2948 = vmatprep.subr.msk.bf16.mxu1 %vm696_vm2, %v677_v1  ;;  %v698_v3 = vsel %vm696_vm2, %v677_v1, 0 }
 0x2a6   : > { %2805 = vmatpush3.bf16.msra.mxu1 %v698_v3  ;;  %v663_v5 = vpop.trf.xlu1 }
 0x2a7   : > { %2949 = vmatprep.subr.msk.bf16.mxu0 %vm696_vm2, %v964_v2  ;;  %v978_v8 = vsel %vm696_vm2, %v964_v2, 0 }
 0x2a8   : > { %2831 = vmatpush3.bf16.msra.mxu0 %v978_v8 }
 0x2a9   : > { %2807 = vmatmul.mubr.msk.bf16.vlgmr.msra.gmra.mrb[0].mxu1 %vm683_vm1, %v3583_v33  ;;  %v3654_v33 = vpop.permute.xlu0 %1137 }
 0x2aa   : > { %2810 = vmatprep.mubr.msk.bf16.mxu1 %vm683_vm1, %v3598_v50  ;;  %v664_v11 = vpop.trf.xlu1 }
 0x2ab   : > { %2833 = vmatmul.mubr.msk.bf16.vlgmr.msra.gmra.mrb[8].mxu0 %vm683_vm1, %v958_v60  ;;  %v678_v14 = vpack.c.bf16 %v664_v11, %v663_v5 }
 0x2ac   : > { %2836 = vmatprep.mubr.msk.bf16.mxu0 %vm683_vm1, %v960_v61 }
 0x2ad   : > { %v1504_v18 = vrot.slane %v678_v14, 4  ;;  %2950 = vmatprep.subr.msk.bf16.mxu0 %vm696_vm2, %v678_v14  ;;  %v1247_v19 = vsel %vm696_vm2, %v678_v14, 0 }
 0x2ae   : > { %2857 = vmatpush3.bf16.msra.mxu0 %v1247_v19 }
 0x2af   : > { %2951 = vmatprep.subr.msk.bf16.mxu0 %vm696_vm2, %v1504_v18  ;;  %v1518_v22 = vsel %vm696_vm2, %v1504_v18, 0 }
 0x2b1   : > { %2811 = vmatmul.mubr.msk.bf16.gmra.mrb[4].mxu1 %vm683_vm1, %v3595_v49 }
 0x2b3   : > { %2837 = vmatmul.mubr.msk.bf16.gmra.mrb[12].mxu0 %vm683_vm1, %v962_v63 }
 0x2b4   : > { %2858 = vmatprep.mubr.msk.bf16.mxu0 %vm683_vm1, %v1227_v4 }
 0x2bb   : > { %2859 = vmatmul.mubr.msk.bf16.vlgmr.msra.gmra.mrb[16].mxu0 %vm683_vm1, %v1229_v17 }
 0x2bc   : > { %2862 = vmatprep.mubr.msk.bf16.mxu0 %vm683_vm1, %v1231_v20  ;;  %2883 = vmatpush3.bf16.msra.mxu0 %v1518_v22 }
 0x2ca   : > { %v1233_v26 = vpop.permute.xlu1 %1232 }
 0x2cb   : > { %2863 = vmatmul.mubr.msk.bf16.gmra.mrb[20].mxu0 %vm683_vm1, %v1233_v26 }
 0x2cc   : > { %2884 = vmatprep.mubr.msk.bf16.mxu0 %vm683_vm1, %v1496_v21 }
 0x2ce   : > { %v863_v27 = vpop.permute.xlu1 %862 }
 0x2cf   : > { %2814 = vmatprep.subr.bf16.mxu1 %v863_v27 }
 0x2d0   : > { %2815 = vmatpush3.bf16.msra.mxu1 %v863_v27 }
 0x2d1   : > { %2816 = vmatprep.subr.bf16.mxu1 %v865_v28 }
 0x2d2   : > { %v867_v30 = vpop.permute.xlu1 %866 }
 0x2d3   : > { %2885 = vmatmul.mubr.msk.bf16.vlgmr.msra.gmra.mrb[24].mxu0 %vm683_vm1, %v1498_v23 }
 0x2d4   : > { %2817 = vmatpush3.bf16.msra.mxu1 %v865_v28  ;;  %2888 = vmatprep.mubr.msk.bf16.mxu0 %vm683_vm1, %v1500_v24 }
 0x2d5   : > { %2818 = vmatprep.subr.bf16.mxu1 %v867_v30 }
 0x2d6   : > { %v869_v31 = vpop.permute.xlu1 %868 }
 0x2d8   : > { %2819 = vmatpush3.bf16.msra.mxu1 %v867_v30 }
 0x2d9   : > { %2820 = vmatprep.subr.bf16.mxu1 %v869_v31 }
 0x2db   : > { %2889 = vmatmul.mubr.msk.bf16.gmra.mrb[28].mxu0 %vm683_vm1, %v1502_v25 }
 0x2dc   : > { %2821 = vmatpush3.bf16.msra.mxu1 %v869_v31 }
 0x2dd   : > { %2840 = vmatprep.subr.bf16.mxu1 %v3654_v33 }
 0x37c   : > { %v3657_v34 = vpop.f32.mrb[0].mxu1 }
 0x37d   : > { %v3659_v35 = vpop.f32.mrb[1].mxu1  ;;  %v772_v36 = vsel %vm765_vm3, %v3657_v34, -inf }
 0x37e   : > { %v3663_v37 = vpop.f32.mrb[2].mxu1  ;;  %v3665_v38 = vpop.f32.mrb[8].mxu0  ;;  %773 = vmax.xlane.f32.xlu0 %v772_v36  ;;  %v766_v44 = vsel %vm765_vm3, %v3659_v35, -inf }
 0x37f   : > { %v3667_v39 = vpop.f32.mrb[3].mxu1  ;;  %v3669_v40 = vpop.f32.mrb[9].mxu0  ;;  %v1051_v41 = vsel %vm765_vm3, %v3665_v38, -inf  ;;  %v775_v50 = vsel %vm765_vm3, %v3663_v37, -inf }
 0x380   : > { %v3673_v42 = vpop.f32.mrb[10].mxu0  ;;  %1052 = vmax.xlane.f32.xlu1 %v1051_v41  ;;  %v769_v46 = vsel %vm765_vm3, %v3667_v39, -inf  ;;  %v1045_v55 = vsel %vm765_vm3, %v3669_v40, -inf }
 0x381   : > { %v3675_v43 = vpop.f32.mrb[11].mxu0  ;;  %v1054_v58 = vsel %vm765_vm3, %v3673_v42, -inf }
 0x382   : > { %767 = vmax.xlane.f32.xlu0 %v766_v44  ;;  %v1048_v60 = vsel %vm765_vm3, %v3675_v43, -inf }
 0x384   : > { %770 = vmax.xlane.f32.xlu1 %v769_v46  ;;  %v3681_v47 = vpop.f32.mrb[4].mxu1 }
 0x385   : > { %v3683_v49 = vpop.f32.mrb[5].mxu1  ;;  %v784_v59 = vsel %vm765_vm3, %v3681_v47, -inf }
 0x386   : > { %776 = vmax.xlane.f32.xlu0 %v775_v50  ;;  %v3687_v51 = vpop.f32.mrb[6].mxu1  ;;  %v3689_v52 = vpop.f32.mrb[12].mxu0  ;;  %v778_v2 = vsel %vm765_vm3, %v3683_v49, -inf }
 0x387   : > { %v3691_v53 = vpop.f32.mrb[7].mxu1  ;;  %v3693_v54 = vpop.f32.mrb[13].mxu0  ;;  %v1063_v63 = vsel %vm765_vm3, %v3689_v52, -inf  ;;  %v787_v4 = vsel %vm765_vm3, %v3687_v51, -inf }
 0x388   : > { %1046 = vmax.xlane.f32.xlu1 %v1045_v55  ;;  %v3697_v56 = vpop.f32.mrb[14].mxu0  ;;  %v1057_v3 = vsel %vm765_vm3, %v3693_v54, -inf  ;;  %v781_v8 = vsel %vm765_vm3, %v3691_v53, -inf }
 0x389   : > { %v3699_v57 = vpop.f32.mrb[15].mxu0  ;;  %v1066_v14 = vsel %vm765_vm3, %v3697_v56, -inf }
 0x38a   : > { %1055 = vmax.xlane.f32.xlu0 %v1054_v58  ;;  %v1060_v22 = vsel %vm765_vm3, %v3699_v57, -inf }
 0x38c   : > { %785 = vmax.xlane.f32.xlu1 %v784_v59 }
 0x38e   : > { %1049 = vmax.xlane.f32.xlu0 %v1048_v60  ;;  %v3707_v61 = vpop.f32.mrb[16].mxu0 }
 0x38f   : > { %v3709_v62 = vpop.f32.mrb[17].mxu0  ;;  %v1320_v5 = vsel %vm765_vm3, %v3707_v61, -inf }
 0x390   : > { %v3713_v0 = vpop.f32.mrb[18].mxu0  ;;  %1064 = vmax.xlane.f32.xlu1 %v1063_v63  ;;  %v1314_v11 = vsel %vm765_vm3, %v3709_v62, -inf }
 0x391   : > { %v3715_v1 = vpop.f32.mrb[19].mxu0  ;;  %v1323_v24 = vsel %vm765_vm3, %v3713_v0, -inf }
 0x392   : > { %779 = vmax.xlane.f32.xlu0 %v778_v2  ;;  %v1317_v31 = vsel %vm765_vm3, %v3715_v1, -inf }
 0x394   : > { %1058 = vmax.xlane.f32.xlu1 %v1057_v3 }
 0x396   : > { %788 = vmax.xlane.f32.xlu0 %v787_v4 }
 0x398   : > { %1321 = vmax.xlane.f32.xlu1 %v1320_v5  ;;  %v3791_v5 = vpop.permute.xlu0 %1139 }
 0x39a   : > { %782 = vmax.xlane.f32.xlu0 %v781_v8  ;;  %v3793_v8 = vpop.permute.xlu1 %1141 }
 0x39c   : > { %1315 = vmax.xlane.f32.xlu1 %v1314_v11  ;;  %v3795_v11 = vpop.permute.xlu0 %1143 }
 0x39e   : > { %v3731_v17 = vpop.f32.mrb[20].mxu0  ;;  %1067 = vmax.xlane.f32.xlu0 %v1066_v14  ;;  %v3797_v14 = vpop.permute.xlu1 %1406 }
 0x39f   : > { %v3733_v18 = vpop.f32.mrb[21].mxu0  ;;  %v1332_v19 = vsel %vm765_vm3, %v3731_v17, -inf }
 0x3a0   : > { %v3737_v20 = vpop.f32.mrb[22].mxu0  ;;  %1333 = vmax.xlane.f32.xlu1 %v1332_v19  ;;  %v1326_v23 = vsel %vm765_vm3, %v3733_v18, -inf  ;;  %v3799_v19 = vpop.permute.xlu0 %1408 }
 0x3a1   : > { %v3739_v21 = vpop.f32.mrb[23].mxu0  ;;  %v1335_v41 = vsel %vm765_vm3, %v3737_v20, -inf }
 0x3a2   : > { %1061 = vmax.xlane.f32.xlu0 %v1060_v22  ;;  %v1329_v59 = vsel %vm765_vm3, %v3739_v21, -inf  ;;  %v3801_v22 = vpop.permute.xlu1 %1410 }
 0x3a4   : > { %1327 = vmax.xlane.f32.xlu1 %v1326_v23 }
 0x3a6   : > { %v3747_v25 = vpop.f32.mrb[24].mxu0  ;;  %1324 = vmax.xlane.f32.xlu0 %v1323_v24 }
 0x3a7   : > { %v3749_v26 = vpop.f32.mrb[25].mxu0  ;;  %v1591_v27 = vsel %vm765_vm3, %v3747_v25, -inf }
 0x3a8   : > { %v3753_v28 = vpop.f32.mrb[26].mxu0  ;;  %1592 = vmax.xlane.f32.xlu1 %v1591_v27  ;;  %v1585_v36 = vsel %vm765_vm3, %v3749_v26, -inf }
 0x3a9   : > { %v3755_v30 = vpop.f32.mrb[27].mxu0  ;;  %v1594_v63 = vsel %vm765_vm3, %v3753_v28, -inf }
 0x3aa   : > { %1318 = vmax.xlane.f32.xlu0 %v1317_v31  ;;  %v1588_v2 = vsel %vm765_vm3, %v3755_v30, -inf }
 0x3ac   : > { %1586 = vmax.xlane.f32.xlu1 %v1585_v36 }
 0x3ae   : > { %v3763_v44 = vpop.f32.mrb[28].mxu0  ;;  %1336 = vmax.xlane.f32.xlu0 %v1335_v41 }
 0x3af   : > { %v3765_v46 = vpop.f32.mrb[29].mxu0  ;;  %v1603_v50 = vsel %vm765_vm3, %v3763_v44, -inf }
 0x3b0   : > { %v3769_v55 = vpop.f32.mrb[30].mxu0  ;;  %1604 = vmax.xlane.f32.xlu1 %v1603_v50  ;;  %v1597_v60 = vsel %vm765_vm3, %v3765_v46, -inf }
 0x3b1   : > { %v3771_v58 = vpop.f32.mrb[31].mxu0  ;;  %v1606_v3 = vsel %vm765_vm3, %v3769_v55, -inf }
 0x3b2   : > { %1330 = vmax.xlane.f32.xlu0 %v1329_v59  ;;  %v1600_v4 = vsel %vm765_vm3, %v3771_v58, -inf }
 0x3b4   : > { %1598 = vmax.xlane.f32.xlu1 %v1597_v60 }
 0x3b6   : > { %1595 = vmax.xlane.f32.xlu0 %v1594_v63 }
 0x3ba   : > { %1589 = vmax.xlane.f32.xlu0 %v1588_v2 }
 0x3be   : > { %1607 = vmax.xlane.f32.xlu0 %v1606_v3 }
 0x3c2   : > { %1601 = vmax.xlane.f32.xlu0 %v1600_v4 }
 0x3c5   : > { %1677 = vrot.lane.b32.xlu1 %v3581_v32, %s3351_s17 }
 0x3c9   : > { %1679 = vrot.lane.b32.xlu1 %v3579_v29, %s3351_s17 }
 0x3d8   : > { %1412 = vrot.lane.b32.xlu0 %v3591_v45, %s3350_s14  ;;  %s2713_s14 = sshll.u32 %s3448_s29, 9  ;;  %s3355_s29 = smov [#allocation5]  }
 0x3d9   : > { %s4312_s15 = scalar_lea.hbm %s4371_s13, %s2713_s14  ;;  %s3277_s23 = sshll.u32 %s3355_s29, 4  ;;  %s3278_s23 = int_to_ptr.vmem [resolvable:$false] %s3277_s23 }
 0x3da   : > { %s3279_s18 = scalar_lea.vmem %s3278_s23, 1024 }
 0x40b   : > { %v774_v23 = vpop.xlane.xlu0 %773 }
 0x40c   : > { %v792_v32 = vsub.f32 %v3657_v34, %v774_v23 }
 0x40d   : > { %v1053_v24 = vpop.xlane.xlu1 %1052 }
 0x40e   : > { %v802_v29 = vmul.f32 1.442695, %v792_v32  ;;  %v1071_v41 = vsub.f32 %v3665_v38, %v1053_v24 }
 0x40f   : > { %v768_v27 = vpop.xlane.xlu0 %767 }
 0x410   : > { %3083 = vpow2.f32 %v802_v29  ;;  %v790_v31 = vsub.f32 %v3659_v35, %v768_v27  ;;  %v1081_v3 = vmul.f32 1.442695, %v1071_v41 }
 0x411   : > { %v771_v36 = vpop.xlane.xlu1 %770 }
 0x412   : > { %v798_v50 = vmul.f32 1.442695, %v790_v31  ;;  %v791_v63 = vsub.f32 %v3667_v39, %v771_v36 }
 0x413   : > { %v777_v59 = vpop.xlane.xlu0 %776 }
 0x414   : > { %3085 = vpow2.f32 %v798_v50  ;;  %v793_v60 = vsub.f32 %v3663_v37, %v777_v59  ;;  %v800_v23 = vmul.f32 1.442695, %v791_v63 }
 0x415   : > { %v1047_v2 = vpop.xlane.xlu1 %1046 }
 0x416   : > { %v804_v4 = vmul.f32 1.442695, %v793_v60  ;;  %v1069_v35 = vsub.f32 %v3669_v40, %v1047_v2 }
 0x417   : > { %v1056_v34 = vpop.xlane.xlu0 %1055 }
 0x418   : > { %3087 = vpow2.f32 %v804_v4  ;;  %v1072_v39 = vsub.f32 %v3673_v42, %v1056_v34  ;;  %v1077_v41 = vmul.f32 1.442695, %v1069_v35 }
 0x419   : > { %v786_v32 = vpop.xlane.xlu1 %785  ;;  %3089 = vpow2.f32 %v1081_v3 }
 0x41a   : > { %v3808_v29 = vpop.eup %3083  ;;  %v796_v38 = vsub.f32 %v3681_v47, %v786_v32  ;;  %3091 = vpow2.f32 %v800_v23  ;;  %v1083_v60 = vmul.f32 1.442695, %v1072_v39 }
 0x41b   : > { %v1050_v24 = vpop.xlane.xlu0 %1049  ;;  %v820_v37 = vsel %vm765_vm3, %v3808_v29, 0.0 }
 0x41c   : > { %v810_v27 = vmul.f32 1.442695, %v796_v38  ;;  %821 = vadd.xlane.f32.xlu1 %v820_v37  ;;  %v1070_v63 = vsub.f32 %v3675_v43, %v1050_v24 }
 0x41d   : > { %v1065_v31 = vpop.xlane.xlu1 %1064 }
 0x41e   : > { %v3815_v36 = vpop.eup %3085  ;;  %3093 = vpow2.f32 %v810_v27  ;;  %v1075_v50 = vsub.f32 %v3689_v52, %v1065_v31 }
 0x41f   : > { %v780_v59 = vpop.xlane.xlu0 %779  ;;  %v814_v40 = vsel %vm765_vm3, %v3815_v36, 0.0  ;;  %3095 = vpow2.f32 %v1077_v41 }
 0x420   : > { %v794_v47 = vsub.f32 %v3683_v49, %v780_v59  ;;  %815 = vadd.xlane.f32.xlu1 %v814_v40  ;;  %v1089_v42 = vmul.f32 1.442695, %v1075_v50  ;;  %v1079_v49 = vmul.f32 1.442695, %v1070_v63 }
 0x421   : > { %v1059_v2 = vpop.xlane.xlu1 %1058 }
 0x422   : > { %v3822_v3 = vpop.eup %3087  ;;  %v806_v4 = vmul.f32 1.442695, %v794_v47  ;;  %v1073_v34 = vsub.f32 %v3693_v54, %v1059_v2 }
 0x423   : > { %v789_v23 = vpop.xlane.xlu0 %788  ;;  %v823_v52 = vsel %vm765_vm3, %v3822_v3, 0.0  ;;  %v3827_v32 = vpop.eup %3089 }
 0x424   : > { %3097 = vpow2.f32 %v806_v4  ;;  %824 = vadd.xlane.f32.xlu0 %v823_v52  ;;  %v1085_v43 = vmul.f32 1.442695, %v1073_v34  ;;  %v797_v38 = vsub.f32 %v3687_v51, %v789_v23  ;;  %v3830_v24 = vpop.eup %3091  ;;  %v1099_v54 = vsel %vm765_vm3, %v3827_v32, 0.0 }
 0x425   : > { %3099 = vpow2.f32 %v1083_v60  ;;  %v1322_v35 = vpop.xlane.xlu1 %1321  ;;  %v817_v40 = vsel %vm765_vm3, %v3830_v24, 0.0 }
 0x426   : > { %3101 = vpow2.f32 %v1089_v42  ;;  %v1340_v39 = vsub.f32 %v3707_v61, %v1322_v35  ;;  %v812_v50 = vmul.f32 1.442695, %v797_v38 }
 0x427   : > { %v783_v37 = vpop.xlane.xlu0 %782  ;;  %3103 = vpow2.f32 %v1079_v49 }
 0x428   : > { %v3834_v27 = vpop.eup %3093  ;;  %1100 = vadd.xlane.f32.xlu0 %v1099_v54  ;;  %3105 = vpow2.f32 %v1085_v43  ;;  %v795_v51 = vsub.f32 %v3691_v53, %v783_v37  ;;  %v1350_v63 = vmul.f32 1.442695, %v1340_v39 }
 0x429   : > { %v1316_v31 = vpop.xlane.xlu1 %1315  ;;  %v832_v41 = vsel %vm765_vm3, %v3834_v27, 0.0  ;;  %v3842_v47 = vpop.eup %3095  ;;  %3107 = vpow2.f32 %v812_v50 }
 0x42a   : > { %833 = vadd.xlane.f32.xlu1 %v832_v41  ;;  %v1338_v61 = vsub.f32 %v3709_v62, %v1316_v31  ;;  %v808_v4 = vmul.f32 1.442695, %v795_v51  ;;  %v1093_v49 = vsel %vm765_vm3, %v3842_v47, 0.0 }
 0x42b   : > { %v1068_v59 = vpop.xlane.xlu0 %1067 }
 0x42c   : > { %v1076_v60 = vsub.f32 %v3697_v56, %v1068_v59  ;;  %818 = vadd.xlane.f32.xlu0 %v817_v40  ;;  %v1346_v35 = vmul.f32 1.442695, %v1338_v61 }
 0x42d   : > { %v1334_v2 = vpop.xlane.xlu1 %1333 }
 0x42e   : > { %v3846_v42 = vpop.eup %3097  ;;  %v1091_v34 = vmul.f32 1.442695, %v1076_v60  ;;  %v1344_v50 = vsub.f32 %v3731_v17, %v1334_v2 }
 0x42f   : > { %v3848_v53 = vpop.eup %3099  ;;  %v1062_v23 = vpop.xlane.xlu0 %1061  ;;  %v826_v52 = vsel %vm765_vm3, %v3846_v42, 0.0 }
 0x430   : > { %v3854_v56 = vpop.eup %3101  ;;  %3109 = vpow2.f32 %v1091_v34  ;;  %v1074_v62 = vsub.f32 %v3699_v57, %v1062_v23  ;;  %827 = vadd.xlane.f32.xlu1 %v826_v52  ;;  %1094 = vadd.xlane.f32.xlu0 %v1093_v49  ;;  %v1102_v31 = vsel %vm765_vm3, %v3848_v53, 0.0  ;;  %v1358_v34 = vmul.f32 1.442695, %v1344_v50 }
 0x431   : > { %3111 = vpow2.f32 %v1350_v63  ;;  %v1328_v43 = vpop.xlane.xlu1 %1327  ;;  %v3857_v37 = vpop.eup %3103  ;;  %v1111_v39 = vsel %vm765_vm3, %v3854_v56, 0.0 }
 0x432   : > { %3113 = vpow2.f32 %v808_v4  ;;  %v1087_v38 = vmul.f32 1.442695, %v1074_v62  ;;  %v3863_v41 = vpop.eup %3105  ;;  %v1342_v59 = vsub.f32 %v3733_v18, %v1328_v43  ;;  %v1096_v61 = vsel %vm765_vm3, %v3857_v37, 0.0 }
 0x433   : > { %v1325_v54 = vpop.xlane.xlu0 %1324  ;;  %3115 = vpow2.f32 %v1346_v35  ;;  %v1105_v63 = vsel %vm765_vm3, %v3863_v41, 0.0  ;;  %v3872_v4 = vpop.eup %3107 }
 0x434   : > { %v1341_v57 = vsub.f32 %v3713_v0, %v1325_v54  ;;  %1112 = vadd.xlane.f32.xlu1 %v1111_v39  ;;  %1103 = vadd.xlane.f32.xlu0 %v1102_v31  ;;  %3117 = vpow2.f32 %v1087_v38  ;;  %v1354_v23 = vmul.f32 1.442695, %v1342_v59  ;;  %v835_v62 = vsel %vm765_vm3, %v3872_v4, 0.0 }
 0x435   : > { %v1593_v51 = vpop.xlane.xlu1 %1592 }
 0x436   : > { %v1352_v40 = vmul.f32 1.442695, %v1341_v57  ;;  %v1611_v38 = vsub.f32 %v3747_v25, %v1593_v51 }
 0x437   : > { %v1319_v60 = vpop.xlane.xlu0 %1318 }
 0x438   : > { %v1339_v0 = vsub.f32 %v3715_v1, %v1319_v60  ;;  %1106 = vadd.xlane.f32.xlu1 %v1105_v63  ;;  %1097 = vadd.xlane.f32.xlu0 %v1096_v61  ;;  %3119 = vpow2.f32 %v1352_v40  ;;  %v1621_v25 = vmul.f32 1.442695, %v1611_v38 }
 0x439   : > { %v1587_v17 = vpop.xlane.xlu1 %1586 }
 0x43a   : > { %v3875_v2 = vpop.eup %3109  ;;  %v1348_v18 = vmul.f32 1.442695, %v1339_v0  ;;  %v1609_v39 = vsub.f32 %v3749_v26, %v1587_v17 }
 0x43b   : > { %v3877_v52 = vpop.eup %3111  ;;  %v1337_v49 = vpop.xlane.xlu0 %1336  ;;  %v1114_v35 = vsel %vm765_vm3, %v3875_v2, 0.0 }
 0x43c   : > { %v3883_v43 = vpop.eup %3113  ;;  %3121 = vpow2.f32 %v1348_v18  ;;  %v1345_v1 = vsub.f32 %v3737_v20, %v1337_v49  ;;  %836 = vadd.xlane.f32.xlu0 %v835_v62  ;;  %1115 = vadd.xlane.f32.xlu1 %v1114_v35  ;;  %v1368_v40 = vsel %vm765_vm3, %v3877_v52, 0.0  ;;  %v1617_v51 = vmul.f32 1.442695, %v1609_v39 }
 0x43d   : > { %3123 = vpow2.f32 %v1358_v34  ;;  %v1605_v54 = vpop.xlane.xlu1 %1604  ;;  %v3888_v57 = vpop.eup %3115  ;;  %v829_v59 = vsel %vm765_vm3, %v3883_v43, 0.0 }
 0x43e   : > { %3125 = vpow2.f32 %v1354_v23  ;;  %v1360_v31 = vmul.f32 1.442695, %v1345_v1  ;;  %v3894_v20 = vpop.eup %3117  ;;  %v1362_v0 = vsel %vm765_vm3, %v3888_v57, 0.0 }
 0x43f   : > { %v1331_v50 = vpop.xlane.xlu0 %1330  ;;  %v1108_v34 = vsel %vm765_vm3, %v3894_v20, 0.0 }
 0x440   : > { %v1343_v60 = vsub.f32 %v3739_v21, %v1331_v50  ;;  %830 = vadd.xlane.f32.xlu0 %v829_v59  ;;  %1369 = vadd.xlane.f32.xlu1 %v1368_v40  ;;  %3127 = vpow2.f32 %v1360_v31  ;;  %v1615_v21 = vsub.f32 %v3763_v44, %v1605_v54 }
 0x441   : > { %v1599_v63 = vpop.xlane.xlu1 %1598 }
 0x442   : > { %v1356_v26 = vmul.f32 1.442695, %v1343_v60  ;;  %v3901_v17 = vpop.eup %3119  ;;  %v1613_v49 = vsub.f32 %v3765_v46, %v1599_v63  ;;  %v1629_v44 = vmul.f32 1.442695, %v1615_v21 }
 0x443   : > { %v1596_v61 = vpop.xlane.xlu0 %1595  ;;  %v1371_v38 = vsel %vm765_vm3, %v3901_v17, 0.0 }
 0x444   : > { %3129 = vpow2.f32 %v1356_v26  ;;  %v1612_v23 = vsub.f32 %v3753_v28, %v1596_v61  ;;  %1363 = vadd.xlane.f32.xlu1 %v1362_v0  ;;  %1109 = vadd.xlane.f32.xlu0 %v1108_v34  ;;  %v1625_v54 = vmul.f32 1.442695, %v1613_v49 }
 0x445   : > { %3131 = vpow2.f32 %v1621_v25 }
 0x446   : > { %v3905_v18 = vpop.eup %3121  ;;  %3133 = vpow2.f32 %v1617_v51  ;;  %v1623_v62 = vmul.f32 1.442695, %v1612_v23 }
 0x447   : > { %v3908_v35 = vpop.eup %3123  ;;  %v1590_v1 = vpop.xlane.xlu0 %1589  ;;  %v1365_v28 = vsel %vm765_vm3, %v3905_v18, 0.0 }
 0x448   : > { %v3914_v39 = vpop.eup %3125  ;;  %v1610_v31 = vsub.f32 %v3755_v30, %v1590_v1  ;;  %1372 = vadd.xlane.f32.xlu1 %v1371_v38  ;;  %1366 = vadd.xlane.f32.xlu0 %v1365_v28  ;;  %3135 = vpow2.f32 %v1623_v62  ;;  %v1380_v40 = vsel %vm765_vm3, %v3908_v35, 0.0 }
 0x449   : > { %v1374_v59 = vsel %vm765_vm3, %v3914_v39, 0.0 }
 0x44a   : > { %v1619_v46 = vmul.f32 1.442695, %v1610_v31  ;;  %v3921_v60 = vpop.eup %3127 }
 0x44b   : > { %v1608_v50 = vpop.xlane.xlu0 %1607  ;;  %v1383_v61 = vsel %vm765_vm3, %v3921_v60, 0.0 }
 0x44c   : > { %3137 = vpow2.f32 %v1619_v46  ;;  %v1616_v25 = vsub.f32 %v3769_v55, %v1608_v50  ;;  %1375 = vadd.xlane.f32.xlu1 %v1374_v59  ;;  %1381 = vadd.xlane.f32.xlu0 %v1380_v40 }
 0x44d   : > { %3139 = vpow2.f32 %v1629_v44 }
 0x44e   : > { %v3924_v30 = vpop.eup %3129  ;;  %3141 = vpow2.f32 %v1625_v54  ;;  %v1631_v51 = vmul.f32 1.442695, %v1616_v25  ;;  %v3967_v25 = vpop.permute.xlu1 %1677 }
 0x44f   : > { %v3926_v26 = vpop.eup %3131  ;;  %v1602_v63 = vpop.xlane.xlu0 %1601  ;;  %v1377_v0 = vsel %vm765_vm3, %v3924_v30, 0.0 }
 0x450   : > { %v3932_v34 = vpop.eup %3133  ;;  %v1614_v55 = vsub.f32 %v3771_v58, %v1602_v63  ;;  %1384 = vadd.xlane.f32.xlu1 %v1383_v61  ;;  %1378 = vadd.xlane.f32.xlu0 %v1377_v0  ;;  %3143 = vpow2.f32 %v1631_v51  ;;  %v1639_v49 = vsel %vm765_vm3, %v3926_v26, 0.0 }
 0x451   : > { %v1633_v21 = vsel %vm765_vm3, %v3932_v34, 0.0 }
 0x452   : > { %v1627_v23 = vmul.f32 1.442695, %v1614_v55  ;;  %v3939_v62 = vpop.eup %3135  ;;  %v3969_v51 = vpop.permute.xlu1 %1679 }
 0x453   : > { %v1642_v58 = vsel %vm765_vm3, %v3939_v62, 0.0  ;;  %v3971_v63 = vpop.permute.xlu0 %1412 }
 0x454   : > { %3145 = vpow2.f32 %v1627_v23  ;;  %1634 = vadd.xlane.f32.xlu1 %v1633_v21  ;;  %1640 = vadd.xlane.f32.xlu0 %v1639_v49 }
 0x456   : > { %v3941_v1 = vpop.eup %3137 }
 0x457   : > { %v3943_v38 = vpop.eup %3139  ;;  %v1636_v28 = vsel %vm765_vm3, %v3941_v1, 0.0 }
 0x458   : > { %v3949_v31 = vpop.eup %3141  ;;  %1643 = vadd.xlane.f32.xlu1 %v1642_v58  ;;  %1637 = vadd.xlane.f32.xlu0 %v1636_v28  ;;  %v1651_v54 = vsel %vm765_vm3, %v3943_v38, 0.0 }
 0x459   : > { %v1645_v44 = vsel %vm765_vm3, %v3949_v31, 0.0 }
 0x45a   : > { %v3955_v46 = vpop.eup %3143 }
 0x45b   : > { %v1654_v59 = vsel %vm765_vm3, %v3955_v46, 0.0 }
 0x45c   : > { %1646 = vadd.xlane.f32.xlu1 %v1645_v44  ;;  %1652 = vadd.xlane.f32.xlu0 %v1651_v54 }
 0x45e   : > { %v3957_v50 = vpop.eup %3145 }
 0x45f   : > { %v1648_v40 = vsel %vm765_vm3, %v3957_v50, 0.0 }
 0x460   : > { %1655 = vadd.xlane.f32.xlu1 %v1654_v59  ;;  %1649 = vadd.xlane.f32.xlu0 %v1648_v40 }
 0x471   : > { %1683 = vrot.lane.b32.xlu1 %v3591_v45, %s3351_s17 }
 0x476   : > { %1681 = vrot.lane.b32.xlu0 %v3593_v48, %s3351_s17 }
 0x4a9   : > { %v822_v61 = vpop.xlane.xlu1 %821 }
 0x4ad   : > { %v816_v55 = vpop.xlane.xlu1 %815 }
 0x4b1   : > { %v825_v0 = vpop.xlane.xlu0 %824 }
 0x4b2   : > { %3147 = vrcp.f32 %v825_v0 }
 0x4b3   : > { %3149 = vrcp.f32 %v816_v55 }
 0x4b4   : > { %3151 = vrcp.f32 %v822_v61 }
 0x4b5   : > { %v1101_v23 = vpop.xlane.xlu0 %1100 }
 0x4b7   : > { %v834_v21 = vpop.xlane.xlu1 %833 }
 0x4b9   : > { %v819_v49 = vpop.xlane.xlu0 %818 }
 0x4ba   : > { %3153 = vrcp.f32 %v819_v49 }
 0x4bb   : > { %3155 = vrcp.f32 %v834_v21 }
 0x4bc   : > { %v3148_v28 = vpop.eup %3147 }
 0x4bd   : > { %v828_v45 = vpop.xlane.xlu1 %827  ;;  %v1095_v58 = vpop.xlane.xlu0 %1094  ;;  %v849_v16 = vmul.f32 %v3148_v28, %v3822_v3 }
 0x4be   : > { %v3150_v54 = vpop.eup %3149  ;;  %3157 = vrcp.f32 %v828_v45 }
 0x4bf   : > { %v3152_v59 = vpop.eup %3151  ;;  %v846_v12 = vmul.f32 %v3150_v54, %v3815_v36 }
 0x4c0   : > { %v848_v61 = vmul.f32 %v3152_v59, %v3808_v29 }
 0x4c1   : > { %v1113_v48 = vpop.xlane.xlu1 %1112  ;;  %v1104_v44 = vpop.xlane.xlu0 %1103 }
 0x4c2   : > { %v855_v49 = vpack.c.bf16 %v849_v16, %v848_v61 }
 0x4c4   : > { %v3154_v40 = vpop.eup %3153 }
 0x4c5   : > { %v1107_v13 = vpop.xlane.xlu1 %1106  ;;  %v1098_v15 = vpop.xlane.xlu0 %1097  ;;  %v847_v0 = vmul.f32 %v3154_v40, %v3830_v24 }
 0x4c6   : > { %v3156_v29 = vpop.eup %3155 }
 0x4c7   : > { %v854_v55 = vpack.c.bf16 %v847_v0, %v846_v12 }
 0x4c9   : > { %v1116_v10 = vpop.xlane.xlu1 %1115  ;;  %2822 = vmatprep.mubr.msk.bf16.mxu1 %vm765_vm3, %v854_v55  ;;  %v837_v7 = vpop.xlane.xlu0 %836 }
 0x4ca   : > { %2823 = vmatmul.mubr.msk.bf16.vlgmr.msra.gmra.mrb[8].mxu1 %vm765_vm3, %v855_v49  ;;  %3159 = vrcp.f32 %v837_v7  ;;  %v3158_v7 = vpop.eup %3157 }
 0x4cb   : > { %2841 = vmatpush3.bf16.msra.mxu1 %v3654_v33  ;;  %3161 = vrcp.f32 %v1098_v15  ;;  %v850_v28 = vmul.f32 %v3158_v7, %v3846_v42 }
 0x4cc   : > { %2842 = vmatprep.subr.bf16.mxu1 %v3791_v5  ;;  %3163 = vrcp.f32 %v1095_v58 }
 0x4cd   : > { %v1370_v36 = vpop.xlane.xlu1 %1369  ;;  %v831_v3 = vpop.xlane.xlu0 %830 }
 0x4ce   : > { %3165 = vrcp.f32 %v831_v3 }
 0x4cf   : > { %2843 = vmatpush3.bf16.msra.mxu1 %v3791_v5  ;;  %3167 = vrcp.f32 %v1104_v44 }
 0x4d0   : > { %2844 = vmatprep.subr.bf16.mxu1 %v3793_v8 }
 0x4d1   : > { %v1364_v12 = vpop.xlane.xlu1 %1363  ;;  %v1110_v16 = vpop.xlane.xlu0 %1109 }
 0x4d2   : > { %3169 = vrcp.f32 %v1110_v16 }
 0x4d3   : > { %2845 = vmatpush3.bf16.msra.mxu1 %v3793_v8  ;;  %3171 = vrcp.f32 %v1101_v23  ;;  %v852_v23 = vmul.f32 %v3156_v29, %v3834_v27 }
 0x4d4   : > { %2846 = vmatprep.subr.bf16.mxu1 %v3795_v11  ;;  %v3160_v24 = vpop.eup %3159  ;;  %3173 = vrcp.f32 %v1107_v13 }
 0x4d5   : > { %v1373_v33 = vpop.xlane.xlu1 %1372  ;;  %v1367_v15 = vpop.xlane.xlu0 %1366  ;;  %v853_v8 = vmul.f32 %v3160_v24, %v3872_v4  ;;  %3175 = vrcp.f32 %v1116_v10 }
 0x4d6   : > { %v3162_v21 = vpop.eup %3161  ;;  %3177 = vrcp.f32 %v1367_v15 }
 0x4d7   : > { %2847 = vmatpush3.bf16.msra.mxu1 %v3795_v11  ;;  %v3164_v5 = vpop.eup %3163  ;;  %v1126_v54 = vmul.f32 %v3162_v21, %v3857_v37  ;;  %v857_v0 = vpack.c.bf16 %v853_v8, %v852_v23  ;;  %3179 = vrcp.f32 %v1113_v48 }
 0x4d8   : > { %2866 = vmatprep.subr.bf16.mxu1 %v3797_v14  ;;  %v3166_v45 = vpop.eup %3165  ;;  %v1125_v11 = vmul.f32 %v3164_v5, %v3842_v47  ;;  %3181 = vrcp.f32 %v1364_v12 }
 0x4d9   : > { %v1382_v58 = vpop.xlane.xlu0 %1381  ;;  %v851_v44 = vmul.f32 %v3166_v45, %v3883_v43  ;;  %v1376_v59 = vpop.xlane.xlu1 %1375  ;;  %3183 = vrcp.f32 %v1373_v33 }
 0x4da   : > { %v3168_v61 = vpop.eup %3167  ;;  %v1133_v4 = vpack.c.bf16 %v1126_v54, %v1125_v11 }
 0x4db   : > { %v856_v13 = vpack.c.bf16 %v851_v44, %v850_v28  ;;  %v1128_v10 = vmul.f32 %v3168_v61, %v3848_v53 }
 0x4dc   : > { %v3170_v42 = vpop.eup %3169 }
 0x4dd   : > { %v1379_v40 = vpop.xlane.xlu0 %1378  ;;  %2826 = vmatprep.mubr.msk.bf16.mxu1 %vm765_vm3, %v856_v13  ;;  %v3172_v37 = vpop.eup %3171  ;;  %v1130_v55 = vmul.f32 %v3170_v42, %v3894_v20 }
 0x4de   : > { %2827 = vmatmul.mubr.msk.bf16.gmra.mrb[12].mxu1 %vm765_vm3, %v857_v0  ;;  %v3174_v27 = vpop.eup %3173  ;;  %v1385_v43 = vpop.xlane.xlu1 %1384  ;;  %v1127_v49 = vmul.f32 %v3172_v37, %v3827_v32  ;;  %3185 = vrcp.f32 %v1379_v40 }
 0x4df   : > { %2848 = vmatprep.mubr.msk.bf16.mxu1 %vm765_vm3, %v1133_v4  ;;  %v1129_v48 = vmul.f32 %v3174_v27, %v3863_v41  ;;  %v3176_v12 = vpop.eup %3175  ;;  %3187 = vrcp.f32 %v1370_v36 }
 0x4e0   : > { %v1134_v3 = vpack.c.bf16 %v1128_v10, %v1127_v49  ;;  %v3178_v7 = vpop.eup %3177  ;;  %3189 = vrcp.f32 %v1376_v59  ;;  %v1132_v41 = vmul.f32 %v3176_v12, %v3875_v2 }
 0x4e1   : > { %v1641_v47 = vpop.xlane.xlu0 %1640  ;;  %v1135_v29 = vpack.c.bf16 %v1130_v55, %v1129_v48  ;;  %v3180_v53 = vpop.eup %3179  ;;  %v1395_v20 = vmul.f32 %v3178_v7, %v3905_v18  ;;  %3191 = vrcp.f32 %v1385_v43 }
 0x4e2   : > { %v1635_v15 = vpop.xlane.xlu1 %1634  ;;  %v3182_v32 = vpop.eup %3181  ;;  %v1131_v36 = vmul.f32 %v3180_v53, %v3854_v56 }
 0x4e3   : > { %v1394_v24 = vmul.f32 %v3182_v32, %v3888_v57  ;;  %v3184_v5 = vpop.eup %3183 }
 0x4e4   : > { %v1397_v56 = vmul.f32 %v3184_v5, %v3901_v17 }
 0x4e5   : > { %v1638_v16 = vpop.xlane.xlu0 %1637  ;;  %v1402_v45 = vpack.c.bf16 %v1395_v20, %v1394_v24 }
 0x4e6   : > { %2849 = vmatmul.mubr.msk.bf16.vlgmr.msra.gmra.mrb[16].mxu1 %vm765_vm3, %v1134_v3  ;;  %v1644_v21 = vpop.xlane.xlu1 %1643  ;;  %3193 = vrcp.f32 %v1638_v16 }
 0x4e7   : > { %2867 = vmatpush3.bf16.msra.mxu1 %v3797_v14  ;;  %2852 = vmatprep.mubr.msk.bf16.mxu1 %vm765_vm3, %v1135_v29  ;;  %v1136_v14 = vpack.c.bf16 %v1132_v41, %v1131_v36  ;;  %3195 = vrcp.f32 %v1382_v58 }
 0x4e8   : > { %2868 = vmatprep.subr.bf16.mxu1 %v3799_v19  ;;  %v3186_v8 = vpop.eup %3185  ;;  %3197 = vrcp.f32 %v1635_v15 }
 0x4e9   : > { %v1653_v33 = vpop.xlane.xlu0 %1652  ;;  %v3188_v2 = vpop.eup %3187  ;;  %v1399_v18 = vmul.f32 %v3186_v8, %v3924_v30  ;;  %3199 = vrcp.f32 %v1644_v21  ;;  %v3075_v21 = vld [vmem:[%s4361_s3] sm:$0xff]  }
 0x4ea   : > { %v1396_v58 = vmul.f32 %v3188_v2, %v3877_v52  ;;  %v1647_v28 = vpop.xlane.xlu1 %1646  ;;  %2908 = vmatprep.subr.bf16.mxu0 %v3075_v21 }
 0x4eb   : > { %2869 = vmatpush3.bf16.msra.mxu1 %v3799_v19  ;;  %v3190_v19 = vpop.eup %3189  ;;  %2909 = vmatpush3.bf16.msra.mxu0 %v3075_v21 }
 0x4ec   : > { %2870 = vmatprep.subr.bf16.mxu1 %v3801_v22  ;;  %v1398_v44 = vmul.f32 %v3190_v19, %v3914_v39  ;;  %v1403_v54 = vpack.c.bf16 %v1397_v56, %v1396_v58 }
 0x4ed   : > { %v1650_v57 = vpop.xlane.xlu0 %1649 }
 0x4ee   : > { %2853 = vmatmul.mubr.msk.bf16.gmra.mrb[20].mxu1 %vm765_vm3, %v1136_v14  ;;  %3201 = vrcp.f32 %v1650_v57  ;;  %v1404_v17 = vpack.c.bf16 %v1399_v18, %v1398_v44 }
 0x4ef   : > { %2871 = vmatpush3.bf16.msra.mxu1 %v3801_v22  ;;  %2874 = vmatprep.mubr.msk.bf16.mxu1 %vm765_vm3, %v1402_v45  ;;  %v3192_v22 = vpop.eup %3191  ;;  %3203 = vrcp.f32 %v1641_v47 }
 0x4f0   : > { %2872 = vmatprep.subr.bf16.mxu1 %v3971_v63  ;;  %v3194_v59 = vpop.eup %3193  ;;  %3205 = vrcp.f32 %v1647_v28  ;;  %v1401_v39 = vmul.f32 %v3192_v22, %v3921_v60  ;;  %v3076_v28 = vld [vmem:[%s4361_s3 + $0x8] sm:$0xff]  }
 0x4f1   : > { %v3196_v30 = vpop.eup %3195  ;;  %v1666_v23 = vmul.f32 %v3194_v59, %v3941_v1  ;;  %v1682_v11 = vpop.permute.xlu0 %1681  ;;  %2910 = vmatprep.subr.bf16.mxu0 %v3076_v28 }
 0x4f2   : > { %v3198_v52 = vpop.eup %3197  ;;  %v1400_v13 = vmul.f32 %v3196_v30, %v3908_v35  ;;  %2911 = vmatpush3.bf16.msra.mxu0 %v3076_v28 }
 0x4f3   : > { %2873 = vmatpush3.bf16.msra.mxu1 %v3971_v63  ;;  %v1656_v63 = vpop.xlane.xlu1 %1655  ;;  %v1665_v40 = vmul.f32 %v3198_v52, %v3932_v34  ;;  %v3200_v0 = vpop.eup %3199 }
 0x4f4   : > { %2892 = vmatprep.subr.bf16.mxu1 %v3967_v25  ;;  %3207 = vrcp.f32 %v1656_v63  ;;  %v1668_v1 = vmul.f32 %v3200_v0, %v3939_v62 }
 0x4f5   : > { %3209 = vrcp.f32 %v1653_v33  ;;  %v1673_v61 = vpack.c.bf16 %v1666_v23, %v1665_v40 }
 0x4f6   : > { %2875 = vmatmul.mubr.msk.bf16.vlgmr.msra.gmra.mrb[24].mxu1 %vm765_vm3, %v1403_v54 }
 0x4f7   : > { %2893 = vmatpush3.bf16.msra.mxu1 %v3967_v25  ;;  %2878 = vmatprep.mubr.msk.bf16.mxu1 %vm765_vm3, %v1404_v17  ;;  %v1405_v25 = vpack.c.bf16 %v1401_v39, %v1400_v13  ;;  %v1684_v60 = vpop.permute.xlu1 %1683 }
 0x4f8   : > { %2894 = vmatprep.subr.bf16.mxu1 %v3969_v51  ;;  %v3202_v4 = vpop.eup %3201 }
 0x4f9   : > { %v3204_v42 = vpop.eup %3203 }
 0x4fa   : > { %v3206_v35 = vpop.eup %3205  ;;  %v1667_v34 = vmul.f32 %v3204_v42, %v3926_v26 }
 0x4fb   : > { %2895 = vmatpush3.bf16.msra.mxu1 %v3969_v51  ;;  %v1670_v51 = vmul.f32 %v3202_v4, %v3957_v50  ;;  %v1669_v37 = vmul.f32 %v3206_v35, %v3949_v31 }
 0x4fc   : > { %2896 = vmatprep.subr.bf16.mxu1 %v1682_v11  ;;  %v1674_v27 = vpack.c.bf16 %v1668_v1, %v1667_v34 }
 0x4fd   : > { %v1675_v43 = vpack.c.bf16 %v1670_v51, %v1669_v37 }
 0x4fe   : > { %2879 = vmatmul.mubr.msk.bf16.gmra.mrb[28].mxu1 %vm765_vm3, %v1405_v25  ;;  %v3208_v10 = vpop.eup %3207 }
 0x4ff   : > { %2897 = vmatpush3.bf16.msra.mxu1 %v1682_v11  ;;  %2900 = vmatprep.mubr.msk.bf16.mxu1 %vm765_vm3, %v1673_v61  ;;  %v3210_v47 = vpop.eup %3209  ;;  %v1672_v55 = vmul.f32 %v3208_v10, %v3955_v46 }
 0x500   : > { %2898 = vmatprep.subr.bf16.mxu1 %v1684_v60  ;;  %v1671_v62 = vmul.f32 %v3210_v47, %v3943_v38 }
 0x502   : > { %v1676_v49 = vpack.c.bf16 %v1672_v55, %v1671_v62 }
 0x503   : > { %2899 = vmatpush3.bf16.msra.mxu1 %v1684_v60 }
 0x506   : > { %2901 = vmatmul.mubr.msk.bf16.vlgmr.msra.gmra.mrb[32].mxu1 %vm765_vm3, %v1674_v27 }
 0x507   : > { %2904 = vmatprep.mubr.msk.bf16.mxu1 %vm765_vm3, %v1675_v43 }
 0x50e   : > { %2905 = vmatmul.mubr.msk.bf16.gmra.mrb[36].mxu1 %vm765_vm3, %v1676_v49 }
 0x59d   : > { %v4040_v50 = vpop.f32.mrb[8].mxu1 }
 0x59e   : > { %v4042_v26 = vpop.f32.mrb[9].mxu1 }
 0x59f   : > { %v4044_v31 = vpop.f32.mrb[10].mxu1 }
 0x5a0   : > { %v4046_v48 = vpop.f32.mrb[11].mxu1 }
 0x5b1   : > { %v4048_v3 = vpop.f32.mrb[12].mxu1 }
 0x5b2   : > { %v4050_v12 = vpop.f32.mrb[13].mxu1 }
 0x5b3   : > { %v4052_v16 = vpop.f32.mrb[14].mxu1 }
 0x5b4   : > { %v4054_v46 = vpop.f32.mrb[15].mxu1 }
 0x5b9   : > { %v2850_v38 = vpop.f32.mrb[16].mxu1 }
 0x5ba   : > { %v1195_v29 = vpop.f32.mrb[17].mxu1 }
 0x5bb   : > { %v2851_v7 = vpop.f32.mrb[18].mxu1 }
 0x5bc   : > { %v3013_v15 = vpack.i.bf16 %v2851_v7, %v2850_v38  ;;  %v1198_v53 = vpop.f32.mrb[19].mxu1 }
 0x5bd   : > { %v3018_v32 = vpack.i.bf16 %v1198_v53, %v1195_v29 }
 0x5be   : > { %3014 = vrot.lane.b32.xlu1 %v3013_v15, %s3352_s19 }
 0x5bf   : > { %3019 = vrot.lane.b32.xlu0 %v3018_v32, %s3352_s19 }
 0x5c1   : > { %v2854_v41 = vpop.f32.mrb[20].mxu1 }
 0x5c2   : > { %v1211_v20 = vpop.f32.mrb[21].mxu1 }
 0x5c3   : > { %v2855_v36 = vpop.f32.mrb[22].mxu1 }
 0x5c4   : > { %v3023_v33 = vpack.i.bf16 %v2855_v36, %v2854_v41  ;;  %v1214_v24 = vpop.f32.mrb[23].mxu1 }
 0x5c5   : > { %v3028_v14 = vpack.i.bf16 %v1214_v24, %v1211_v20 }
 0x5c6   : > { %3024 = vrot.lane.b32.xlu1 %v3023_v33, %s3352_s19 }
 0x5c7   : > { %3029 = vrot.lane.b32.xlu0 %v3028_v14, %s3352_s19 }
 0x5c9   : > { %v2876_v5 = vpop.f32.mrb[24].mxu1 }
 0x5ca   : > { %v1464_v45 = vpop.f32.mrb[25].mxu1 }
 0x5cb   : > { %v2877_v8 = vpop.f32.mrb[26].mxu1 }
 0x5cc   : > { %v3033_v2 = vpack.i.bf16 %v2877_v8, %v2876_v5  ;;  %v1467_v19 = vpop.f32.mrb[27].mxu1 }
 0x5cd   : > { %v3038_v56 = vpack.i.bf16 %v1467_v19, %v1464_v45 }
 0x5ce   : > { %3034 = vrot.lane.b32.xlu1 %v3033_v2, %s3353_s24 }
 0x5cf   : > { %3039 = vrot.lane.b32.xlu0 %v3038_v56, %s3353_s24 }
 0x5d1   : > { %v2880_v57 = vpop.f32.mrb[28].mxu1 }
 0x5d2   : > { %v1480_v18 = vpop.f32.mrb[29].mxu1 }
 0x5d3   : > { %v2881_v58 = vpop.f32.mrb[30].mxu1 }
 0x5d4   : > { %v3058_v44 = vpack.i.bf16 %v2881_v58, %v2880_v57  ;;  %v1483_v54 = vpop.f32.mrb[31].mxu1 }
 0x5d5   : > { %v3053_v22 = vpack.i.bf16 %v1483_v54, %v1480_v18 }
 0x5d9   : > { %v2902_v17 = vpop.f32.mrb[32].mxu1 }
 0x5da   : > { %v1735_v59 = vpop.f32.mrb[33].mxu1 }
 0x5db   : > { %v2903_v30 = vpop.f32.mrb[34].mxu1 }
 0x5dc   : > { %v3043_v52 = vpack.i.bf16 %v2903_v30, %v2902_v17  ;;  %v1738_v63 = vpop.f32.mrb[35].mxu1 }
 0x5dd   : > { %v3048_v39 = vpack.i.bf16 %v1738_v63, %v1735_v59 }
 0x5de   : > { %3044 = vrot.lane.b32.xlu1 %v3043_v52, %s3354_s25 }
 0x5df   : > { %3049 = vrot.lane.b32.xlu0 %v3048_v39, %s3354_s25 }
 0x5e1   : > { %v2906_v23 = vpop.f32.mrb[36].mxu1 }
 0x5e2   : > { %3059 = vrot.lane.b32.xlu1 %v3058_v44, %s3353_s24  ;;  %v1751_v13 = vpop.f32.mrb[37].mxu1 }
 0x5e3   : > { %3054 = vrot.lane.b32.xlu0 %v3053_v22, %s3353_s24  ;;  %v2907_v11 = vpop.f32.mrb[38].mxu1 }
 0x5e4   : > { %v3068_v40 = vpack.i.bf16 %v2907_v11, %v2906_v23  ;;  %v1754_v25 = vpop.f32.mrb[39].mxu1 }
 0x5e5   : > { %v3063_v0 = vpack.i.bf16 %v1754_v25, %v1751_v13 }
 0x5e6   : > { %3069 = vrot.lane.b32.xlu1 %v3068_v40, %s3354_s25 }
 0x5e7   : > { %3064 = vrot.lane.b32.xlu0 %v3063_v0, %s3354_s25  ;;  %s458_s25 = scalar_lea.vmem [#allocation5], %s2639_s22  ;;  %s2546_s22 = scalar_lea.sflag [#allocation4], %s3531_s30 }
 0x5e8   : > { %s2559_s27 = sshll.u32 %s458_s25, 4  ;;  %s4307_s27 = int_to_ptr.vmem [resolvable:$true] %s2559_s27 }
 0x5e9   : > { %s3273_s24 = scalar_lea.vmem %s4307_s27, 512  ;;  %p3280_p8 = scmp.lt.s32.totalorder %s4307_s27, %s3278_s23 }
 0x5ea   : > { %p3274_p6 = scmp.ne.s32.totalorder %s4307_s27, %s3273_s24  ;;  %p3281_p10 = scmp.lt.s32.totalorder %s3279_s18, %s3273_s24 }
 0x5ec   : > { %p3275_p12 = pnand %p3274_p6, %p4404_p11  ;;  %p3282_p0 = por %p3281_p10, %p3280_p8 }
 0x5ee   : > { %p3276_p13 = pneg %p3275_p12 }
 0x5f0   : > { %p3283_p2 = pnand %p3282_p0, %p3276_p13 }
 0x630   : > { %v3015_v61 = vpop.permute.xlu1 %3014 }
 0x631   : > { %v3020_v4 = vpop.permute.xlu0 %3019  ;;  %v3017_v1 = vunpack.i.h.bf16 %v3015_v61  ;;  %v3016_v51 = vunpack.i.l.bf16 %v3015_v61 }
 0x632   : > { %v3022_v34 = vunpack.i.h.bf16 %v3020_v4  ;;  %v3021_v27 = vunpack.i.l.bf16 %v3020_v4 }
 0x633   : > { %v1865_v62 = vsel %vm683_vm1, %v4044_v31, %v3017_v1  ;;  %v1864_v49 = vsel %vm683_vm1, %v4040_v50, %v3016_v51 }
 0x634   : > { %v1863_v38 = vsel %vm683_vm1, %v4046_v48, %v3022_v34  ;;  %v1862_v7 = vsel %vm683_vm1, %v4042_v26, %v3021_v27 }
 0x638   : > { %v3025_v42 = vpop.permute.xlu1 %3024 }
 0x639   : > { %v3030_v60 = vpop.permute.xlu0 %3029  ;;  %v3027_v15 = vunpack.i.h.bf16 %v3025_v42  ;;  %v3026_v14 = vunpack.i.l.bf16 %v3025_v42  ;;  %v2680_v42 = vld [vmem:[%s4362_s4] ss:$0 sm:$0xff] }
 0x63a   : > { %v3032_v2 = vunpack.i.h.bf16 %v3030_v60  ;;  %v3031_v19 = vunpack.i.l.bf16 %v3030_v60 }
 0x63b   : > { %v1869_v54 = vsel %vm683_vm1, %v4052_v16, %v3027_v15  ;;  %v1868_v22 = vsel %vm683_vm1, %v4048_v3, %v3026_v14  ;;  %v4402_v14 = vld [vmem:[#allocation15_spill] sm:$0xff] }
 0x63c   : > { %v1867_v59 = vsel %vm683_vm1, %v4054_v46, %v3032_v2  ;;  %v1866_v30 = vsel %vm683_vm1, %v4050_v12, %v3031_v19 }
 0x640   : > { %v3035_v35 = vpop.permute.xlu1 %3034 }
 0x641   : > { %v3040_v37 = vpop.permute.xlu0 %3039  ;;  %v3037_v10 = vunpack.i.h.bf16 %v3035_v35  ;;  %v3036_v43 = vunpack.i.l.bf16 %v3035_v35 }
 0x642   : > { %v3042_v47 = vunpack.i.h.bf16 %v3040_v37  ;;  %v3041_v55 = vunpack.i.l.bf16 %v3040_v37 }
 0x643   : > { %v1874_v20 = vsel %vm1870_vm4, %v1865_v62, %v3037_v10  ;;  %v1873_v36 = vsel %vm1870_vm4, %v1864_v49, %v3036_v43 }
 0x644   : > { %v1871_v50 = vsel %vm1870_vm4, %v1862_v7, %v3041_v55  ;;  %v1872_v24 = vsel %vm1870_vm4, %v1863_v38, %v3042_v47  ;;  %v4398_v55 = vld [vmem:[#allocation12_spill] sm:$0xff]  ;;  %v4399_v7 = vld [vmem:[#allocation13_spill] sm:$0xff] }
 0x650   : > { %v3045_v29 = vpop.permute.xlu1 %3044 }
 0x651   : > { %v3047_v53 = vunpack.i.h.bf16 %v3045_v29  ;;  %v3046_v32 = vunpack.i.l.bf16 %v3045_v29  ;;  %v3050_v41 = vpop.permute.xlu0 %3049 }
 0x652   : > { %v3052_v31 = vunpack.i.h.bf16 %v3050_v41  ;;  %v3051_v33 = vunpack.i.l.bf16 %v3050_v41 }
 0x653   : > { %v1883_v48 = vsel %vm1879_vm5, %v1874_v20, %v3047_v53  ;;  %v1882_v21 = vsel %vm1879_vm5, %v1873_v36, %v3046_v32 }
 0x654   : > { %v1889_v26 = vpack.c.bf16 %v1883_v48, %v1882_v21  ;;  %v1880_v5 = vsel %vm1879_vm5, %v1871_v50, %v3051_v33  ;;  %v1881_v45 = vsel %vm1879_vm5, %v1872_v24, %v3052_v31  ;;  %v3060_v8 = vpop.permute.xlu1 %3059  ;;  %v4401_v24 = vld [vmem:[#allocation16_spill] sm:$0xff] }
 0x655   : > { %v1888_v56 = vpack.c.bf16 %v1881_v45, %v1880_v5  ;;  %v3055_v57 = vpop.permute.xlu0 %3054  ;;  %v3062_v18 = vunpack.i.h.bf16 %v3060_v8  ;;  %v3061_v58 = vunpack.i.l.bf16 %v3060_v8  ;;  %v4403_v45 = vld [vmem:[#allocation17_spill] sm:$0xff] }
 0x656   : > { %v3057_v28 = vunpack.i.h.bf16 %v3055_v57  ;;  %v3056_v44 = vunpack.i.l.bf16 %v3055_v57 }
 0x657   : > { %2912 = vmatprep.mubr.msk.bf16.mxu0 %vm523_vm0, %v1888_v56  ;;  %v1878_v23 = vsel %vm1870_vm4, %v1869_v54, %v3062_v18  ;;  %v1877_v13 = vsel %vm1870_vm4, %v1868_v22, %v3061_v58 }
 0x658   : > { %v3070_v17 = vpop.permute.xlu1 %3069  ;;  %2913 = vmatmul.mubr.msk.bf16.vlgmr.msra.gmra.mrb[32].mxu0 %vm523_vm0, %v1889_v26  ;;  %v1875_v3 = vsel %vm1870_vm4, %v1866_v30, %v3056_v44  ;;  %v1876_v40 = vsel %vm1870_vm4, %v1867_v59, %v3057_v28 }
 0x659   : > { %v3072_v52 = vunpack.i.h.bf16 %v3070_v17  ;;  %v3071_v63 = vunpack.i.l.bf16 %v3070_v17  ;;  %v3065_v39 = vpop.permute.xlu0 %3064 }
 0x65a   : > { %v3067_v16 = vunpack.i.h.bf16 %v3065_v39  ;;  %v3066_v11 = vunpack.i.l.bf16 %v3065_v39 }
 0x65b   : > { %v1887_v25 = vsel %vm1879_vm5, %v1878_v23, %v3072_v52  ;;  %v1886_v46 = vsel %vm1879_vm5, %v1877_v13, %v3071_v63 }
 0x65c   : > { %v1891_v0 = vpack.c.bf16 %v1887_v25, %v1886_v46  ;;  %v1884_v12 = vsel %vm1879_vm5, %v1875_v3, %v3066_v11  ;;  %v1885_v61 = vsel %vm1879_vm5, %v1876_v40, %v3067_v16 }
 0x65d   : > { %v1890_v4 = vpack.c.bf16 %v1885_v61, %v1884_v12 }
 0x65f   : > { %2916 = vmatprep.mubr.msk.bf16.mxu0 %vm523_vm0, %v1890_v4 }
 0x660   : > { %2917 = vmatmul.mubr.msk.bf16.gmra.mrb[36].mxu0 %vm523_vm0, %v1891_v0 }
 0x72b   : > { %v2914_v60 = vpop.f32.mrb[32].mxu0 }
 0x72c   : > { %v1961_v35 = vpop.f32.mrb[33].mxu0  ;;  %v1970_v1 = vadd.f32 %v2914_v60, %v2680_v42 }
 0x72d   : > { %v1962_v51 = vadd.f32 %v2680_v42, %v1961_v35  ;;  %v2915_v34 = vpop.f32.mrb[34].mxu0 }
 0x72e   : > { %v1964_v37 = vpop.f32.mrb[35].mxu0  ;;  %v1973_v43 = vadd.f32 %v2915_v34, %v2680_v42  ;;  %v1994_v47 = vadd.f32 %v1970_v1, %v3554_v9  ;;  %v4400_v9 = vld [vmem:[#allocation14_spill] sm:$0xff] }
 0x72f   : > { %v1992_v27 = vadd.f32 %v1962_v51, %v3547_v6  ;;  %v1965_v10 = vadd.f32 %v2680_v42, %v1964_v37 }
 0x730   : > { %v1995_v15 = vadd.f32 %v1973_v43, %v4399_v7  ;;  %v2008_v6 = vsel %vm523_vm0, %v1994_v47, 0.0  ;;  %v3078_v7 = vld [vmem:[%s4365_s7 + $0x8] sm:$0xff]  }
 0x731   : > { %v1993_v62 = vadd.f32 %v1965_v10, %v4398_v55  ;;  %v2002_v49 = vsel %vm523_vm0, %v1992_v27, 0.0 }
 0x732   : > { %2003 = vadd.xlane.f32.xlu0 %v2002_v49  ;;  %v2011_v50 = vsel %vm523_vm0, %v1995_v15, 0.0 }
 0x733   : > { %v2918_v38 = vpop.f32.mrb[36].mxu0  ;;  %v2005_v29 = vsel %vm523_vm0, %v1993_v62, 0.0 }
 0x734   : > { %v1977_v53 = vpop.f32.mrb[37].mxu0  ;;  %2006 = vadd.xlane.f32.xlu1 %v2005_v29  ;;  %v1986_v32 = vadd.f32 %v2918_v38, %v2680_v42  ;;  %v3077_v29 = vld [vmem:[%s4365_s7] sm:$0xff]  }
 0x735   : > { %v1978_v41 = vadd.f32 %v2680_v42, %v1977_v53  ;;  %v2919_v20 = vpop.f32.mrb[38].mxu0  ;;  %2920 = vmatprep.subr.bf16.mxu1 %v3077_v29  ;;  %v3080_v53 = vld [vmem:[%s4367_s9 + $0x8] sm:$0xff]  }
 0x736   : > { %v1980_v36 = vpop.f32.mrb[39].mxu0  ;;  %2009 = vadd.xlane.f32.xlu0 %v2008_v6  ;;  %v1998_v48 = vadd.f32 %v1986_v32, %v4401_v24  ;;  %v1989_v21 = vadd.f32 %v2919_v20, %v2680_v42  ;;  %2921 = vmatpush3.bf16.msra.mxu1 %v3077_v29 }
 0x737   : > { %v1996_v31 = vadd.f32 %v1978_v41, %v4400_v9  ;;  %v1981_v33 = vadd.f32 %v2680_v42, %v1980_v36  ;;  %2922 = vmatprep.subr.bf16.mxu1 %v3078_v7 }
 0x738   : > { %v1999_v8 = vadd.f32 %v1989_v21, %v4403_v45  ;;  %v2020_v2 = vsel %vm523_vm0, %v1998_v48, 0.0 }
 0x739   : > { %v1997_v26 = vadd.f32 %v1981_v33, %v4402_v14  ;;  %v2014_v5 = vsel %vm523_vm0, %v1996_v31, 0.0 }
 0x73a   : > { %2015 = vadd.xlane.f32.xlu1 %v2014_v5  ;;  %2012 = vadd.xlane.f32.xlu0 %v2011_v50  ;;  %v2023_v56 = vsel %vm523_vm0, %v1999_v8, 0.0 }
 0x73b   : > { %v2017_v19 = vsel %vm523_vm0, %v1997_v26, 0.0  ;;  %2923 = vmatpush3.bf16.msra.mxu1 %v3078_v7 }
 0x73e   : > { %2021 = vadd.xlane.f32.xlu1 %v2020_v2  ;;  %2018 = vadd.xlane.f32.xlu0 %v2017_v19 }
 0x742   : > { %2024 = vadd.xlane.f32.xlu0 %v2023_v56 }
 0x7bf   : > { %v2004_v57 = vpop.xlane.xlu0 %2003 }
 0x7c0   : > { %v2027_v18 = vmul.f32 0.03125, %v2004_v57  ;;  %v2687_v57 = vld [vmem:[%s4363_s5] ss:$0 sm:$0xff] }
 0x7c1   : > { %v2007_v58 = vpop.xlane.xlu1 %2006 }
 0x7c2   : > { %v4121_v28 = vsub.f32 %v1992_v27, %v2027_v18  ;;  %v2028_v44 = vmul.f32 0.03125, %v2007_v58 }
 0x7c3   : > { %v2010_v54 = vpop.xlane.xlu0 %2009 }
 0x7c4   : > { %v4123_v22 = vsub.f32 %v1993_v62, %v2028_v44  ;;  %v2029_v17 = vmul.f32 0.03125, %v2010_v54  ;;  %v2043_v59 = vmul.f32 %v4121_v28, %v4121_v28 }
 0x7c6   : > { %v4127_v30 = vsub.f32 %v1994_v47, %v2029_v17  ;;  %v2051_v52 = vsel %vm523_vm0, %v2043_v59, 0.0  ;;  %v2044_v63 = vmul.f32 %v4123_v22, %v4123_v22 }
 0x7c7   : > { %v2016_v39 = vpop.xlane.xlu1 %2015  ;;  %2052 = vadd.xlane.f32.xlu1 %v2051_v52  ;;  %v2013_v23 = vpop.xlane.xlu0 %2012 }
 0x7c8   : > { %v2031_v13 = vmul.f32 0.03125, %v2016_v39  ;;  %v2030_v16 = vmul.f32 0.03125, %v2013_v23  ;;  %v2054_v11 = vsel %vm523_vm0, %v2044_v63, 0.0  ;;  %v2045_v3 = vmul.f32 %v4127_v30, %v4127_v30  ;;  %v2688_v23 = vld [vmem:[%s4364_s6] ss:$0 sm:$0xff] }
 0x7c9   : > { %2055 = vadd.xlane.f32.xlu0 %v2054_v11 }
 0x7ca   : > { %v4135_v40 = vsub.f32 %v1996_v31, %v2031_v13  ;;  %v4137_v25 = vsub.f32 %v1995_v15, %v2030_v16  ;;  %v2057_v46 = vsel %vm523_vm0, %v2045_v3, 0.0  ;;  %v3079_v15 = vld [vmem:[%s4367_s9] sm:$0xff]  }
 0x7cb   : > { %v2022_v0 = vpop.xlane.xlu1 %2021  ;;  %2058 = vadd.xlane.f32.xlu1 %v2057_v46  ;;  %v2019_v12 = vpop.xlane.xlu0 %2018  ;;  %2932 = vmatprep.subr.bf16.mxu0 %v3079_v15 }
 0x7cc   : > { %v2033_v61 = vmul.f32 0.03125, %v2022_v0  ;;  %v2032_v4 = vmul.f32 0.03125, %v2019_v12  ;;  %v2047_v42 = vmul.f32 %v4135_v40, %v4135_v40  ;;  %v2046_v60 = vmul.f32 %v4137_v25, %v4137_v25  ;;  %2933 = vmatpush3.bf16.msra.mxu0 %v3079_v15  ;;  %v3081_v15 = vld [vmem:[%s4367_s9 + $0x10] sm:$0xff]  }
 0x7cd   : > { %2934 = vmatprep.subr.bf16.mxu0 %v3080_v53 }
 0x7ce   : > { %v4144_v35 = vsub.f32 %v1998_v48, %v2033_v61  ;;  %v4146_v1 = vsub.f32 %v1997_v26, %v2032_v4  ;;  %v2063_v51 = vsel %vm523_vm0, %v2047_v42, 0.0  ;;  %v2060_v34 = vsel %vm523_vm0, %v2046_v60, 0.0 }
 0x7cf   : > { %2064 = vadd.xlane.f32.xlu1 %v2063_v51  ;;  %2061 = vadd.xlane.f32.xlu0 %v2060_v34  ;;  %v2025_v37 = vpop.xlane.xlu0 %2024 }
 0x7d0   : > { %v2034_v27 = vmul.f32 0.03125, %v2025_v37  ;;  %v2049_v10 = vmul.f32 %v4144_v35, %v4144_v35  ;;  %v2048_v43 = vmul.f32 %v4146_v1, %v4146_v1  ;;  %2935 = vmatpush3.bf16.msra.mxu0 %v3080_v53  ;;  %v3082_v53 = vld [vmem:[%s4367_s9 + $0x18] sm:$0xff]  }
 0x7d1   : > { %2936 = vmatprep.subr.bf16.mxu0 %v3081_v15 }
 0x7d2   : > { %v4154_v47 = vsub.f32 %v1999_v8, %v2034_v27  ;;  %v2069_v55 = vsel %vm523_vm0, %v2049_v10, 0.0  ;;  %v2066_v62 = vsel %vm523_vm0, %v2048_v43, 0.0 }
 0x7d3   : > { %2070 = vadd.xlane.f32.xlu1 %v2069_v55  ;;  %2067 = vadd.xlane.f32.xlu0 %v2066_v62 }
 0x7d4   : > { %v2050_v49 = vmul.f32 %v4154_v47, %v4154_v47  ;;  %2937 = vmatpush3.bf16.msra.mxu0 %v3081_v15 }
 0x7d5   : > { %2938 = vmatprep.subr.bf16.mxu0 %v3082_v53 }
 0x7d6   : > { %v2072_v38 = vsel %vm523_vm0, %v2050_v49, 0.0 }
 0x7d7   : > { %2073 = vadd.xlane.f32.xlu0 %v2072_v38 }
 0x7d8   : > { %2939 = vmatpush3.bf16.msra.mxu0 %v3082_v53 }
 0x854   : > { %v2053_v32 = vpop.xlane.xlu1 %2052 }
 0x855   : > { %v2075_v41 = vmul.f32 0.03125, %v2053_v32  ;;  %v2689_v32 = vld [vmem:[%s4366_s8] ss:$0 sm:$0xff] }
 0x856   : > { %v2056_v20 = vpop.xlane.xlu0 %2055 }
 0x857   : > { %v2083_v6 = vadd.f32 1e-05, %v2075_v41  ;;  %v2076_v36 = vmul.f32 0.03125, %v2056_v20 }
 0x858   : > { %v2059_v9 = vpop.xlane.xlu1 %2058 }
 0x859   : > { %3211 = vrsqrt.f32 %v2083_v6  ;;  %v2084_v31 = vadd.f32 1e-05, %v2076_v36  ;;  %v2077_v33 = vmul.f32 0.03125, %v2059_v9 }
 0x85b   : > { %3213 = vrsqrt.f32 %v2084_v31  ;;  %v2085_v50 = vadd.f32 1e-05, %v2077_v33 }
 0x85c   : > { %v2065_v24 = vpop.xlane.xlu1 %2064  ;;  %v2062_v48 = vpop.xlane.xlu0 %2061 }
 0x85d   : > { %3215 = vrsqrt.f32 %v2085_v50  ;;  %v2079_v21 = vmul.f32 0.03125, %v2065_v24  ;;  %v2078_v14 = vmul.f32 0.03125, %v2062_v48 }
 0x85f   : > { %v2087_v26 = vadd.f32 1e-05, %v2079_v21  ;;  %v2086_v5 = vadd.f32 1e-05, %v2078_v14 }
 0x860   : > { %v2071_v45 = vpop.xlane.xlu1 %2070  ;;  %v2068_v8 = vpop.xlane.xlu0 %2067 }
 0x861   : > { %3217 = vrsqrt.f32 %v2087_v26  ;;  %v2081_v2 = vmul.f32 0.03125, %v2071_v45  ;;  %v2080_v19 = vmul.f32 0.03125, %v2068_v8 }
 0x862   : > { %3219 = vrsqrt.f32 %v2086_v5 }
 0x863   : > { %v3212_v56 = vpop.eup %3211  ;;  %v2089_v18 = vadd.f32 1e-05, %v2081_v2  ;;  %v2088_v58 = vadd.f32 1e-05, %v2080_v19 }
 0x864   : > { %v2099_v44 = vmul.f32 %v3212_v56, %v4121_v28  ;;  %v2074_v54 = vpop.xlane.xlu0 %2073 }
 0x865   : > { %v3214_v17 = vpop.eup %3213  ;;  %3221 = vrsqrt.f32 %v2089_v18  ;;  %v2082_v59 = vmul.f32 0.03125, %v2074_v54 }
 0x866   : > { %v2100_v52 = vmul.f32 %v3214_v17, %v4123_v22  ;;  %3223 = vrsqrt.f32 %v2088_v58  ;;  %v2113_v63 = vmul.f32 %v2687_v57, %v2099_v44 }
 0x867   : > { %v3216_v39 = vpop.eup %3215  ;;  %v2090_v13 = vadd.f32 1e-05, %v2082_v59 }
 0x868   : > { %v2114_v16 = vmul.f32 %v2687_v57, %v2100_v52  ;;  %v2101_v11 = vmul.f32 %v3216_v39, %v4127_v30  ;;  %v4182_v3 = vadd.f32 %v2688_v23, %v2113_v63  ;;  %v2696_v39 = vld [vmem:[%s4368_s10] ss:$0 sm:$0xff] }
 0x869   : > { %3225 = vrsqrt.f32 %v2090_v13 }
 0x86a   : > { %v4184_v28 = vadd.f32 %v2688_v23, %v2114_v16  ;;  %v2115_v12 = vmul.f32 %v2687_v57, %v2101_v11 }
 0x86b   : > { %v3218_v46 = vpop.eup %3217 }
 0x86c   : > { %v3220_v0 = vpop.eup %3219  ;;  %v2135_v22 = vpack.c.bf16 %v4184_v28, %v4182_v3  ;;  %v2103_v61 = vmul.f32 %v3218_v46, %v4135_v40  ;;  %v4192_v34 = vadd.f32 %v2688_v23, %v2115_v12 }
 0x86d   : > { %v2102_v4 = vmul.f32 %v3220_v0, %v4137_v25 }
 0x86e   : > { %2924 = vmatprep.mubr.msk.bf16.mxu1 %vm523_vm0, %v2135_v22  ;;  %v2117_v10 = vmul.f32 %v2687_v57, %v2103_v61 }
 0x86f   : > { %v3222_v42 = vpop.eup %3221  ;;  %v2116_v60 = vmul.f32 %v2687_v57, %v2102_v4 }
 0x870   : > { %v3224_v30 = vpop.eup %3223  ;;  %v2105_v51 = vmul.f32 %v3222_v42, %v4144_v35  ;;  %v4201_v49 = vadd.f32 %v2688_v23, %v2117_v10 }
 0x871   : > { %v4194_v37 = vadd.f32 %v2688_v23, %v2116_v60  ;;  %v2104_v27 = vmul.f32 %v3224_v30, %v4146_v1 }
 0x872   : > { %v2119_v62 = vmul.f32 %v2687_v57, %v2105_v51 }
 0x873   : > { %v3226_v43 = vpop.eup %3225  ;;  %v2136_v40 = vpack.c.bf16 %v4194_v37, %v4192_v34  ;;  %v2118_v55 = vmul.f32 %v2687_v57, %v2104_v27 }
 0x874   : > { %v2106_v25 = vmul.f32 %v3226_v43, %v4154_v47  ;;  %v4207_v1 = vadd.f32 %v2688_v23, %v2119_v62 }
 0x875   : > { %2925 = vmatmul.mubr.msk.bf16.vlgmr.msra.gmra.mrb[40].mxu1 %vm523_vm0, %v2136_v40  ;;  %v4203_v35 = vadd.f32 %v2688_v23, %v2118_v55 }
 0x876   : > { %v2120_v38 = vmul.f32 %v2687_v57, %v2106_v25 }
 0x877   : > { %v2137_v29 = vpack.c.bf16 %v4203_v35, %v4201_v49 }
 0x878   : > { %v4209_v7 = vadd.f32 %v2688_v23, %v2120_v38 }
 0x879   : > { %2928 = vmatprep.mubr.msk.bf16.mxu1 %vm523_vm0, %v2137_v29 }
 0x87a   : > { %v2138_v47 = vpack.c.bf16 %v4209_v7, %v4207_v1 }
 0x87d   : > { %2929 = vmatmul.mubr.msk.bf16.gmra.mrb[44].mxu1 %vm523_vm0, %v2138_v47 }
 0x948   : > { %v2926_v41 = vpop.f32.mrb[40].mxu1 }
 0x949   : > { %v2217_v20 = vadd.f32 %v2926_v41, %v2689_v32  ;;  %v2208_v6 = vpop.f32.mrb[41].mxu1 }
 0x94a   : > { %v2209_v36 = vadd.f32 %v2689_v32, %v2208_v6  ;;  %v2927_v9 = vpop.f32.mrb[42].mxu1 }
 0x94b   : > { %v2220_v31 = vadd.f32 %v2927_v9, %v2689_v32  ;;  %v2211_v33 = vpop.f32.mrb[43].mxu1  ;;  %v2241_v24 = vmax.f32 %v2217_v20, 0.0 }
 0x94c   : > { %v2212_v50 = vadd.f32 %v2689_v32, %v2211_v33  ;;  %v2239_v21 = vmax.f32 %v2209_v36, 0.0 }
 0x94d   : > { %v2242_v48 = vmax.f32 %v2220_v31, 0.0 }
 0x94e   : > { %v2240_v14 = vmax.f32 %v2212_v50, 0.0 }
 0x94f   : > { %v2248_v26 = vpack.c.bf16 %v2242_v48, %v2241_v24 }
 0x950   : > { %v2247_v5 = vpack.c.bf16 %v2240_v14, %v2239_v21  ;;  %v2930_v45 = vpop.f32.mrb[44].mxu1 }
 0x951   : > { %v2233_v8 = vadd.f32 %v2930_v45, %v2689_v32  ;;  %v2224_v2 = vpop.f32.mrb[45].mxu1 }
 0x952   : > { %v2225_v19 = vadd.f32 %v2689_v32, %v2224_v2  ;;  %v2931_v56 = vpop.f32.mrb[46].mxu1  ;;  %2940 = vmatprep.mubr.msk.bf16.mxu0 %vm765_vm3, %v2247_v5 }
 0x953   : > { %v2236_v57 = vadd.f32 %v2931_v56, %v2689_v32  ;;  %v2227_v18 = vpop.f32.mrb[47].mxu1  ;;  %2941 = vmatmul.mubr.msk.bf16.vlgmr.msra.gmra.mrb[40].mxu0 %vm765_vm3, %v2248_v26  ;;  %v2245_v44 = vmax.f32 %v2233_v8, 0.0 }
 0x954   : > { %v2228_v58 = vadd.f32 %v2689_v32, %v2227_v18  ;;  %v2243_v17 = vmax.f32 %v2225_v19, 0.0 }
 0x955   : > { %v2246_v54 = vmax.f32 %v2236_v57, 0.0 }
 0x956   : > { %v2244_v59 = vmax.f32 %v2228_v58, 0.0 }
 0x957   : > { %v2250_v52 = vpack.c.bf16 %v2246_v54, %v2245_v44 }
 0x958   : > { %v2249_v63 = vpack.c.bf16 %v2244_v59, %v2243_v17 }
 0x95a   : > { %2944 = vmatprep.mubr.msk.bf16.mxu0 %vm765_vm3, %v2249_v63 }
 0x95b   : > { %2945 = vmatmul.mubr.msk.bf16.gmra.mrb[44].mxu0 %vm765_vm3, %v2250_v52 }
 0xa26   : > { %v2942_v23 = vpop.f32.mrb[40].mxu0 }
 0xa27   : > { %v2336_v13 = vpop.f32.mrb[41].mxu0  ;;  %v2345_v16 = vadd.f32 %v2942_v23, %v2696_v39 }
 0xa28   : > { %v2337_v11 = vadd.f32 %v2696_v39, %v2336_v13  ;;  %v2943_v46 = vpop.f32.mrb[42].mxu0 }
 0xa29   : > { %v2339_v0 = vpop.f32.mrb[43].mxu0  ;;  %v2348_v12 = vadd.f32 %v2943_v46, %v2696_v39  ;;  %v2369_v4 = vadd.f32 %v2345_v16, %v4192_v34 }
 0xa2a   : > { %v2367_v22 = vadd.f32 %v2337_v11, %v4182_v3  ;;  %v2340_v61 = vadd.f32 %v2696_v39, %v2339_v0 }
 0xa2b   : > { %v2370_v30 = vadd.f32 %v2348_v12, %v4194_v37  ;;  %v2383_v3 = vsel %vm523_vm0, %v2369_v4, 0.0 }
 0xa2c   : > { %v2368_v42 = vadd.f32 %v2340_v61, %v4184_v28  ;;  %v2377_v60 = vsel %vm523_vm0, %v2367_v22, 0.0 }
 0xa2d   : > { %2378 = vadd.xlane.f32.xlu1 %v2377_v60  ;;  %v2386_v38 = vsel %vm523_vm0, %v2370_v30, 0.0 }
 0xa2e   : > { %v2946_v51 = vpop.f32.mrb[44].mxu0  ;;  %v2380_v27 = vsel %vm523_vm0, %v2368_v42, 0.0 }
 0xa2f   : > { %2381 = vadd.xlane.f32.xlu0 %v2380_v27  ;;  %v2352_v10 = vpop.f32.mrb[45].mxu0  ;;  %v2361_v43 = vadd.f32 %v2946_v51, %v2696_v39 }
 0xa30   : > { %v2353_v40 = vadd.f32 %v2696_v39, %v2352_v10  ;;  %v2947_v55 = vpop.f32.mrb[46].mxu0 }
 0xa31   : > { %2384 = vadd.xlane.f32.xlu1 %v2383_v3  ;;  %v2355_v25 = vpop.f32.mrb[47].mxu0  ;;  %v2364_v28 = vadd.f32 %v2947_v55, %v2696_v39  ;;  %v2373_v37 = vadd.f32 %v2361_v43, %v4207_v1 }
 0xa32   : > { %v2371_v34 = vadd.f32 %v2353_v40, %v4201_v49  ;;  %v2356_v62 = vadd.f32 %v2696_v39, %v2355_v25 }
 0xa33   : > { %2387 = vadd.xlane.f32.xlu0 %v2386_v38  ;;  %v2374_v15 = vadd.f32 %v2364_v28, %v4209_v7  ;;  %v2395_v32 = vsel %vm523_vm0, %v2373_v37, 0.0 }
 0xa34   : > { %v2372_v29 = vadd.f32 %v2356_v62, %v4203_v35  ;;  %v2389_v47 = vsel %vm523_vm0, %v2371_v34, 0.0 }
 0xa35   : > { %2390 = vadd.xlane.f32.xlu1 %v2389_v47  ;;  %v2398_v49 = vsel %vm523_vm0, %v2374_v15, 0.0 }
 0xa36   : > { %v2392_v53 = vsel %vm523_vm0, %v2372_v29, 0.0 }
 0xa37   : > { %2393 = vadd.xlane.f32.xlu0 %v2392_v53  ;;  %v2705_v53 = vld [vmem:[%s4369_s11] ss:$0 sm:$0xff] }
 0xa39   : > { %2396 = vadd.xlane.f32.xlu1 %v2395_v32 }
 0xa3b   : > { %2399 = vadd.xlane.f32.xlu0 %v2398_v49 }
 0xaba   : > { %v2379_v41 = vpop.xlane.xlu1 %2378 }
 0xabb   : > { %v2401_v20 = vmul.f32 0.03125, %v2379_v41 }
 0xabc   : > { %v2382_v6 = vpop.xlane.xlu0 %2381 }
 0xabd   : > { %v4247_v1 = vsub.f32 %v2367_v22, %v2401_v20  ;;  %v2402_v35 = vmul.f32 0.03125, %v2382_v6  ;;  %v2706_v20 = vld [vmem:[%s4370_s12] ss:$0 sm:$0xff] }
 0xabe   : > { %v2385_v36 = vpop.xlane.xlu1 %2384 }
 0xabf   : > { %v4249_v9 = vsub.f32 %v2368_v42, %v2402_v35  ;;  %v2403_v31 = vmul.f32 0.03125, %v2385_v36  ;;  %v2417_v7 = vmul.f32 %v4247_v1, %v4247_v1 }
 0xac0   : > { %v2388_v33 = vpop.xlane.xlu0 %2387 }
 0xac1   : > { %v4253_v50 = vsub.f32 %v2369_v4, %v2403_v31  ;;  %v2404_v24 = vmul.f32 0.03125, %v2388_v33  ;;  %v2425_v48 = vsel %vm523_vm0, %v2417_v7, 0.0  ;;  %v2418_v21 = vmul.f32 %v4249_v9, %v4249_v9 }
 0xac2   : > { %2426 = vadd.xlane.f32.xlu1 %v2425_v48  ;;  %v2391_v14 = vpop.xlane.xlu1 %2390 }
 0xac3   : > { %v4258_v26 = vsub.f32 %v2370_v30, %v2404_v24  ;;  %v2405_v5 = vmul.f32 0.03125, %v2391_v14  ;;  %v2428_v45 = vsel %vm523_vm0, %v2418_v21, 0.0  ;;  %v2419_v8 = vmul.f32 %v4253_v50, %v4253_v50 }
 0xac4   : > { %2429 = vadd.xlane.f32.xlu0 %v2428_v45  ;;  %v2394_v2 = vpop.xlane.xlu0 %2393 }
 0xac5   : > { %v4263_v19 = vsub.f32 %v2371_v34, %v2405_v5  ;;  %v2406_v56 = vmul.f32 0.03125, %v2394_v2  ;;  %v2431_v57 = vsel %vm523_vm0, %v2419_v8, 0.0  ;;  %v2420_v18 = vmul.f32 %v4258_v26, %v4258_v26 }
 0xac6   : > { %2432 = vadd.xlane.f32.xlu1 %v2431_v57  ;;  %v2397_v58 = vpop.xlane.xlu1 %2396 }
 0xac7   : > { %v4268_v44 = vsub.f32 %v2372_v29, %v2406_v56  ;;  %v2407_v54 = vmul.f32 0.03125, %v2397_v58  ;;  %v2434_v17 = vsel %vm523_vm0, %v2420_v18, 0.0  ;;  %v2421_v59 = vmul.f32 %v4263_v19, %v4263_v19 }
 0xac8   : > { %2435 = vadd.xlane.f32.xlu0 %v2434_v17  ;;  %v2400_v52 = vpop.xlane.xlu0 %2399 }
 0xac9   : > { %v4273_v63 = vsub.f32 %v2373_v37, %v2407_v54  ;;  %v2408_v39 = vmul.f32 0.03125, %v2400_v52  ;;  %v2437_v23 = vsel %vm523_vm0, %v2421_v59, 0.0  ;;  %v2422_v13 = vmul.f32 %v4268_v44, %v4268_v44 }
 0xaca   : > { %2438 = vadd.xlane.f32.xlu1 %v2437_v23 }
 0xacb   : > { %v4278_v16 = vsub.f32 %v2374_v15, %v2408_v39  ;;  %v2440_v11 = vsel %vm523_vm0, %v2422_v13, 0.0  ;;  %v2423_v46 = vmul.f32 %v4273_v63, %v4273_v63 }
 0xacc   : > { %2441 = vadd.xlane.f32.xlu0 %v2440_v11 }
 0xacd   : > { %v2443_v0 = vsel %vm523_vm0, %v2423_v46, 0.0  ;;  %v2424_v22 = vmul.f32 %v4278_v16, %v4278_v16 }
 0xace   : > { %2444 = vadd.xlane.f32.xlu1 %v2443_v0 }
 0xacf   : > { %v2446_v12 = vsel %vm523_vm0, %v2424_v22, 0.0 }
 0xad0   : > { %2447 = vadd.xlane.f32.xlu0 %v2446_v12 }
 0xb4f   : > { %v2427_v61 = vpop.xlane.xlu1 %2426 }
 0xb50   : > { %v2449_v4 = vmul.f32 0.03125, %v2427_v61 }
 0xb51   : > { %v2430_v42 = vpop.xlane.xlu0 %2429 }
 0xb52   : > { %v2457_v60 = vadd.f32 1e-05, %v2449_v4  ;;  %v2450_v30 = vmul.f32 0.03125, %v2430_v42 }
 0xb53   : > { %v2433_v51 = vpop.xlane.xlu1 %2432 }
 0xb54   : > { %3227 = vrsqrt.f32 %v2457_v60  ;;  %v2458_v27 = vadd.f32 1e-05, %v2450_v30  ;;  %v2451_v10 = vmul.f32 0.03125, %v2433_v51 }
 0xb55   : > { %v2436_v43 = vpop.xlane.xlu0 %2435 }
 0xb56   : > { %3229 = vrsqrt.f32 %v2458_v27  ;;  %v2459_v40 = vadd.f32 1e-05, %v2451_v10  ;;  %v2452_v55 = vmul.f32 0.03125, %v2436_v43 }
 0xb57   : > { %v2439_v3 = vpop.xlane.xlu1 %2438 }
 0xb58   : > { %3231 = vrsqrt.f32 %v2459_v40  ;;  %v2460_v25 = vadd.f32 1e-05, %v2452_v55  ;;  %v2453_v34 = vmul.f32 0.03125, %v2439_v3 }
 0xb59   : > { %v2442_v28 = vpop.xlane.xlu0 %2441 }
 0xb5a   : > { %3233 = vrsqrt.f32 %v2460_v25  ;;  %v2461_v62 = vadd.f32 1e-05, %v2453_v34  ;;  %v2454_v38 = vmul.f32 0.03125, %v2442_v28 }
 0xb5b   : > { %v2445_v37 = vpop.xlane.xlu1 %2444 }
 0xb5c   : > { %3235 = vrsqrt.f32 %v2461_v62  ;;  %v2462_v47 = vadd.f32 1e-05, %v2454_v38  ;;  %v2455_v15 = vmul.f32 0.03125, %v2445_v37 }
 0xb5d   : > { %v2448_v32 = vpop.xlane.xlu0 %2447 }
 0xb5e   : > { %v3228_v29 = vpop.eup %3227  ;;  %3237 = vrsqrt.f32 %v2462_v47  ;;  %v2463_v31 = vadd.f32 1e-05, %v2455_v15  ;;  %v2456_v7 = vmul.f32 0.03125, %v2448_v32 }
 0xb5f   : > { %v2473_v49 = vmul.f32 %v3228_v29, %v4247_v1 }
 0xb60   : > { %v3230_v41 = vpop.eup %3229  ;;  %3239 = vrsqrt.f32 %v2463_v31  ;;  %v2464_v1 = vadd.f32 1e-05, %v2456_v7 }
 0xb61   : > { %v2487_v6 = vmul.f32 %v2705_v53, %v2473_v49  ;;  %v2474_v35 = vmul.f32 %v3230_v41, %v4249_v9 }
 0xb62   : > { %v3232_v36 = vpop.eup %3231  ;;  %3241 = vrsqrt.f32 %v2464_v1 }
 0xb63   : > { %v2501_v33 = vadd.f32 %v2706_v20, %v2487_v6  ;;  %v2488_v24 = vmul.f32 %v2705_v53, %v2474_v35  ;;  %v2475_v48 = vmul.f32 %v3232_v36, %v4253_v50 }
 0xb64   : > { %v3234_v21 = vpop.eup %3233 }
 0xb65   : > { %2509 = vxpose.xlu1.b32.start [1/8] (short) (narrow) %v2501_v33, 32  ;;  %v2502_v14 = vadd.f32 %v2706_v20, %v2488_v24  ;;  %v2489_v5 = vmul.f32 %v2705_v53, %v2475_v48  ;;  %v2476_v45 = vmul.f32 %v3234_v21, %v4258_v26 }
 0xb66   : > { %v3236_v8 = vpop.eup %3235 }
 0xb67   : > { %v2503_v9 = vadd.f32 %v2706_v20, %v2489_v5  ;;  %v2490_v2 = vmul.f32 %v2705_v53, %v2476_v45  ;;  %v2477_v56 = vmul.f32 %v3236_v8, %v4263_v19 }
 0xb68   : > { %v3238_v57 = vpop.eup %3237 }
 0xb69   : > { %2510 = vxpose.xlu1.b32.cont [2/8] (short) (narrow) %v2502_v14, 32  ;;  %v2504_v18 = vadd.f32 %v2706_v20, %v2490_v2  ;;  %v2491_v58 = vmul.f32 %v2705_v53, %v2477_v56  ;;  %v2478_v50 = vmul.f32 %v3238_v57, %v4268_v44 }
 0xb6a   : > { %v3240_v54 = vpop.eup %3239 }
 0xb6b   : > { %v2505_v17 = vadd.f32 %v2706_v20, %v2491_v58  ;;  %v2492_v59 = vmul.f32 %v2705_v53, %v2478_v50  ;;  %v2479_v26 = vmul.f32 %v3240_v54, %v4273_v63 }
 0xb6c   : > { %v3242_v52 = vpop.eup %3241 }
 0xb6d   : > { %2511 = vxpose.xlu1.b32.cont [3/8] (short) (narrow) %v2503_v9, 32  ;;  %v2506_v39 = vadd.f32 %v2706_v20, %v2492_v59  ;;  %v2493_v23 = vmul.f32 %v2705_v53, %v2479_v26  ;;  %v2480_v19 = vmul.f32 %v3242_v52, %v4278_v16 }
 0xb6f   : > { %v2507_v13 = vadd.f32 %v2706_v20, %v2493_v23  ;;  %v2494_v11 = vmul.f32 %v2705_v53, %v2480_v19 }
 0xb71   : > { %2512 = vxpose.xlu1.b32.cont [4/8] (short) (narrow) %v2504_v18, 32  ;;  %v2508_v44 = vadd.f32 %v2706_v20, %v2494_v11 }
 0xb75   : > { %2513 = vxpose.xlu1.b32.cont [5/8] (short) (narrow) %v2505_v17, 32 }
 0xb79   : > { %2514 = vxpose.xlu1.b32.cont [6/8] (short) (narrow) %v2506_v39, 32 }
 0xb7d   : > { %2515 = vxpose.xlu1.b32.cont [7/8] (short) (narrow) %v2507_v13, 32 }
 0xb81   : > { %2516 = vxpose.xlu1.b32.end [8/8] (short) (narrow) %v2508_v44, 32 }
 0xbe5   : > { %v2525_v46 = vpop.trf.xlu1 }
 0xbe6   : > { %2541 = vst.msk [vmem:[%s458_s25] sm:$0xff] %vm765_vm3, %v2525_v46 }
 0xbe9   : > { %v2526_v63 = vpop.trf.xlu1 }
 0xbea   : > { %2542 = vst.msk [vmem:[%s458_s25 + $0x8] sm:$0xff] %vm765_vm3, %v2526_v63 }
 0xbed   : > { %v2527_v0 = vpop.trf.xlu1 }
 0xbee   : > { %2543 = vst.msk [vmem:[%s458_s25 + $0x10] sm:$0xff] %vm765_vm3, %v2527_v0 }
 0xbf1   : > { %v2528_v16 = vpop.trf.xlu1 }
 0xbf2   : > { %2544 = vst.msk [vmem:[%s458_s25 + $0x18] sm:$0xff] %vm765_vm3, %v2528_v16 }
 0xbf3   : > { %3286 = shalt.err (!%p3283_p2)
}
 0xbf4   : > { %s3287_s25 = scalar_lea.hbm %s4312_s15, 512  ;;  %s3291_s16 = scalar_lea.hbm %s4371_s13, 1024 }
 0xbf5   : > { %p3288_p4 = scmp.ne.s32.totalorder %s4312_s15, %s3287_s25  ;;  %p3292_p9 = scmp.lt.u32.totalorder %s4312_s15, %s4371_s13 }
 0xbf6   : > { %p3293_p1 = scmp.lt.u32.totalorder %s3291_s16, %s3287_s25  ;;  %p3295_p6 = scmp.lt.u32.totalorder %s3287_s25, %s4312_s15 }
 0xbf7   : > { %p3289_p5 = pnand %p3288_p4, %p4404_p11 }
 0xbf8   : > { %p3294_p3 = por %p3293_p1, %p3292_p9 }
 0xbf9   : > { %p3290_p7 = pneg %p3289_p5 }
 0xbfa   : > { %p3296_p12 = por %p3295_p6, %p3294_p3 }
 0xbfc   : > { %p3297_p13 = pnand %p3296_p12, %p3290_p7 }
 0xbfe   : > { %3300 = shalt.err (!%p3297_p13)
}
 0xbff   : > { %s3356_s24 = smov 128  }
 0xc00   : > { %2954 = dma.vmem_to_hbm [thread:$0]  (%p4404_p11), %s4307_s27, 512, %s4312_s15, %s2546_s22, %s3356_s24, %s3356_s24, %s3352_s19  }
 0xc01 PF: > { %s4405_s18 = sld [smem:[#allocation8_spill]]  ;;  %p4406_p8 = scmp.ne.s32.totalorder %s4390_s21, 0 }
 0xc02   : > { %p4407_p10 = scmp.ge.s32.totalorder %s3339_s28, 2 }
 0xc04   : > { %p2961_p0 = pnand %p4407_p10, %p4406_p8 }
 0xc07   : > { %s2574_s14 = sand.u32 1, %s4405_s18  }
 0xc08   : > { %s2575_s25 = scalar_lea.sflag [#allocation4], %s2574_s14 }
 0xc09   : > { %3322 = dma.done.wait (!%p2961_p0), %s2575_s25, 512  }
 0xc0a   : > { %3324 = vsyncadd (!%p2961_p0), %s2575_s25, 4294966784  ;;  %s4408_s28 = sld [smem:[#allocation10_spill]]  ;;  %s4409_s20 = sld [smem:[#allocation9_spill]] }
 0xc0b   : > { %s4410_s27 = sld [smem:[#allocation11_spill]]  ;;  %s4411_s25 = smov %s3331_s26 }
 0xc10   : > { %p26_p2 = scmp.ge.s32.totalorder %s4408_s28, 4   ;;  %s4412_s26 = smov %s4409_s20 }
 0xc12   :  { %28 = sbr.rel (!%p26_p2) target bundleno = 5 (0x5), region = 117 }
 0xc19   :  { %2580 = vsyncpa [#allocation3], 1 }
 0xc1a   :  { %2582 = vsyncpa [#allocation3 + $0x1], 1 }
 0xc1b   :  { %2583 = vsyncpa [#allocation4], 1 }
 0xc1c   :  { %2585 = vsyncpa [#allocation4 + $0x1], 1 }

</bundles_post_ra>
